<compile_context>
chip_gen: v6e
topology: v6e:2x2x1
jax: 0.10.0
libtpu: 0.0.40
codegen_flags: <defaults>
</compile_context>

<pallas_src>
import jax
import jax.numpy as jnp
from jax.experimental import pallas as pl
from jax.experimental.pallas import tpu as pltpu


def _mlp_kernel(x_ref,
                w1_ref, b1_ref,
                w2_ref, b2_ref,
                w3_ref, b3_ref,
                w4_ref, b4_ref,
                o_ref):
    x = x_ref[...]                       # (3, T)   lane-dense batch tile
    w1 = w1_ref[...]                     # (128, 3)

    # Layer 1 (in=3): VPU broadcast-FMAs instead of a K=3 MXU matmul.
    h = (w1[:, 0:1] * x[0:1, :]
         + w1[:, 1:2] * x[1:2, :]
         + w1[:, 2:3] * x[2:3, :]
         + b1_ref[...])                  # (128, T)
    h = jnp.maximum(h, 0.0)

    # Layer 2: 128 -> 128 (MXU, f32 accumulate).
    h = jnp.dot(w2_ref[...], h, preferred_element_type=jnp.float32) + b2_ref[...]
    h = jnp.maximum(h, 0.0)

    # Layer 3: 128 -> 64 (MXU).
    h = jnp.dot(w3_ref[...], h, preferred_element_type=jnp.float32) + b3_ref[...]
    h = jnp.maximum(h, 0.0)

    # Layer 4: 64 -> 3.  Output (3, T) stays lane dense -> unmasked stores.
    y = jnp.dot(w4_ref[...], h, preferred_element_type=jnp.float32) + b4_ref[...]
    o_ref[...] = y.astype(o_ref.dtype)


def _round_up(n, m):
    return ((n + m - 1) // m) * m


def rgb_to_hsv_mlp(x, params, *, tile_n=2048):
    """x: (N, 3) float32.  params: list of (W, b) with W as (out, in) [PyTorch
    layout], b as (out, 1).  Returns (N, 3)."""
    N, fin = x.shape
    assert fin == 3
    assert tile_n >= 256 and tile_n % 256 == 0, "tile_n must be a multiple of 256"

    (w1, b1), (w2, b2), (w3, b3), (w4, b4) = params

    # Adapt tile to the input and pad the batch axis so it divides evenly.
    tile = min(tile_n, _round_up(N, 256))
    n_pad = _round_up(N, tile)

    # Lane-dense (feature, batch) layout, zero-padded along the batch axis.
    xt = jnp.zeros((3, n_pad), x.dtype).at[:, :N].set(x.T)

    full = lambda a: pl.BlockSpec(a.shape, lambda i: (0, 0))

    out_t = pl.pallas_call(
        _mlp_kernel,
        out_shape=jax.ShapeDtypeStruct((3, n_pad), x.dtype),
        grid_spec=pltpu.PrefetchScalarGridSpec(
            num_scalar_prefetch=0,
            grid=(n_pad // tile,),
            in_specs=[
                pl.BlockSpec((3, tile), lambda i: (0, i)),   # x tile (lane-dense)
                full(w1), full(b1),
                full(w2), full(b2),
                full(w3), full(b3),
                full(w4), full(b4),
            ],
            out_specs=pl.BlockSpec((3, tile), lambda i: (0, i)),
        ),
        compiler_params=pltpu.CompilerParams(
            dimension_semantics=("parallel",),
            vmem_limit_bytes=48 * 1024 * 1024,
        ),
    )(xt, w1, b1, w2, b2, w3, b3, w4, b4)

    return out_t[:, :N].T


def init_params(key):
    """Deterministic init mimicking PyTorch nn.Linear default:
    U(-1/sqrt(in), 1/sqrt(in)) for weights (out, in) and biases (out, 1)."""
    dims = [(3, 128), (128, 128), (128, 64), (64, 3)]
    params = []
    for fin, fout in dims:
        key, kw, kb = jax.random.split(key, 3)
        bound = 1.0 / (fin ** 0.5)
        w = jax.random.uniform(kw, (fout, fin), jnp.float32, -bound, bound)
        b = jax.random.uniform(kb, (fout, 1), jnp.float32, -bound, bound)
        params.append((w, b))
    return params


def reference_mlp(x, params):
    h = x
    for i, (w, b) in enumerate(params):
        h = jnp.dot(h, w.T, precision=jax.lax.Precision.HIGHEST) + b[:, 0]
        if i < len(params) - 1:
            h = jnp.maximum(h, 0.0)
    return h


if __name__ == "__main__":
    key = jax.random.PRNGKey(0)
    k_param, k_x1, k_x2 = jax.random.split(key, 3)

    params = init_params(k_param)

    # Case 1: batch not a multiple of the tile (exercises padding), single grid step.
    x1 = jax.random.uniform(k_x1, (1000, 3), jnp.float32)
    out1 = jax.block_until_ready(rgb_to_hsv_mlp(x1, params))

    # Case 2: multi-step grid (tile_n=256 -> 4 grid steps over 1024 rows).
    x2 = jax.random.uniform(k_x2, (1024, 3), jnp.float32)
    out2 = jax.block_until_ready(rgb_to_hsv_mlp(x2, params, tile_n=256))

    ref1 = reference_mlp(x1, params)
    ref2 = reference_mlp(x2, params)

    assert out1.shape == (1000, 3) and out2.shape == (1024, 3)
    assert jnp.allclose(out1, ref1, atol=2e-3, rtol=2e-3), "mismatch vs reference (case 1)"
    assert jnp.allclose(out2, ref2, atol=2e-3, rtol=2e-3), "mismatch vs reference (case 2)"

    print("KERNEL_OK")
</pallas_src>

<mosaic_0001>
module attributes {stable_mosaic.version = 11 : i64} {
  func.func @_mlp_kernel(%arg0: i32, %arg1: memref<3x1024xf32, #tpu.memory_space<vmem>>, %arg2: memref<128x3xf32, #tpu.memory_space<vmem>>, %arg3: memref<128x1xf32, #tpu.memory_space<vmem>>, %arg4: memref<128x128xf32, #tpu.memory_space<vmem>>, %arg5: memref<128x1xf32, #tpu.memory_space<vmem>>, %arg6: memref<64x128xf32, #tpu.memory_space<vmem>>, %arg7: memref<64x1xf32, #tpu.memory_space<vmem>>, %arg8: memref<3x64xf32, #tpu.memory_space<vmem>>, %arg9: memref<3x1xf32, #tpu.memory_space<vmem>>, %arg10: memref<3x1024xf32, #tpu.memory_space<vmem>>) attributes {dimension_semantics = [#tpu.dimension_semantics<parallel>], iteration_bounds = array<i64: 1>, scalar_prefetch = 0 : i64, scratch_operands = 0 : i64, tpu.core_type = #tpu.core_type<tc>, window_params = [{transform_indices = @transform_0, window_bounds = array<i64: 3, 1024>}, {pipeline_mode = #tpu.pipeline_mode<synchronous>, transform_indices = @transform_1, window_bounds = array<i64: 128, 3>}, {pipeline_mode = #tpu.pipeline_mode<synchronous>, transform_indices = @transform_2, window_bounds = array<i64: 128, 1>}, {pipeline_mode = #tpu.pipeline_mode<synchronous>, transform_indices = @transform_3, window_bounds = array<i64: 128, 128>}, {pipeline_mode = #tpu.pipeline_mode<synchronous>, transform_indices = @transform_4, window_bounds = array<i64: 128, 1>}, {pipeline_mode = #tpu.pipeline_mode<synchronous>, transform_indices = @transform_5, window_bounds = array<i64: 64, 128>}, {pipeline_mode = #tpu.pipeline_mode<synchronous>, transform_indices = @transform_6, window_bounds = array<i64: 64, 1>}, {pipeline_mode = #tpu.pipeline_mode<synchronous>, transform_indices = @transform_7, window_bounds = array<i64: 3, 64>}, {pipeline_mode = #tpu.pipeline_mode<synchronous>, transform_indices = @transform_8, window_bounds = array<i64: 3, 1>}, {transform_indices = @transform_9, window_bounds = array<i64: 3, 1024>}]} {
    %c0 = arith.constant 0 : index
    %c0_0 = arith.constant 0 : index
    %0 = vector.load %arg1[%c0, %c0_0] : memref<3x1024xf32, #tpu.memory_space<vmem>>, vector<3x1024xf32>
    %c0_1 = arith.constant 0 : index
    %c0_2 = arith.constant 0 : index
    %1 = vector.load %arg2[%c0_1, %c0_2] : memref<128x3xf32, #tpu.memory_space<vmem>>, vector<128x3xf32>
    %2 = vector.extract_strided_slice %1 {offsets = [0, 0], sizes = [128, 1], strides = [1, 1]} : vector<128x3xf32> to vector<128x1xf32>
    %3 = vector.extract_strided_slice %0 {offsets = [0, 0], sizes = [1, 1024], strides = [1, 1]} : vector<3x1024xf32> to vector<1x1024xf32>
    %4 = vector.broadcast %2 : vector<128x1xf32> to vector<128x1024xf32>
    %5 = vector.broadcast %3 : vector<1x1024xf32> to vector<128x1024xf32>
    %6 = arith.mulf %4, %5 : vector<128x1024xf32>
    %7 = vector.extract_strided_slice %1 {offsets = [0, 1], sizes = [128, 1], strides = [1, 1]} : vector<128x3xf32> to vector<128x1xf32>
    %8 = vector.extract_strided_slice %0 {offsets = [1, 0], sizes = [1, 1024], strides = [1, 1]} : vector<3x1024xf32> to vector<1x1024xf32>
    %9 = vector.broadcast %7 : vector<128x1xf32> to vector<128x1024xf32>
    %10 = vector.broadcast %8 : vector<1x1024xf32> to vector<128x1024xf32>
    %11 = arith.mulf %9, %10 : vector<128x1024xf32>
    %12 = arith.addf %6, %11 : vector<128x1024xf32>
    %13 = vector.extract_strided_slice %1 {offsets = [0, 2], sizes = [128, 1], strides = [1, 1]} : vector<128x3xf32> to vector<128x1xf32>
    %14 = vector.extract_strided_slice %0 {offsets = [2, 0], sizes = [1, 1024], strides = [1, 1]} : vector<3x1024xf32> to vector<1x1024xf32>
    %15 = vector.broadcast %13 : vector<128x1xf32> to vector<128x1024xf32>
    %16 = vector.broadcast %14 : vector<1x1024xf32> to vector<128x1024xf32>
    %17 = arith.mulf %15, %16 : vector<128x1024xf32>
    %18 = arith.addf %12, %17 : vector<128x1024xf32>
    %c0_3 = arith.constant 0 : index
    %c0_4 = arith.constant 0 : index
    %19 = vector.load %arg3[%c0_3, %c0_4] : memref<128x1xf32, #tpu.memory_space<vmem>>, vector<128x1xf32>
    %20 = vector.broadcast %19 : vector<128x1xf32> to vector<128x1024xf32>
    %21 = arith.addf %18, %20 : vector<128x1024xf32>
    %cst = arith.constant 0.000000e+00 : f32
    %22 = vector.broadcast %cst : f32 to vector<128x1024xf32>
    %23 = arith.maximumf %21, %22 : vector<128x1024xf32>
    %c0_5 = arith.constant 0 : index
    %c0_6 = arith.constant 0 : index
    %24 = vector.load %arg4[%c0_5, %c0_6] : memref<128x128xf32, #tpu.memory_space<vmem>>, vector<128x128xf32>
    %cst_7 = arith.constant dense<0.000000e+00> : vector<128x1024xf32>
    %25 = tpu.matmul %24, %23, %cst_7 {dimension_numbers = #tpu.dot_dimension_numbers<[1], [0], [0], [1], [0, 0, 1, 1], [], []>} : vector<128x128xf32>, vector<128x1024xf32>, vector<128x1024xf32> -> vector<128x1024xf32>
    %c0_8 = arith.constant 0 : index
    %c0_9 = arith.constant 0 : index
    %26 = vector.load %arg5[%c0_8, %c0_9] : memref<128x1xf32, #tpu.memory_space<vmem>>, vector<128x1xf32>
    %27 = vector.broadcast %26 : vector<128x1xf32> to vector<128x1024xf32>
    %28 = arith.addf %25, %27 : vector<128x1024xf32>
    %cst_10 = arith.constant 0.000000e+00 : f32
    %29 = vector.broadcast %cst_10 : f32 to vector<128x1024xf32>
    %30 = arith.maximumf %28, %29 : vector<128x1024xf32>
    %c0_11 = arith.constant 0 : index
    %c0_12 = arith.constant 0 : index
    %31 = vector.load %arg6[%c0_11, %c0_12] : memref<64x128xf32, #tpu.memory_space<vmem>>, vector<64x128xf32>
    %cst_13 = arith.constant dense<0.000000e+00> : vector<64x1024xf32>
    %32 = tpu.matmul %31, %30, %cst_13 {dimension_numbers = #tpu.dot_dimension_numbers<[1], [0], [0], [1], [0, 0, 1, 1], [], []>} : vector<64x128xf32>, vector<128x1024xf32>, vector<64x1024xf32> -> vector<64x1024xf32>
    %c0_14 = arith.constant 0 : index
    %c0_15 = arith.constant 0 : index
    %33 = vector.load %arg7[%c0_14, %c0_15] : memref<64x1xf32, #tpu.memory_space<vmem>>, vector<64x1xf32>
    %34 = vector.broadcast %33 : vector<64x1xf32> to vector<64x1024xf32>
    %35 = arith.addf %32, %34 : vector<64x1024xf32>
    %cst_16 = arith.constant 0.000000e+00 : f32
    %36 = vector.broadcast %cst_16 : f32 to vector<64x1024xf32>
    %37 = arith.maximumf %35, %36 : vector<64x1024xf32>
    %c0_17 = arith.constant 0 : index
    %c0_18 = arith.constant 0 : index
    %38 = vector.load %arg8[%c0_17, %c0_18] : memref<3x64xf32, #tpu.memory_space<vmem>>, vector<3x64xf32>
    %cst_19 = arith.constant dense<0.000000e+00> : vector<3x1024xf32>
    %39 = tpu.matmul %38, %37, %cst_19 {dimension_numbers = #tpu.dot_dimension_numbers<[1], [0], [0], [1], [0, 0, 1, 1], [], []>} : vector<3x64xf32>, vector<64x1024xf32>, vector<3x1024xf32> -> vector<3x1024xf32>
    %c0_20 = arith.constant 0 : index
    %c0_21 = arith.constant 0 : index
    %40 = vector.load %arg9[%c0_20, %c0_21] : memref<3x1xf32, #tpu.memory_space<vmem>>, vector<3x1xf32>
    %41 = vector.broadcast %40 : vector<3x1xf32> to vector<3x1024xf32>
    %42 = arith.addf %39, %41 : vector<3x1024xf32>
    %c0_22 = arith.constant 0 : index
    %c0_23 = arith.constant 0 : index
    %43 = vector.load %arg10[%c0_22, %c0_23] : memref<3x1024xf32, #tpu.memory_space<vmem>>, vector<3x1024xf32>
    tpu.vector_store %arg10[%c0_22, %c0_23], %42 {strides = array<i32>} : memref<3x1024xf32, #tpu.memory_space<vmem>>, vector<3x1024xf32>,
    return
  }
  func.func @transform_0(%arg0: i32) -> (i32, i32) {
    %c0_i32 = arith.constant 0 : i32
    %c0_i32_0 = arith.constant 0 : i32
    return %c0_i32, %arg0 : i32, i32
  }
  func.func @transform_1(%arg0: i32) -> (i32, i32) {
    %c0_i32 = arith.constant 0 : i32
    %c0_i32_0 = arith.constant 0 : i32
    %c0_i32_1 = arith.constant 0 : i32
    return %c0_i32, %c0_i32_0 : i32, i32
  }
  func.func @transform_2(%arg0: i32) -> (i32, i32) {
    %c0_i32 = arith.constant 0 : i32
    %c0_i32_0 = arith.constant 0 : i32
    %c0_i32_1 = arith.constant 0 : i32
    return %c0_i32, %c0_i32_0 : i32, i32
  }
  func.func @transform_3(%arg0: i32) -> (i32, i32) {
    %c0_i32 = arith.constant 0 : i32
    %c0_i32_0 = arith.constant 0 : i32
    %c0_i32_1 = arith.constant 0 : i32
    return %c0_i32, %c0_i32_0 : i32, i32
  }
  func.func @transform_4(%arg0: i32) -> (i32, i32) {
    %c0_i32 = arith.constant 0 : i32
    %c0_i32_0 = arith.constant 0 : i32
    %c0_i32_1 = arith.constant 0 : i32
    return %c0_i32, %c0_i32_0 : i32, i32
  }
  func.func @transform_5(%arg0: i32) -> (i32, i32) {
    %c0_i32 = arith.constant 0 : i32
    %c0_i32_0 = arith.constant 0 : i32
    %c0_i32_1 = arith.constant 0 : i32
    return %c0_i32, %c0_i32_0 : i32, i32
  }
  func.func @transform_6(%arg0: i32) -> (i32, i32) {
    %c0_i32 = arith.constant 0 : i32
    %c0_i32_0 = arith.constant 0 : i32
    %c0_i32_1 = arith.constant 0 : i32
    return %c0_i32, %c0_i32_0 : i32, i32
  }
  func.func @transform_7(%arg0: i32) -> (i32, i32) {
    %c0_i32 = arith.constant 0 : i32
    %c0_i32_0 = arith.constant 0 : i32
    %c0_i32_1 = arith.constant 0 : i32
    return %c0_i32, %c0_i32_0 : i32, i32
  }
  func.func @transform_8(%arg0: i32) -> (i32, i32) {
    %c0_i32 = arith.constant 0 : i32
    %c0_i32_0 = arith.constant 0 : i32
    %c0_i32_1 = arith.constant 0 : i32
    return %c0_i32, %c0_i32_0 : i32, i32
  }
  func.func @transform_9(%arg0: i32) -> (i32, i32) {
    %c0_i32 = arith.constant 0 : i32
    %c0_i32_0 = arith.constant 0 : i32
    return %c0_i32, %arg0 : i32, i32
  }
}

</mosaic_0001>

<bundles_post_ra>
// kernel: tpu_custom_call.1
= control target key start
LH: loop header
LB: loop body
LE: loop exit
PB: predicated region body
PF: predicated region fallthrough
CT: control target
= control target key end

     0   :  { %v6251_v2 = vmov 2   ;;  %v6255_v3 = vmov 0   ;;  %v6253_v5 = vmov 1   ;;  %v137_v6 = vlaneseq  ;;  %s6241_s0 = inlined_call_operand.vmem [shape: f32[3,1024], index: 0, kind: input, shape index: {}]   ;;  %s6242_s1 = inlined_call_operand.vmem [shape: f32[128,3], index: 1, kind: input, shape index: {}]   ;;  %s6243_s2 = inlined_call_operand.vmem [shape: f32[128,1], index: 2, kind: input, shape index: {}]   ;;  %s6244_s3 = inlined_call_operand.vmem [shape: f32[128,128], index: 3, kind: input, shape index: {}]   ;;  %s6245_s4 = inlined_call_operand.vmem [shape: f32[128,1], index: 4, kind: input, shape index: {}]   ;;  %s6246_s5 = inlined_call_operand.vmem [shape: f32[64,128], index: 5, kind: input, shape index: {}]   ;;  %s6247_s6 = inlined_call_operand.vmem [shape: f32[64,1], index: 6, kind: input, shape index: {}]   ;;  %s6248_s7 = inlined_call_operand.vmem [shape: f32[3,64], index: 7, kind: input, shape index: {}]   ;;  %s6249_s8 = inlined_call_operand.vmem [shape: f32[3,1], index: 8, kind: input, shape index: {}]   ;;  %s6250_s9 = inlined_call_operand.hbm [shape: f32[3,1024], index: 9, kind: output, shape index: {}]  }
   0x1   :  { %v51_v0 = vld [vmem:[%s6242_s1 + $0x70] sm:$0xff]  ;;  %v50_v1 = vld [vmem:[%s6242_s1 + $0x68] sm:$0xff]  ;;  %3273 = vset.pattern.permute.xlu0 %v6251_v2  ;;  %3267 = vset.pattern.permute.xlu1 %v6255_v3  ;;  %v52_v4 = vld [vmem:[%s6242_s1 + $0x78] sm:$0xff] }
   0x2   :  { %125 = vperm.xlu1 %3267, %v51_v0   ;;  %782 = vperm.xlu0 %3273, %v50_v1   ;;  %v3400_v7 = vld [vmem:[%s6242_s1 + $0x58] sm:$0xff]  ;;  %v138_v8 = vshrl.u32 %v137_v6, 7  ;;  %v3407_v9 = vld [vmem:[%s6242_s1 + $0x48] sm:$0xff] }
   0x6   :  { %3268 = vset.pattern.permute.xlu1 %v6253_v5  ;;  %3274 = vset.pattern.permute.xlu0 %v6253_v5 }
   0x7   :  { %394 = vperm.xlu1 %3268, %v51_v0   ;;  %398 = vperm.xlu0 %3274, %v52_v4  }
   0xb   :  { %3269 = vset.pattern.permute.xlu1 %v6251_v2  ;;  %382 = vperm.xlu0 %3274, %v3400_v7  }
   0xc   :  { %790 = vperm.xlu1 %3269, %v52_v4  }
   0xd   :  { %14 = vsyncpa [#allocation3], 0  ;;  %v3410_v10 = vsub.s32 4, %v138_v8  ;;  %v3416_v11 = vld [vmem:[%s6242_s1 + $0x38] sm:$0xff]  ;;  %v3421_v12 = vld [vmem:[%s6241_s0 + $0x10] sm:$0x77] }
   0xe   :  { %v3424_v13 = vsub.s32 0, %v138_v8  ;;  %v3431_v15 = vld [vmem:[%s6242_s1 + $0x28] sm:$0xff]  ;;  %v49_v17 = vld [vmem:[%s6242_s1 + $0x60] sm:$0xff]  ;;  %v3444_v18 = vld [vmem:[%s6242_s1 + $0x18] sm:$0xff]  ;;  %v3453_v20 = vsub.s32 5, %v138_v8  ;;  %v3465_v23 = vsub.s32 1, %v138_v8 }
   0xf   :  { %374 = vperm.xlu0 %3274, %v3407_v9   ;;  %v160_v14 = vrot.slane %v3421_v12, %v3410_v10  ;;  %v3451_v19 = vld [vmem:[%s6242_s1 + $0x8] sm:$0xff]  ;;  %v1136_v21 = vld [vmem:[%s6243_s2 + $0x78] sm:$0xff]  ;;  %v3479_v28 = vsub.s32 6, %v138_v8  ;;  %v3487_v31 = vsub.s32 2, %v138_v8  ;;  %v1135_v35 = vld [vmem:[%s6243_s2 + $0x70] sm:$0xff]  ;;  %vm2936_vm0 = vcmask 523264  }
  0x10   :  { %3270 = vset.pattern.permute.xlu1 %v6253_v5  ;;  %v3463_v22 = vld [vmem:[%s6241_s0 + $0x18] sm:$0x77]  ;;  %v424_v24 = vrot.slane %v3421_v12, %v3453_v20  ;;  %v47_v37 = vld [vmem:[%s6242_s1 + $0x50] sm:$0xff]  ;;  %v1134_v38 = vld [vmem:[%s6243_s2 + $0x68] sm:$0xff] }
  0x11   :  { %390 = vperm.xlu1 %3270, %v50_v1   ;;  %v3435_v16 = vrot.slane %v160_v14, %v3424_v13  ;;  %v168_v25 = vrot.slane %v3463_v22, %v3410_v10  ;;  %v432_v29 = vrot.slane %v3463_v22, %v3453_v20  ;;  %v816_v32 = vrot.slane %v3421_v12, %v3479_v28  ;;  %v45_v39 = vld [vmem:[%s6242_s1 + $0x40] sm:$0xff]  ;;  %v1132_v40 = vld [vmem:[%s6243_s2 + $0x58] sm:$0xff]  ;;  %v43_v41 = vld [vmem:[%s6242_s1 + $0x30] sm:$0xff] }
  0x12   :  { %v3472_v26 = vrot.slane %v424_v24, %v3465_v23  ;;  %v824_v34 = vrot.slane %v3463_v22, %v3479_v28  ;;  %v1130_v42 = vld [vmem:[%s6243_s2 + $0x48] sm:$0xff]  ;;  %v1133_v43 = vld [vmem:[%s6243_s2 + $0x60] sm:$0xff]  ;;  %v1128_v45 = vld [vmem:[%s6243_s2 + $0x38] sm:$0xff]  ;;  %v812_v60 = vrot.slane %v3421_v12, %v3487_v31  ;;  %v820_v61 = vrot.slane %v3463_v22, %v3487_v31 }
  0x13   :  { %366 = vperm.xlu0 %3274, %v3416_v11   ;;  %6441 = vst [vmem:[#allocation5_spill] sm:$0xff] %v3435_v16  ;;  %v3475_v27 = vrot.slane %v168_v25, %v3424_v13  ;;  %v3484_v30 = vrot.slane %v432_v29, %v3465_v23  ;;  %v3492_v33 = vrot.slane %v816_v32, %v3487_v31  ;;  %v3533_v44 = vld [vmem:[%s6242_s1 + $0x20] sm:$0xff]  ;;  %v3544_v46 = vld [vmem:[%s6242_s1 + $0x10] sm:$0xff]  ;;  %v1126_v47 = vld [vmem:[%s6243_s2 + $0x28] sm:$0xff] }
  0x14   :  { %6442 = vst [vmem:[#allocation6_spill] sm:$0xff] %v3472_v26  ;;  %v3500_v36 = vrot.slane %v824_v34, %v3487_v31  ;;  %v3556_v48 = vld [vmem:[%s6242_s1] sm:$0xff]  ;;  %v1124_v49 = vld [vmem:[%s6243_s2 + $0x18] sm:$0xff]  ;;  %v1131_v50 = vld [vmem:[%s6243_s2 + $0x50] sm:$0xff]  ;;  %v428_v6 = vrot.slane %v3463_v22, %v3465_v23  ;;  %v156_v25 = vrot.slane %v3421_v12, %v3424_v13  ;;  %v164_v34 = vrot.slane %v3463_v22, %v3424_v13 }
  0x15   :  { %3271 = vset.pattern.permute.xlu1 %v6251_v2  ;;  %6443 = vst [vmem:[#allocation7_spill] sm:$0xff] %v3475_v27  ;;  %6444 = vst [vmem:[#allocation8_spill] sm:$0xff] %v3484_v30  ;;  %v1123_v51 = vld [vmem:[%s6243_s2 + $0x10] sm:$0xff]  ;;  %v1121_v52 = vld [vmem:[%s6243_s2] sm:$0xff] }
  0x16   :  { %786 = vperm.xlu1 %3271, %v51_v0   ;;  %6445 = vst [vmem:[#allocation9_spill] sm:$0xff] %v3492_v33  ;;  %6446 = vst [vmem:[#allocation10_spill] sm:$0xff] %v3500_v36  ;;  %v1503_v53 = vld [vmem:[%s6245_s4 + $0x70] sm:$0xff]  ;;  %v1501_v54 = vld [vmem:[%s6245_s4 + $0x60] sm:$0xff]  ;;  %v3656_v32 = vrot.slane %v428_v6, %v3465_v23 }
  0x17   :  { %358 = vperm.xlu0 %3274, %v3431_v15   ;;  %v1499_v55 = vld [vmem:[%s6245_s4 + $0x50] sm:$0xff]  ;;  %v1497_v56 = vld [vmem:[%s6245_s4 + $0x40] sm:$0xff] }
  0x18   :  { %v1495_v57 = vld [vmem:[%s6245_s4 + $0x30] sm:$0xff]  ;;  %v1129_v58 = vld [vmem:[%s6243_s2 + $0x40] sm:$0xff]  ;;  %6454 = vst [vmem:[#allocation18_spill] sm:$0xff] %v3656_v32 }
  0x19   :  { %v1493_v59 = vld [vmem:[%s6245_s4 + $0x20] sm:$0xff]  ;;  %v1491_v0 = vld [vmem:[%s6245_s4 + $0x10] sm:$0xff] }
  0x1a   :  { %3272 = vset.pattern.permute.xlu1 %v6253_v5  ;;  %v1489_v8 = vld [vmem:[%s6245_s4] sm:$0xff] }
  0x1b   :  { %386 = vperm.xlu1 %3272, %v49_v17   ;;  %350 = vperm.xlu0 %3274, %v3444_v18  }
  0x1f   :  { %3275 = vset.pattern.permute.xlu1 %v6255_v3  ;;  %342 = vperm.xlu0 %3274, %v3451_v19  }
  0x20   :  { %1214 = vperm.xlu1 %3275, %v1136_v21  }
  0x23   :  { %3301 = vset.pattern.permute.xlu0 %v6255_v3 }
  0x24   :  { %110 = vperm.xlu1 %3275, %v3400_v7   ;;  %130 = vperm.xlu0 %3301, %v52_v4   ;;  %v3618_v4 = vrot.slane %v812_v60, %v3487_v31 }
  0x26   :  { %6447 = vst [vmem:[#allocation11_spill] sm:$0xff] %v3618_v4 }
  0x28   :  { %3276 = vset.pattern.permute.xlu1 %v6251_v2  ;;  %120 = vperm.xlu0 %3301, %v50_v1   ;;  %v420_v1 = vrot.slane %v3421_v12, %v3465_v23 }
  0x29   :  { %778 = vperm.xlu1 %3276, %v49_v17  }
  0x2a   :  { %v3653_v29 = vrot.slane %v420_v1, %v3465_v23 }
  0x2c   :  { %115 = vperm.xlu0 %3301, %v49_v17   ;;  %6453 = vst [vmem:[#allocation17_spill] sm:$0xff] %v3653_v29 }
  0x2d   :  { %3277 = vset.pattern.permute.xlu1 %v6255_v3 }
  0x2e   :  { %1209 = vperm.xlu1 %3277, %v1135_v35   ;;  %v2371_v35 = vld [vmem:[%s6247_s6 + $0x30] sm:$0xff] }
  0x30   :  { %105 = vperm.xlu0 %3301, %v47_v37  }
  0x32   :  { %3278 = vset.pattern.permute.xlu1 %v6253_v5 }
  0x33   :  { %378 = vperm.xlu1 %3278, %v47_v37  }
  0x34   :  { %1204 = vperm.xlu0 %3301, %v1134_v38  }
  0x37   :  { %3279 = vset.pattern.permute.xlu1 %v6251_v2 }
  0x38   :  { %774 = vperm.xlu1 %3279, %v3400_v7   ;;  %95 = vperm.xlu0 %3301, %v45_v39   ;;  %v3623_v7 = vrot.slane %v820_v61, %v3487_v31 }
  0x3a   :  { %6448 = vst [vmem:[#allocation12_spill] sm:$0xff] %v3623_v7 }
  0x3c   :  { %3280 = vset.pattern.permute.xlu1 %v6255_v3  ;;  %1194 = vperm.xlu0 %3301, %v1132_v40   ;;  %v3687_v40 = vrot.slane %v156_v25, %v3424_v13 }
  0x3d   :  { %100 = vperm.xlu1 %3280, %v3407_v9  }
  0x3e   :  { %6459 = vst [vmem:[#allocation23_spill] sm:$0xff] %v3687_v40 }
  0x40   :  { %85 = vperm.xlu0 %3301, %v43_v41  }
  0x41   :  { %3281 = vset.pattern.permute.xlu1 %v6251_v2 }
  0x42   :  { %770 = vperm.xlu1 %3281, %v47_v37  }
  0x44   :  { %1184 = vperm.xlu0 %3301, %v1130_v42   ;;  %v3696_v42 = vld [vmem:[%s6241_s0 + $0x8] sm:$0x77] }
  0x46   :  { %3282 = vset.pattern.permute.xlu1 %v6255_v3 }
  0x47   :  { %1199 = vperm.xlu1 %3282, %v1133_v43   ;;  %v2369_v43 = vld [vmem:[%s6247_s6 + $0x20] sm:$0xff] }
  0x48   :  { %75 = vperm.xlu0 %3301, %v3533_v44  }
  0x4b   :  { %3283 = vset.pattern.permute.xlu1 %v6253_v5 }
  0x4c   :  { %370 = vperm.xlu1 %3283, %v45_v39   ;;  %1174 = vperm.xlu0 %3301, %v1128_v45  }
  0x50   :  { %3284 = vset.pattern.permute.xlu1 %v6251_v2  ;;  %65 = vperm.xlu0 %3301, %v3544_v46  }
  0x51   :  { %766 = vperm.xlu1 %3284, %v3407_v9  }
  0x54   :  { %1164 = vperm.xlu0 %3301, %v1126_v47   ;;  %v3704_v47 = vrot.slane %v164_v34, %v3424_v13 }
  0x55   :  { %3285 = vset.pattern.permute.xlu1 %v6255_v3 }
  0x56   :  { %90 = vperm.xlu1 %3285, %v3416_v11   ;;  %6460 = vst [vmem:[#allocation24_spill] sm:$0xff] %v3704_v47 }
  0x58   :  { %55 = vperm.xlu0 %3301, %v3556_v48  }
  0x5a   :  { %3286 = vset.pattern.permute.xlu1 %v6251_v2 }
  0x5b   :  { %762 = vperm.xlu1 %3286, %v45_v39   ;;  %v3684_v39 = vld [vmem:[%s6241_s0] sm:$0x77] }
  0x5c   :  { %1154 = vperm.xlu0 %3301, %v1124_v49   ;;  %v144_v45 = vrot.slane %v3684_v39, %v3410_v10  ;;  %v140_v6 = vrot.slane %v3684_v39, %v3424_v13 }
  0x5f   :  { %3287 = vset.pattern.permute.xlu1 %v6255_v3 }
  0x60   :  { %1189 = vperm.xlu1 %3287, %v1131_v50   ;;  %1149 = vperm.xlu0 %3301, %v1123_v51  }
  0x64   :  { %3288 = vset.pattern.permute.xlu1 %v6253_v5  ;;  %1139 = vperm.xlu0 %3301, %v1121_v52  }
  0x65   :  { %362 = vperm.xlu1 %3288, %v43_v41  }
  0x68   :  { %1577 = vperm.xlu0 %3301, %v1503_v53  }
  0x69   :  { %3289 = vset.pattern.permute.xlu1 %v6251_v2 }
  0x6a   :  { %758 = vperm.xlu1 %3289, %v3416_v11  }
  0x6c   :  { %1567 = vperm.xlu0 %3301, %v1501_v54  }
  0x6e   :  { %3290 = vset.pattern.permute.xlu1 %v6255_v3 }
  0x6f   :  { %80 = vperm.xlu1 %3290, %v3431_v15  }
  0x70   :  { %1557 = vperm.xlu0 %3301, %v1499_v55  }
  0x73   :  { %3291 = vset.pattern.permute.xlu1 %v6251_v2 }
  0x74   :  { %754 = vperm.xlu1 %3291, %v43_v41   ;;  %1547 = vperm.xlu0 %3301, %v1497_v56   ;;  %v408_v56 = vrot.slane %v3684_v39, %v3453_v20 }
  0x78   :  { %3292 = vset.pattern.permute.xlu1 %v6255_v3  ;;  %1537 = vperm.xlu0 %3301, %v1495_v57   ;;  %v800_v57 = vrot.slane %v3684_v39, %v3479_v28 }
  0x79   :  { %1179 = vperm.xlu1 %3292, %v1129_v58   ;;  %v152_v58 = vrot.slane %v3696_v42, %v3410_v10  ;;  %v2367_v10 = vld [vmem:[%s6247_s6 + $0x10] sm:$0xff] }
  0x7c   :  { %1527 = vperm.xlu0 %3301, %v1493_v59   ;;  %v416_v59 = vrot.slane %v3696_v42, %v3453_v20  ;;  %v808_v20 = vrot.slane %v3696_v42, %v3479_v28 }
  0x7d   :  { %v3606_v62 = vpop.permute.xlu1 %125  ;;  %3293 = vset.pattern.permute.xlu1 %v6253_v5  ;;  %v3609_v63 = vpop.permute.xlu0 %782 }
  0x7e   :  { %354 = vperm.xlu1 %3293, %v3533_v44   ;;  %v3630_v9 = vmul.f32 %v3492_v33, %v3609_v63  ;;  %v3634_v11 = vmul.f32 %v3500_v36, %v3609_v63  ;;  %v3638_v14 = vmul.f32 %v3618_v4, %v3609_v63  ;;  %v3642_v17 = vmul.f32 %v3623_v7, %v3609_v63 }
  0x7f   :  { %v326_v49 = vmul.f32 %v3435_v16, %v3606_v62  ;;  %v328_v50 = vmul.f32 %v3475_v27, %v3606_v62  ;;  %v325_v54 = vmul.f32 %v3687_v40, %v3606_v62  ;;  %v327_v25 = vmul.f32 %v3704_v47, %v3606_v62 }
  0x80   :  { %1517 = vperm.xlu0 %3301, %v1491_v0   ;;  %6449 = vst [vmem:[#allocation13_spill] sm:$0xff] %v3630_v9  ;;  %6450 = vst [vmem:[#allocation14_spill] sm:$0xff] %v3634_v11 }
  0x81   :  { %6451 = vst [vmem:[#allocation15_spill] sm:$0xff] %v3638_v14  ;;  %6452 = vst [vmem:[#allocation16_spill] sm:$0xff] %v3642_v17  ;;  %v6468_v17 = vmov 0   ;;  %v3819_v14 = vrot.slane %v800_v57, %v3487_v31 }
  0x82   :  { %v3644_v21 = vpop.permute.xlu1 %394  ;;  %3294 = vset.pattern.permute.xlu1 %v6251_v2  ;;  %v3647_v24 = vpop.permute.xlu0 %398 }
  0x83   :  { %750 = vperm.xlu1 %3294, %v3431_v15   ;;  %v3665_v37 = vmul.f32 %v3472_v26, %v3647_v24  ;;  %v3669_v12 = vmul.f32 %v3484_v30, %v3647_v24  ;;  %v3673_v15 = vmul.f32 %v3653_v29, %v3647_v24  ;;  %v3677_v38 = vmul.f32 %v3656_v32, %v3647_v24 }
  0x84   :  { %1507 = vperm.xlu0 %3301, %v1489_v8   ;;  %v590_v52 = vmul.f32 %v3472_v26, %v3644_v21  ;;  %v592_v53 = vmul.f32 %v3484_v30, %v3644_v21  ;;  %v589_v55 = vmul.f32 %v3653_v29, %v3644_v21  ;;  %v404_v8 = vrot.slane %v3684_v39, %v3465_v23 }
  0x85   :  { %6455 = vst [vmem:[#allocation19_spill] sm:$0xff] %v3665_v37  ;;  %6456 = vst [vmem:[#allocation20_spill] sm:$0xff] %v3669_v12  ;;  %v3880_v9 = vmul.f32 %v3819_v14, %v3609_v63 }
  0x86   :  { %6457 = vst [vmem:[#allocation21_spill] sm:$0xff] %v3673_v15  ;;  %6458 = vst [vmem:[#allocation22_spill] sm:$0xff] %v3677_v38  ;;  %v3679_v22 = vpop.permute.xlu0 %382  ;;  %v3731_v61 = vadd.f32 %v590_v52, %v326_v49  ;;  %v3733_v0 = vadd.f32 %v592_v53, %v328_v50  ;;  %v3735_v1 = vadd.f32 %v589_v55, %v325_v54  ;;  %v1127_v49 = vld [vmem:[%s6243_s2 + $0x30] sm:$0xff] }
  0x87   :  { %v3689_v41 = vpop.permute.xlu1 %790  ;;  %3295 = vset.pattern.permute.xlu1 %v6255_v3  ;;  %v796_v50 = vrot.slane %v3684_v39, %v3487_v31  ;;  %v148_v52 = vrot.slane %v3696_v42, %v3424_v13  ;;  %v412_v53 = vrot.slane %v3696_v42, %v3465_v23  ;;  %v804_v54 = vrot.slane %v3696_v42, %v3487_v31  ;;  %v2365_v42 = vld [vmem:[%s6247_s6] sm:$0xff] }
  0x88   :  { %70 = vperm.xlu1 %3295, %v3444_v18   ;;  %2405 = vperm.xlu0 %3301, %v2371_v35   ;;  %v3782_v5 = vmul.f32 %v3472_v26, %v3679_v22  ;;  %v3786_v39 = vmul.f32 %v3484_v30, %v3679_v22 }
  0x89   :  { %v3840_v57 = vrot.slane %v796_v50, %v3487_v31 }
  0x8a   :  { %v3710_v51 = vpop.permute.xlu0 %374  ;;  %6466 = vst [vmem:[#allocation30_spill] sm:$0xff] %v3782_v5  ;;  %6467 = vst [vmem:[#allocation31_spill] sm:$0xff] %v3786_v39 }
  0x8b   :  { %v3808_v39 = vmul.f32 %v3484_v30, %v3710_v51  ;;  %6475 = vst [vmem:[#allocation38_spill] sm:$0xff] %v3840_v57 }
  0x8c   :  { %v3728_v60 = vpop.permute.xlu1 %390  ;;  %3296 = vset.pattern.permute.xlu1 %v6251_v2  ;;  %2395 = vperm.xlu0 %3301, %v2369_v43  }
  0x8d   :  { %746 = vperm.xlu1 %3296, %v3533_v44   ;;  %v591_v44 = vmul.f32 %v3656_v32, %v3644_v21  ;;  %v3755_v35 = vmul.f32 %v3472_v26, %v3728_v60  ;;  %v3759_v28 = vmul.f32 %v3484_v30, %v3728_v60  ;;  %v3763_v43 = vmul.f32 %v3653_v29, %v3728_v60 }
  0x8e   :  { %v3749_v34 = vpop.permute.xlu0 %366  ;;  %v3778_v2 = vmul.f32 %v3656_v32, %v3728_v60  ;;  %6472 = vst [vmem:[#allocation35_spill] sm:$0xff] %v3808_v39  ;;  %v3828_v39 = vrot.slane %v808_v20, %v3487_v31 }
  0x8f   :  { %6461 = vst [vmem:[#allocation25_spill] sm:$0xff] %v3749_v34  ;;  %6462 = vst [vmem:[#allocation26_spill] sm:$0xff] %v3755_v35  ;;  %v719_v55 = vadd.f32 %v591_v44, %v327_v25  ;;  %v3800_v25 = vmul.f32 %v3656_v32, %v3679_v22  ;;  %v3804_v44 = vmul.f32 %v3472_v26, %v3710_v51 }
  0x90   :  { %6463 = vst [vmem:[#allocation27_spill] sm:$0xff] %v3759_v28  ;;  %6464 = vst [vmem:[#allocation28_spill] sm:$0xff] %v3763_v43  ;;  %2385 = vperm.xlu0 %3301, %v2367_v10   ;;  %v3796_v10 = vmul.f32 %v3653_v29, %v3679_v22  ;;  %v3884_v28 = vmul.f32 %v3828_v39, %v3609_v63 }
  0x91   :  { %6465 = vst [vmem:[#allocation29_spill] sm:$0xff] %v3778_v2  ;;  %v3788_v3 = vpop.permute.xlu1 %786  ;;  %3297 = vset.pattern.permute.xlu1 %v6468_v17  ;;  %6470 = vst [vmem:[#allocation33_spill] sm:$0xff] %v3800_v25  ;;  %v3813_v2 = vrot.slane %v144_v45, %v3424_v13  ;;  %v3822_v25 = vrot.slane %v152_v58, %v3424_v13  ;;  %v3834_v45 = vrot.slane %v148_v52, %v3424_v13  ;;  %v6477_v52 = vmov 1  }
  0x92   :  { %6469 = vst [vmem:[#allocation32_spill] sm:$0xff] %v3796_v10  ;;  %6471 = vst [vmem:[#allocation34_spill] sm:$0xff] %v3804_v44  ;;  %1169 = vperm.xlu1 %3297, %v1127_v49   ;;  %v3810_v5 = vpop.permute.xlu0 %358  ;;  %v3816_v10 = vrot.slane %v408_v56, %v3465_v23  ;;  %v3825_v44 = vrot.slane %v416_v59, %v3465_v23  ;;  %v3831_v49 = vrot.slane %v140_v6, %v3424_v13 }
  0x93   :  { %6473 = vst [vmem:[#allocation36_spill] sm:$0xff] %v3810_v5  ;;  %v3837_v56 = vrot.slane %v404_v8, %v3465_v23  ;;  %v3843_v58 = vrot.slane %v412_v53, %v3465_v23  ;;  %v3846_v59 = vrot.slane %v804_v54, %v3487_v31  ;;  %v982_v20 = vmul.f32 %v3492_v33, %v3788_v3 }
  0x94   :  { %6474 = vst [vmem:[#allocation37_spill] sm:$0xff] %v3816_v10  ;;  %2375 = vperm.xlu0 %3301, %v2365_v42   ;;  %v984_v13 = vmul.f32 %v3500_v36, %v3788_v3  ;;  %v981_v6 = vmul.f32 %v3618_v4, %v3788_v3  ;;  %v983_v8 = vmul.f32 %v3623_v7, %v3788_v3 }
  0x95   :  { %6476 = vst [vmem:[#allocation39_spill] sm:$0xff] %v3846_v59  ;;  %v322_v31 = vmul.f32 %v3813_v2, %v3606_v62  ;;  %v324_v53 = vmul.f32 %v3822_v25, %v3606_v62  ;;  %v3867_v54 = vmul.f32 %v3653_v29, %v3710_v51  ;;  %v3871_v42 = vmul.f32 %v3656_v32, %v3710_v51 }
  0x96   :  { %v3856_v50 = vpop.permute.xlu1 %386  ;;  %3298 = vset.pattern.permute.xlu1 %v6477_v52  ;;  %v3859_v23 = vpop.permute.xlu0 %350  ;;  %v321_v43 = vmul.f32 %v3831_v49, %v3606_v62  ;;  %v323_v11 = vmul.f32 %v3834_v45, %v3606_v62  ;;  %v585_v35 = vmul.f32 %v3837_v56, %v3644_v21  ;;  %v587_v62 = vmul.f32 %v3843_v58, %v3644_v21 }
  0x97   :  { %6478 = vst [vmem:[#allocation40_spill] sm:$0xff] %v3859_v23  ;;  %6479 = vst [vmem:[#allocation41_spill] sm:$0xff] %v3867_v54  ;;  %346 = vperm.xlu1 %3298, %v3544_v46   ;;  %v586_v54 = vmul.f32 %v3816_v10, %v3644_v21  ;;  %v3895_v38 = vadd.f32 %v982_v20, %v3731_v61  ;;  %v3898_v15 = vadd.f32 %v984_v13, %v3733_v0 }
  0x98   :  { %6480 = vst [vmem:[#allocation42_spill] sm:$0xff] %v3871_v42  ;;  %v588_v42 = vmul.f32 %v3825_v44, %v3644_v21  ;;  %v3901_v12 = vadd.f32 %v981_v6, %v3735_v1  ;;  %v3903_v37 = vadd.f32 %v983_v8, %v719_v55  ;;  %v3909_v40 = vmul.f32 %v3472_v26, %v3856_v50 }
  0x99   :  { %6481 = vst [vmem:[#allocation43_spill] sm:$0xff] %v3895_v38  ;;  %6482 = vst [vmem:[#allocation44_spill] sm:$0xff] %v3898_v15  ;;  %v3913_v21 = vmul.f32 %v3484_v30, %v3856_v50  ;;  %v3917_v61 = vmul.f32 %v3653_v29, %v3856_v50  ;;  %v3921_v0 = vmul.f32 %v3656_v32, %v3856_v50  ;;  %v6491_v55 = vmov 2  }
  0x9a   :  { %6483 = vst [vmem:[#allocation45_spill] sm:$0xff] %v3901_v12  ;;  %6484 = vst [vmem:[#allocation46_spill] sm:$0xff] %v3903_v37  ;;  %v3905_v47 = vpop.permute.xlu0 %342  ;;  %v594_v20 = vmul.f32 %v3816_v10, %v3647_v24  ;;  %v596_v13 = vmul.f32 %v3825_v44, %v3647_v24  ;;  %v3932_v6 = vmul.f32 %v3840_v57, %v3609_v63 }
  0x9b   :  { %6485 = vst [vmem:[#allocation47_spill] sm:$0xff] %v3905_v47  ;;  %6486 = vst [vmem:[#allocation48_spill] sm:$0xff] %v3909_v40  ;;  %v3923_v1 = vpop.permute.xlu1 %1214  ;;  %3299 = vset.pattern.permute.xlu1 %v6491_v55  ;;  %v3936_v8 = vmul.f32 %v3846_v59, %v3609_v63  ;;  %v593_v32 = vmul.f32 %v3837_v56, %v3647_v24  ;;  %v595_v29 = vmul.f32 %v3843_v58, %v3647_v24 }
  0x9c   :  { %6487 = vst [vmem:[#allocation49_spill] sm:$0xff] %v3913_v21  ;;  %6488 = vst [vmem:[#allocation50_spill] sm:$0xff] %v3917_v61  ;;  %742 = vperm.xlu1 %3299, %v3444_v18   ;;  %v714_v30 = vadd.f32 %v586_v54, %v322_v31  ;;  %v716_v26 = vadd.f32 %v588_v42, %v324_v53  ;;  %v715_v61 = vadd.f32 %v587_v62, %v323_v11 }
  0x9d   :  { %6489 = vst [vmem:[#allocation51_spill] sm:$0xff] %v3921_v0  ;;  %6490 = vst [vmem:[#allocation52_spill] sm:$0xff] %v3923_v1  ;;  %v713_v0 = vadd.f32 %v585_v35, %v321_v43  ;;  %v3945_v21 = vmul.f32 %v3816_v10, %v3679_v22  ;;  %v3949_v63 = vmul.f32 %v3825_v44, %v3679_v22 }
  0x9e   :  { %v986_v18 = vmul.f32 %v3819_v14, %v3689_v41  ;;  %v988_v40 = vmul.f32 %v3828_v39, %v3689_v41  ;;  %v3957_v24 = vmul.f32 %v3837_v56, %v3679_v22  ;;  %v3961_v11 = vmul.f32 %v3843_v58, %v3679_v22 }
  0x9f   :  { %6492 = vst [vmem:[#allocation53_spill] sm:$0xff] %v3945_v21  ;;  %6493 = vst [vmem:[#allocation54_spill] sm:$0xff] %v3949_v63  ;;  %v3963_v35 = vpop.permute.xlu1 %110  ;;  %v3965_v43 = vpop.permute.xlu0 %130  ;;  %v985_v31 = vmul.f32 %v3840_v57, %v3689_v41  ;;  %v987_v53 = vmul.f32 %v3846_v59, %v3689_v41  ;;  %v3973_v54 = vmul.f32 %v3492_v33, %v3689_v41 }
  0xa0   :  { %6494 = vst [vmem:[#allocation55_spill] sm:$0xff] %v3957_v24  ;;  %6495 = vst [vmem:[#allocation56_spill] sm:$0xff] %v3961_v11  ;;  %v3977_v42 = vmul.f32 %v3500_v36, %v3689_v41  ;;  %3300 = vset.pattern.permute.xlu1 %v6468_v17  ;;  %v330_v22 = vmul.f32 %v3813_v2, %v3965_v43  ;;  %v332_v62 = vmul.f32 %v3822_v25, %v3965_v43 }
  0xa1   :  { %6496 = vst [vmem:[#allocation57_spill] sm:$0xff] %v3963_v35  ;;  %6497 = vst [vmem:[#allocation58_spill] sm:$0xff] %v3965_v43  ;;  %v329_v37 = vmul.f32 %v3831_v49, %v3965_v43  ;;  %v331_v12 = vmul.f32 %v3834_v45, %v3965_v43  ;;  %60 = vperm.xlu1 %3300, %v3451_v19   ;;  %v578_v36 = vmul.f32 %v3816_v10, %v3728_v60 }
  0xa2   :  { %6498 = vst [vmem:[#allocation59_spill] sm:$0xff] %v3973_v54  ;;  %6499 = vst [vmem:[#allocation60_spill] sm:$0xff] %v3977_v42  ;;  %v580_v33 = vmul.f32 %v3825_v44, %v3728_v60  ;;  %v577_v42 = vmul.f32 %v3837_v56, %v3728_v60  ;;  %v3997_v54 = vmul.f32 %v3618_v4, %v3689_v41 }
  0xa3   :  { %v722_v15 = vadd.f32 %v594_v20, %v330_v22  ;;  %v724_v38 = vadd.f32 %v596_v13, %v332_v62  ;;  %v721_v27 = vadd.f32 %v593_v32, %v329_v37  ;;  %v723_v16 = vadd.f32 %v595_v29, %v331_v12  ;;  %v3999_v43 = vpop.permute.xlu0 %120 }
  0xa4   :  { %6500 = vst [vmem:[#allocation61_spill] sm:$0xff] %v3997_v54  ;;  %v978_v11 = vmul.f32 %v3819_v14, %v3788_v3  ;;  %v980_v24 = vmul.f32 %v3828_v39, %v3788_v3  ;;  %v977_v63 = vmul.f32 %v3840_v57, %v3788_v3  ;;  %v579_v21 = vmul.f32 %v3843_v58, %v3728_v60  ;;  %v4009_v4 = vpop.permute.xlu1 %778 }
  0xa5   :  { %6501 = vst [vmem:[#allocation62_spill] sm:$0xff] %v4009_v4  ;;  %v1114_v20 = vadd.f32 %v986_v18, %v722_v15  ;;  %v1116_v13 = vadd.f32 %v988_v40, %v724_v38  ;;  %v1113_v32 = vadd.f32 %v985_v31, %v721_v27  ;;  %v1115_v29 = vadd.f32 %v987_v53, %v723_v16 }
  0xa6   :  { %3302 = vset.pattern.permute.xlu1 %v6491_v55  ;;  %v979_v37 = vmul.f32 %v3846_v59, %v3788_v3  ;;  %v314_v12 = vmul.f32 %v3813_v2, %v3999_v43  ;;  %v316_v22 = vmul.f32 %v3822_v25, %v3999_v43  ;;  %v313_v60 = vmul.f32 %v3831_v49, %v3999_v43 }
  0xa7   :  { %738 = vperm.xlu1 %3302, %v3544_v46   ;;  %v1338_v15 = vadd.f32 %v3923_v1, %v1114_v20  ;;  %v1340_v16 = vadd.f32 %v3923_v1, %v1116_v13  ;;  %v1337_v27 = vadd.f32 %v3923_v1, %v1113_v32  ;;  %v1339_v38 = vadd.f32 %v3923_v1, %v1115_v29  ;;  %v4025_v3 = vpop.permute.xlu0 %115  ;;  %v1125_v46 = vld [vmem:[%s6243_s2 + $0x20] sm:$0xff] }
  0xa8   :  { %6502 = vst [vmem:[#allocation63_spill] sm:$0xff] %v4025_v3  ;;  %v1106_v40 = vadd.f32 %v978_v11, %v714_v30  ;;  %v1108_v18 = vadd.f32 %v980_v24, %v716_v26  ;;  %v1105_v31 = vadd.f32 %v977_v63, %v713_v0  ;;  %v315_v53 = vmul.f32 %v3834_v45, %v3999_v43 }
  0xa9   :  { %v1466_v62 = vmax.f32 %v1338_v15, 0.0  ;;  %v1468_v54 = vmax.f32 %v1340_v16, 0.0  ;;  %v1465_v20 = vmax.f32 %v1337_v27, 0.0  ;;  %v1467_v13 = vmax.f32 %v1339_v38, 0.0  ;;  %v4032_v59 = vpop.permute.xlu1 %1209 }
  0xaa   :  { %v1107_v32 = vadd.f32 %v979_v37, %v715_v61  ;;  %v706_v29 = vadd.f32 %v578_v36, %v314_v12  ;;  %v708_v1 = vadd.f32 %v580_v33, %v316_v22  ;;  %v705_v57 = vadd.f32 %v577_v42, %v313_v60 }
  0xab   :  { %3303 = vset.pattern.permute.xlu1 %v6468_v17  ;;  %1585 = vmatprep.subr.mxu0 %v1466_v62  ;;  %v1330_v26 = vadd.f32 %v4032_v59, %v1106_v40  ;;  %v1332_v30 = vadd.f32 %v4032_v59, %v1108_v18  ;;  %v1329_v0 = vadd.f32 %v4032_v59, %v1105_v31  ;;  %v4038_v63 = vpop.permute.xlu0 %105 }
  0xac   :  { %1746 = vmatprep.subr.mxu1 %v1468_v54  ;;  %6503 = vst [vmem:[#allocation64_spill] sm:$0xff] %v4038_v63  ;;  %1159 = vperm.xlu1 %3303, %v1125_v46   ;;  %v1331_v24 = vadd.f32 %v4032_v59, %v1107_v32  ;;  %v707_v11 = vadd.f32 %v579_v21, %v315_v53 }
  0xad   :  { %v4043_v33 = vmul.f32 %v3623_v7, %v3689_v41  ;;  %1586 = vmatpush1.msra.mxu0 %v1465_v20  ;;  %1747 = vmatpush1.msra.mxu1 %v1467_v13  ;;  %v1458_v36 = vmax.f32 %v1330_v26, 0.0  ;;  %v1460_v61 = vmax.f32 %v1332_v30, 0.0  ;;  %v1457_v42 = vmax.f32 %v1329_v0, 0.0 }
  0xae   :  { %v4047_v37 = vmul.f32 %v3816_v10, %v3710_v51  ;;  %v1459_v54 = vmax.f32 %v1331_v24, 0.0  ;;  %v4051_v12 = vmul.f32 %v3825_v44, %v3710_v51  ;;  %v4055_v21 = vmul.f32 %v3837_v56, %v3710_v51  ;;  %v4061_v22 = vpop.permute.xlu1 %378 }
  0xaf   :  { %v4059_v41 = vmul.f32 %v3843_v58, %v3710_v51  ;;  %6504 = vst [vmem:[#allocation65_spill] sm:$0xff] %v4061_v22  ;;  %1587 = vmatprep.subr.mxu0 %v1458_v36  ;;  %1748 = vmatprep.subr.mxu1 %v1460_v61  ;;  %v1098_v60 = vadd.f32 %v3880_v9, %v706_v29  ;;  %v4066_v27 = vpop.permute.xlu0 %1204 }
  0xb0   :  { %v1100_v15 = vadd.f32 %v3884_v28, %v708_v1  ;;  %v1097_v16 = vadd.f32 %v3932_v6, %v705_v57  ;;  %6505 = vst [vmem:[#allocation66_spill] sm:$0xff] %v4066_v27  ;;  %3304 = vset.pattern.permute.xlu1 %v6477_v52  ;;  %1588 = vmatpush1.msra.mxu0 %v1457_v42 }
  0xb1   :  { %v1099_v38 = vadd.f32 %v3936_v8, %v707_v11  ;;  %v4072_v51 = vmul.f32 %v3816_v10, %v3749_v34  ;;  %v4076_v40 = vmul.f32 %v3825_v44, %v3749_v34  ;;  %1749 = vmatpush1.msra.mxu1 %v1459_v54  ;;  %338 = vperm.xlu1 %3304, %v3556_v48  }
  0xb2   :  { %v1322_v9 = vadd.f32 %v4066_v27, %v1098_v60  ;;  %v1324_v28 = vadd.f32 %v4066_v27, %v1100_v15  ;;  %v1321_v57 = vadd.f32 %v4066_v27, %v1097_v16  ;;  %v4085_v1 = vmul.f32 %v3837_v56, %v3749_v34 }
  0xb3   :  { %6506 = vst [vmem:[#allocation67_spill] sm:$0xff] %v4072_v51  ;;  %6507 = vst [vmem:[#allocation68_spill] sm:$0xff] %v4076_v40  ;;  %v1323_v52 = vadd.f32 %v4066_v27, %v1099_v38  ;;  %v4089_v6 = vmul.f32 %v3843_v58, %v3749_v34  ;;  %v4093_v8 = vmul.f32 %v3816_v10, %v3810_v5  ;;  %v4099_v46 = vpop.permute.xlu1 %774  ;;  %v4131_v61 = vpop.permute.xlu0 %95  ;;  %v6542_v51 = vmov 0.0  }
  0xb4   :  { %6508 = vst [vmem:[#allocation69_spill] sm:$0xff] %v4085_v1  ;;  %v1450_v18 = vmax.f32 %v1322_v9, 0.0  ;;  %v1452_v31 = vmax.f32 %v1324_v28, 0.0  ;;  %v1449_v53 = vmax.f32 %v1321_v57, 0.0  ;;  %v4097_v62 = vmul.f32 %v3825_v44, %v3810_v5  ;;  %6512 = vst [vmem:[#allocation73_spill] sm:$0xff] %v4099_v46  ;;  %v1502_v1 = vld [vmem:[%s6245_s4 + $0x68] sm:$0xff]  ;;  %1810 = vmatprep.mubr.f32.mxu1 %v6542_v51 }
  0xb5   :  { %6509 = vst [vmem:[#allocation70_spill] sm:$0xff] %v4089_v6  ;;  %6510 = vst [vmem:[#allocation71_spill] sm:$0xff] %v4093_v8  ;;  %v1451_v20 = vmax.f32 %v1323_v52, 0.0  ;;  %v570_v13 = vmul.f32 %v3816_v10, %v3856_v50  ;;  %v4105_v32 = vmul.f32 %v3837_v56, %v3810_v5  ;;  %v4109_v29 = vmul.f32 %v3843_v58, %v3810_v5  ;;  %v6540_v8 = vld [vmem:[#allocation44_spill] sm:$0xff] }
  0xb6   :  { %6511 = vst [vmem:[#allocation72_spill] sm:$0xff] %v4097_v62  ;;  %3305 = vset.pattern.permute.xlu1 %v6491_v55  ;;  %1589 = vmatprep.subr.mxu0 %v1450_v18  ;;  %v572_v26 = vmul.f32 %v3825_v44, %v3856_v50  ;;  %v569_v30 = vmul.f32 %v3837_v56, %v3856_v50  ;;  %6515 = vst [vmem:[#allocation76_spill] sm:$0xff] %v4131_v61  ;;  %v6523_v18 = vld [vmem:[#allocation53_spill] sm:$0xff]  ;;  %v6293_v62 = vmov 0.0   ;;  %v6545_v51 = vld [vmem:[#allocation20_spill] sm:$0xff] }
  0xb7   :  { %6513 = vst [vmem:[#allocation74_spill] sm:$0xff] %v4105_v32  ;;  %6514 = vst [vmem:[#allocation75_spill] sm:$0xff] %v4109_v29  ;;  %v571_v0 = vmul.f32 %v3843_v58, %v3856_v50  ;;  %1750 = vmatprep.subr.mxu1 %v1452_v31  ;;  %734 = vperm.xlu1 %3305, %v3451_v19   ;;  %v306_v24 = vmul.f32 %v3813_v2, %v4025_v3 }
  0xb8   :  { %v298_v11 = vmul.f32 %v3813_v2, %v3963_v35  ;;  %v300_v55 = vmul.f32 %v3822_v25, %v3963_v35  ;;  %1590 = vmatpush1.msra.mxu0 %v1449_v53  ;;  %1751 = vmatpush1.msra.mxu1 %v1451_v20  ;;  %v308_v36 = vmul.f32 %v3822_v25, %v4025_v3  ;;  %v4149_v16 = vpop.permute.xlu1 %100 }
  0xb9   :  { %v305_v50 = vmul.f32 %v3831_v49, %v4025_v3  ;;  %v307_v19 = vmul.f32 %v3834_v45, %v4025_v3  ;;  %v4135_v42 = vmul.f32 %v3816_v10, %v3859_v23  ;;  %v4139_v54 = vmul.f32 %v3825_v44, %v3859_v23  ;;  %6520 = vst [vmem:[#allocation81_spill] sm:$0xff] %v4149_v16 }
  0xba   :  { %v4143_v60 = vmul.f32 %v3837_v56, %v3859_v23  ;;  %v4147_v15 = vmul.f32 %v3843_v58, %v3859_v23  ;;  %v954_v38 = vmul.f32 %v3819_v14, %v4099_v46  ;;  %v956_v9 = vmul.f32 %v3828_v39, %v4099_v46  ;;  %1649 = vmatprep.mubr.f32.mxu0 %v6293_v62 }
  0xbb   :  { %6516 = vst [vmem:[#allocation77_spill] sm:$0xff] %v4135_v42  ;;  %6517 = vst [vmem:[#allocation78_spill] sm:$0xff] %v4139_v54  ;;  %v4157_v28 = vmul.f32 %v3816_v10, %v3905_v47  ;;  %v4161_v57 = vmul.f32 %v3825_v44, %v3905_v47  ;;  %730 = vperm.xlu1 %3305, %v3556_v48   ;;  %v698_v52 = vadd.f32 %v570_v13, %v306_v24  ;;  %v6525_v24 = vld [vmem:[#allocation38_spill] sm:$0xff]  ;;  %v6530_v42 = vld [vmem:[#allocation56_spill] sm:$0xff] }
  0xbc   :  { %6518 = vst [vmem:[#allocation79_spill] sm:$0xff] %v4143_v60  ;;  %6519 = vst [vmem:[#allocation80_spill] sm:$0xff] %v4147_v15  ;;  %v690_v31 = vadd.f32 %v6523_v18, %v298_v11  ;;  %v297_v53 = vmul.f32 %v3831_v49, %v3963_v35  ;;  %v299_v20 = vmul.f32 %v3834_v45, %v3963_v35  ;;  %v6524_v15 = vld [vmem:[#allocation54_spill] sm:$0xff]  ;;  %v6529_v60 = vld [vmem:[#allocation55_spill] sm:$0xff] }
  0xbd   :  { %6521 = vst [vmem:[#allocation82_spill] sm:$0xff] %v4157_v28  ;;  %6522 = vst [vmem:[#allocation83_spill] sm:$0xff] %v4161_v57  ;;  %v700_v23 = vadd.f32 %v572_v26, %v308_v36  ;;  %v697_v5 = vadd.f32 %v569_v30, %v305_v50  ;;  %v699_v34 = vadd.f32 %v571_v0, %v307_v19  ;;  %v1122_v57 = vld [vmem:[%s6243_s2 + $0x8] sm:$0xff]  ;;  %v6526_v30 = vld [vmem:[#allocation39_spill] sm:$0xff]  ;;  %v4185_v19 = vpop.permute.xlu0 %1194 }
  0xbe   :  { %v692_v28 = vadd.f32 %v6524_v15, %v300_v55  ;;  %v962_v48 = vmul.f32 %v3819_v14, %v4009_v4  ;;  %v964_v13 = vmul.f32 %v3828_v39, %v4009_v4  ;;  %v961_v11 = vmul.f32 %v6525_v24, %v4009_v4  ;;  %6527 = vst [vmem:[#allocation53_spill] sm:$0xff] %v4185_v19  ;;  %v4187_v15 = vpop.permute.xlu1 %770 }
  0xbf   :  { %v953_v26 = vmul.f32 %v6525_v24, %v4099_v46  ;;  %v963_v0 = vmul.f32 %v6526_v30, %v4009_v4  ;;  %v1082_v55 = vadd.f32 %v954_v38, %v690_v31  ;;  %v955_v50 = vmul.f32 %v6526_v30, %v4099_v46  ;;  %6528 = vst [vmem:[#allocation54_spill] sm:$0xff] %v4187_v15 }
  0xc0   :  { %v1084_v36 = vadd.f32 %v956_v9, %v692_v28  ;;  %3306 = vset.pattern.permute.xlu1 %v6468_v17  ;;  %v1090_v18 = vadd.f32 %v962_v48, %v698_v52  ;;  %v689_v54 = vadd.f32 %v6529_v60, %v297_v53  ;;  %v691_v29 = vadd.f32 %v6530_v42, %v299_v20  ;;  %v1504_v17 = vld [vmem:[%s6245_s4 + $0x78] sm:$0xff]  ;;  %v6532_v20 = vld [vmem:[#allocation58_spill] sm:$0xff]  ;;  %v6533_v48 = vld [vmem:[#allocation5_spill] sm:$0xff] }
  0xc1   :  { %v4194_v32 = vmul.f32 %v3837_v56, %v3905_v47  ;;  %1144 = vperm.xlu1 %3306, %v1122_v57   ;;  %v1092_v38 = vadd.f32 %v964_v13, %v700_v23  ;;  %v1089_v9 = vadd.f32 %v961_v11, %v697_v5  ;;  %v1091_v28 = vadd.f32 %v963_v0, %v699_v34  ;;  %v6534_v13 = vld [vmem:[#allocation7_spill] sm:$0xff]  ;;  %v4244_v3 = vpop.permute.xlu0 %85 }
  0xc2   :  { %v290_v31 = vmul.f32 %v3813_v2, %v4038_v63  ;;  %v1081_v52 = vadd.f32 %v953_v26, %v689_v54  ;;  %v554_v60 = vmul.f32 %v3816_v10, %v4061_v22  ;;  %v292_v42 = vmul.f32 %v3822_v25, %v4038_v63  ;;  %v6535_v26 = vld [vmem:[#allocation23_spill] sm:$0xff]  ;;  %6543 = vst [vmem:[#allocation58_spill] sm:$0xff] %v4244_v3 }
  0xc3   :  { %6531 = vst [vmem:[#allocation38_spill] sm:$0xff] %v4194_v32  ;;  %v556_v57 = vmul.f32 %v3825_v44, %v4061_v22  ;;  %v1306_v5 = vadd.f32 %v4185_v19, %v1082_v55  ;;  %v1308_v34 = vadd.f32 %v4185_v19, %v1084_v36  ;;  %v1083_v23 = vadd.f32 %v955_v50, %v691_v29  ;;  %v4217_v32 = vpop.permute.xlu1 %1199  ;;  %v6537_v29 = vld [vmem:[#allocation24_spill] sm:$0xff]  ;;  %v6538_v36 = vld [vmem:[#allocation43_spill] sm:$0xff] }
  0xc4   :  { %v289_v53 = vmul.f32 %v3831_v49, %v4038_v63  ;;  %v334_v54 = vmul.f32 %v6533_v48, %v6532_v20  ;;  %v336_v11 = vmul.f32 %v6534_v13, %v6532_v20  ;;  %v333_v0 = vmul.f32 %v6535_v26, %v6532_v20  ;;  %6536 = vst [vmem:[#allocation39_spill] sm:$0xff] %v4217_v32 }
  0xc5   :  { %1582 = vperm.xlu1 %3306, %v1504_v17   ;;  %v335_v55 = vmul.f32 %v6537_v29, %v6532_v20  ;;  %v4224_v50 = vadd.f32 %v4032_v59, %v6538_v36  ;;  %v4228_v6 = vadd.f32 %v4032_v59, %v6540_v8  ;;  %v1314_v17 = vadd.f32 %v4217_v32, %v1090_v18 }
  0xc6   :  { %v1316_v40 = vadd.f32 %v4217_v32, %v1092_v38  ;;  %v1313_v62 = vadd.f32 %v4217_v32, %v1089_v9  ;;  %v1315_v20 = vadd.f32 %v4217_v32, %v1091_v28  ;;  %v1305_v36 = vadd.f32 %v4185_v19, %v1081_v52  ;;  %v6544_v9 = vld [vmem:[#allocation19_spill] sm:$0xff]  ;;  %v6546_v52 = vld [vmem:[#allocation21_spill] sm:$0xff] }
  0xc7   :  { %6539 = vst [vmem:[#allocation55_spill] sm:$0xff] %v4224_v50  ;;  %6541 = vst [vmem:[#allocation56_spill] sm:$0xff] %v4228_v6  ;;  %v1307_v46 = vadd.f32 %v4185_v19, %v1083_v23  ;;  %v553_v8 = vmul.f32 %v3837_v56, %v4061_v22  ;;  %v291_v35 = vmul.f32 %v3834_v45, %v4038_v63  ;;  %v1442_v7 = vmax.f32 %v1314_v17, 0.0  ;;  %v6547_v23 = vld [vmem:[#allocation22_spill] sm:$0xff]  ;;  %v4250_v29 = vpop.permute.xlu1 %370  ;;  %v6579_v50 = vld [vmem:[#allocation28_spill] sm:$0xff] }
  0xc8   :  { %v1444_v18 = vmax.f32 %v1316_v40, 0.0  ;;  %v1441_v4 = vmax.f32 %v1313_v62, 0.0  ;;  %v1443_v38 = vmax.f32 %v1315_v20, 0.0  ;;  %v726_v28 = vadd.f32 %v6544_v9, %v334_v54  ;;  %6548 = vst [vmem:[#allocation5_spill] sm:$0xff] %v4250_v29  ;;  %v1500_v40 = vld [vmem:[%s6245_s4 + $0x58] sm:$0xff]  ;;  %v6549_v62 = vld [vmem:[#allocation45_spill] sm:$0xff] }
  0xc9   :  { %1572 = vperm.xlu1 %3306, %v1502_v1   ;;  %v728_v32 = vadd.f32 %v6545_v51, %v336_v11  ;;  %v725_v27 = vadd.f32 %v6546_v52, %v333_v0  ;;  %v727_v19 = vadd.f32 %v6547_v23, %v335_v55  ;;  %1591 = vmatprep.subr.mxu0 %v1442_v7  ;;  %v1434_v63 = vmax.f32 %v1306_v5, 0.0  ;;  %v6551_v54 = vld [vmem:[#allocation46_spill] sm:$0xff]  ;;  %v6556_v52 = vld [vmem:[#allocation52_spill] sm:$0xff] }
  0xca   :  { %1752 = vmatprep.subr.mxu1 %v1444_v18  ;;  %v1436_v17 = vmax.f32 %v1308_v34, 0.0  ;;  %v4257_v1 = vadd.f32 %v4032_v59, %v6549_v62  ;;  %v4261_v51 = vadd.f32 %v4032_v59, %v6551_v54  ;;  %1592 = vmatpush1.msra.mxu0 %v1441_v4  ;;  %v1433_v11 = vmax.f32 %v1305_v36, 0.0  ;;  %v6553_v59 = vld [vmem:[#allocation59_spill] sm:$0xff]  ;;  %v6554_v4 = vld [vmem:[#allocation60_spill] sm:$0xff] }
  0xcb   :  { %1753 = vmatpush1.msra.mxu1 %v1443_v38  ;;  %v555_v7 = vmul.f32 %v3843_v58, %v4061_v22  ;;  %v282_v5 = vmul.f32 %v3813_v2, %v4149_v16  ;;  %v284_v34 = vmul.f32 %v3822_v25, %v4149_v16  ;;  %1593 = vmatprep.subr.mxu0 %v1434_v63  ;;  %v1435_v0 = vmax.f32 %v1307_v46, 0.0  ;;  %v1498_v63 = vld [vmem:[%s6245_s4 + $0x48] sm:$0xff] }
  0xcc   :  { %6550 = vst [vmem:[#allocation7_spill] sm:$0xff] %v4257_v1  ;;  %6552 = vst [vmem:[#allocation23_spill] sm:$0xff] %v4261_v51  ;;  %1754 = vmatprep.subr.mxu1 %v1436_v17  ;;  %v281_v55 = vmul.f32 %v3831_v49, %v4149_v16  ;;  %v1118_v20 = vadd.f32 %v6553_v59, %v726_v28  ;;  %v1120_v18 = vadd.f32 %v6554_v4, %v728_v32  ;;  %v6559_v32 = vld [vmem:[#allocation61_spill] sm:$0xff] }
  0xcd   :  { %1562 = vperm.xlu1 %3306, %v1500_v40   ;;  %1594 = vmatpush1.msra.mxu0 %v1433_v11  ;;  %v682_v36 = vadd.f32 %v554_v60, %v290_v31  ;;  %v684_v38 = vadd.f32 %v556_v57, %v292_v42  ;;  %v4275_v9 = vmul.f32 %v3843_v58, %v3905_v47  ;;  %v4287_v31 = vpop.permute.xlu0 %1184  ;;  %v4289_v60 = vpop.permute.xlu1 %766  ;;  %v1494_v47 = vld [vmem:[%s6245_s4 + $0x28] sm:$0xff] }
  0xce   :  { %1755 = vmatpush1.msra.mxu1 %v1435_v0  ;;  %v681_v46 = vadd.f32 %v553_v8, %v289_v53  ;;  %v4281_v23 = vadd.f32 %v6556_v52, %v1118_v20  ;;  %v4284_v28 = vadd.f32 %v6556_v52, %v1120_v18  ;;  %v1117_v17 = vadd.f32 %v6559_v32, %v725_v27 }
  0xcf   :  { %6555 = vst [vmem:[#allocation43_spill] sm:$0xff] %v4275_v9  ;;  %6560 = vst [vmem:[#allocation20_spill] sm:$0xff] %v4287_v31  ;;  %v683_v42 = vadd.f32 %v555_v7, %v291_v35  ;;  %v674_v57 = vadd.f32 %v4047_v37, %v282_v5  ;;  %v676_v40 = vadd.f32 %v4051_v12, %v284_v34 }
  0xd0   :  { %6557 = vst [vmem:[#allocation44_spill] sm:$0xff] %v4281_v23  ;;  %6558 = vst [vmem:[#allocation19_spill] sm:$0xff] %v4284_v28  ;;  %v283_v53 = vmul.f32 %v3834_v45, %v4149_v16  ;;  %v946_v8 = vmul.f32 %v3819_v14, %v4187_v15  ;;  %v673_v62 = vadd.f32 %v4055_v21, %v281_v55  ;;  %v1496_v21 = vld [vmem:[%s6245_s4 + $0x38] sm:$0xff] }
  0xd1   :  { %6561 = vst [vmem:[#allocation21_spill] sm:$0xff] %v4289_v60  ;;  %v274_v27 = vmul.f32 %v3813_v2, %v4131_v61  ;;  %v4302_v54 = vmul.f32 %v3822_v25, %v4131_v61  ;;  %1552 = vperm.xlu1 %3306, %v1498_v63   ;;  %v948_v35 = vmul.f32 %v3828_v39, %v4187_v15  ;;  %v4337_v20 = vpop.permute.xlu1 %90  ;;  %v6618_v23 = vld [vmem:[#allocation68_spill] sm:$0xff] }
  0xd2   :  { %v945_v37 = vmul.f32 %v6525_v24, %v4187_v15  ;;  %v4309_v12 = vadd.f32 %v6556_v52, %v1117_v17  ;;  %v1119_v11 = vadd.f32 %v4043_v33, %v727_v19  ;;  %v947_v7 = vmul.f32 %v6526_v30, %v4187_v15  ;;  %6565 = vst [vmem:[#allocation59_spill] sm:$0xff] %v4337_v20 }
  0xd3   :  { %v4319_v5 = vmul.f32 %v3831_v49, %v4131_v61  ;;  %v4323_v34 = vmul.f32 %v3834_v45, %v4131_v61  ;;  %v4327_v0 = vmul.f32 %v3813_v2, %v4244_v3  ;;  %v675_v33 = vadd.f32 %v4059_v41, %v283_v53 }
  0xd4   :  { %6562 = vst [vmem:[#allocation22_spill] sm:$0xff] %v4309_v12  ;;  %v4331_v19 = vadd.f32 %v6556_v52, %v1119_v11  ;;  %v318_v55 = vmul.f32 %v6533_v48, %v3999_v43  ;;  %v320_v59 = vmul.f32 %v6534_v13, %v3999_v43  ;;  %v938_v4 = vmul.f32 %v3819_v14, %v4289_v60  ;;  %v4351_v52 = vpop.permute.xlu0 %75 }
  0xd5   :  { %6563 = vst [vmem:[#allocation45_spill] sm:$0xff] %v4327_v0  ;;  %v940_v18 = vmul.f32 %v3828_v39, %v4289_v60  ;;  %v4345_v41 = vmul.f32 %v3822_v25, %v4244_v3  ;;  %v4349_v63 = vmul.f32 %v3831_v49, %v4244_v3  ;;  %6568 = vst [vmem:[#allocation61_spill] sm:$0xff] %v4351_v52  ;;  %1542 = vperm.xlu1 %3306, %v1496_v21  }
  0xd6   :  { %6564 = vst [vmem:[#allocation46_spill] sm:$0xff] %v4331_v19  ;;  %v1074_v32 = vadd.f32 %v946_v8, %v682_v36  ;;  %v1076_v17 = vadd.f32 %v948_v35, %v684_v38  ;;  %v1073_v53 = vadd.f32 %v945_v37, %v681_v46  ;;  %v4355_v11 = vmul.f32 %v3834_v45, %v4244_v3  ;;  %v4384_v3 = vpop.permute.xlu1 %762 }
  0xd7   :  { %6566 = vst [vmem:[#allocation60_spill] sm:$0xff] %v4345_v41  ;;  %6567 = vst [vmem:[#allocation52_spill] sm:$0xff] %v4349_v63  ;;  %v1075_v9 = vadd.f32 %v947_v7, %v683_v42  ;;  %v538_v61 = vmul.f32 %v3816_v10, %v4250_v29  ;;  %v4364_v16 = vmul.f32 %v3813_v2, %v4351_v52 }
  0xd8   :  { %6569 = vst [vmem:[#allocation84_spill] sm:$0xff] %v4355_v11  ;;  %v4368_v36 = vmul.f32 %v3822_v25, %v4351_v52  ;;  %v4372_v38 = vmul.f32 %v3831_v49, %v4351_v52  ;;  %v4376_v46 = vmul.f32 %v3834_v45, %v4351_v52  ;;  %v1066_v35 = vadd.f32 %v938_v4, %v674_v57  ;;  %v6574_v52 = vld [vmem:[#allocation26_spill] sm:$0xff] }
  0xd9   :  { %6570 = vst [vmem:[#allocation85_spill] sm:$0xff] %v4364_v16  ;;  %v1068_v37 = vadd.f32 %v940_v18, %v676_v40  ;;  %v937_v21 = vmul.f32 %v6525_v24, %v4289_v60  ;;  %v939_v7 = vmul.f32 %v6526_v30, %v4289_v60  ;;  %1532 = vperm.xlu1 %3306, %v1494_v47   ;;  %v1492_v40 = vld [vmem:[%s6245_s4 + $0x18] sm:$0xff] }
  0xda   :  { %6571 = vst [vmem:[#allocation86_spill] sm:$0xff] %v4368_v36  ;;  %6572 = vst [vmem:[#allocation87_spill] sm:$0xff] %v4372_v38  ;;  %v540_v38 = vmul.f32 %v3825_v44, %v4250_v29  ;;  %v6575_v36 = vld [vmem:[#allocation27_spill] sm:$0xff]  ;;  %v317_v57 = vmul.f32 %v6535_v26, %v3999_v43  ;;  %v4395_v4 = vadd.f32 %v538_v61, %v274_v27  ;;  %v6580_v16 = vld [vmem:[#allocation24_spill] sm:$0xff] }
  0xdb   :  { %6573 = vst [vmem:[#allocation88_spill] sm:$0xff] %v4376_v46  ;;  %v710_v46 = vadd.f32 %v6574_v52, %v318_v55  ;;  %v712_v42 = vadd.f32 %v6575_v36, %v320_v59  ;;  %v537_v18 = vmul.f32 %v3837_v56, %v4250_v29  ;;  %v539_v47 = vmul.f32 %v3843_v58, %v4250_v29  ;;  %v4402_v55 = vpop.permute.xlu0 %1174  ;;  %v6577_v59 = vld [vmem:[#allocation13_spill] sm:$0xff]  ;;  %v6578_v36 = vld [vmem:[#allocation14_spill] sm:$0xff] }
  0xdc   :  { %6576 = vst [vmem:[#allocation26_spill] sm:$0xff] %v4402_v55  ;;  %v709_v60 = vadd.f32 %v6579_v50, %v317_v57  ;;  %v319_v61 = vmul.f32 %v6580_v16, %v3999_v43  ;;  %v1290_v27 = vadd.f32 %v4287_v31, %v1066_v35  ;;  %v1292_v11 = vadd.f32 %v4287_v31, %v1068_v37  ;;  %v6581_v29 = vld [vmem:[#allocation66_spill] sm:$0xff]  ;;  %v4419_v57 = vpop.permute.xlu1 %1189  ;;  %v6586_v35 = vld [vmem:[#allocation63_spill] sm:$0xff]  ;;  %v6588_v37 = vld [vmem:[#allocation9_spill] sm:$0xff] }
  0xdd   :  { %v1102_v52 = vadd.f32 %v6577_v59, %v710_v46  ;;  %v1104_v6 = vadd.f32 %v6578_v36, %v712_v42  ;;  %v1065_v63 = vadd.f32 %v937_v21, %v673_v62  ;;  %v1067_v41 = vadd.f32 %v939_v7, %v675_v33  ;;  %1522 = vperm.xlu1 %3306, %v1492_v40   ;;  %v6584_v46 = vld [vmem:[#allocation15_spill] sm:$0xff]  ;;  %v6585_v59 = vld [vmem:[#allocation29_spill] sm:$0xff]  ;;  %v1490_v43 = vld [vmem:[%s6245_s4 + $0x8] sm:$0xff] }
  0xde   :  { %v1101_v42 = vadd.f32 %v6584_v46, %v709_v60  ;;  %v711_v50 = vadd.f32 %v6585_v59, %v319_v61  ;;  %v310_v62 = vmul.f32 %v6533_v48, %v6586_v35  ;;  %v6587_v33 = vld [vmem:[#allocation62_spill] sm:$0xff]  ;;  %v1298_v40 = vadd.f32 %v4419_v57, %v1074_v32 }
  0xdf   :  { %v4412_v8 = vadd.f32 %v6581_v29, %v1102_v52  ;;  %v4415_v1 = vadd.f32 %v6581_v29, %v1104_v6  ;;  %v966_v21 = vmul.f32 %v6588_v37, %v6587_v33  ;;  %v312_v6 = vmul.f32 %v6534_v13, %v6586_v35  ;;  %v6589_v7 = vld [vmem:[#allocation10_spill] sm:$0xff]  ;;  %v4442_v0 = vpop.permute.xlu0 %65 }
  0xe0   :  { %v968_v60 = vmul.f32 %v6589_v7, %v6587_v33  ;;  %v1300_v52 = vadd.f32 %v4419_v57, %v1076_v17  ;;  %v1297_v36 = vadd.f32 %v4419_v57, %v1073_v53  ;;  %v1299_v61 = vadd.f32 %v4419_v57, %v1075_v9  ;;  %6592 = vst [vmem:[#allocation28_spill] sm:$0xff] %v4442_v0  ;;  %v2372_v9 = vld [vmem:[%s6247_s6 + $0x38] sm:$0xff] }
  0xe1   :  { %6582 = vst [vmem:[#allocation27_spill] sm:$0xff] %v4412_v8  ;;  %6583 = vst [vmem:[#allocation13_spill] sm:$0xff] %v4415_v1  ;;  %v1289_v46 = vadd.f32 %v4287_v31, %v1065_v63  ;;  %v1291_v59 = vadd.f32 %v4287_v31, %v1067_v41  ;;  %v4439_v1 = vadd.f32 %v6581_v29, %v1101_v42  ;;  %v6591_v8 = vld [vmem:[#allocation16_spill] sm:$0xff]  ;;  %1512 = vperm.xlu1 %3306, %v1490_v43   ;;  %v4455_v31 = vpop.permute.xlu1 %362 }
  0xe2   :  { %v1103_v19 = vadd.f32 %v6591_v8, %v711_v50  ;;  %v1426_v15 = vmax.f32 %v1298_v40, 0.0  ;;  %v1428_v32 = vmax.f32 %v1300_v52, 0.0  ;;  %v1425_v22 = vmax.f32 %v1297_v36, 0.0  ;;  %v6594_v53 = vld [vmem:[#allocation48_spill] sm:$0xff]  ;;  %v6595_v8 = vld [vmem:[#allocation49_spill] sm:$0xff]  ;;  %6596 = vst [vmem:[#allocation66_spill] sm:$0xff] %v4455_v31 }
  0xe3   :  { %6590 = vst [vmem:[#allocation14_spill] sm:$0xff] %v4439_v1  ;;  %v1427_v17 = vmax.f32 %v1299_v61, 0.0  ;;  %v4448_v63 = vadd.f32 %v540_v38, %v4302_v54  ;;  %v702_v42 = vadd.f32 %v6594_v53, %v310_v62  ;;  %v704_v50 = vadd.f32 %v6595_v8, %v312_v6  ;;  %v6597_v52 = vld [vmem:[#allocation11_spill] sm:$0xff] }
  0xe4   :  { %v4451_v41 = vadd.f32 %v6581_v29, %v1103_v19  ;;  %1595 = vmatprep.subr.mxu0 %v1426_v15  ;;  %1756 = vmatprep.subr.mxu1 %v1428_v32  ;;  %v1418_v43 = vmax.f32 %v1290_v27, 0.0  ;;  %v309_v40 = vmul.f32 %v6535_v26, %v6586_v35  ;;  %v965_v36 = vmul.f32 %v6597_v52, %v6587_v33 }
  0xe5   :  { %v311_v54 = vmul.f32 %v6580_v16, %v6586_v35  ;;  %1596 = vmatpush1.msra.mxu0 %v1425_v22  ;;  %1757 = vmatpush1.msra.mxu1 %v1427_v17  ;;  %v1420_v29 = vmax.f32 %v1292_v11, 0.0  ;;  %v1417_v19 = vmax.f32 %v1289_v46, 0.0  ;;  %v665_v38 = vadd.f32 %v537_v18, %v4319_v5  ;;  %v2370_v22 = vld [vmem:[%s6247_s6 + $0x28] sm:$0xff]  ;;  %v4498_v17 = vpop.permute.xlu1 %758 }
  0xe6   :  { %6593 = vst [vmem:[#allocation24_spill] sm:$0xff] %v4451_v41  ;;  %v4465_v62 = vadd.f32 %v539_v47, %v4323_v34  ;;  %2410 = vperm.xlu1 %3306, %v2372_v9   ;;  %1597 = vmatprep.subr.mxu0 %v1418_v43  ;;  %v1419_v15 = vmax.f32 %v1291_v59, 0.0  ;;  %v4469_v27 = vmul.f32 %v3813_v2, %v4442_v0  ;;  %v4487_v47 = vpop.permute.xlu0 %1164  ;;  %v6606_v59 = vld [vmem:[#allocation50_spill] sm:$0xff]  ;;  %6607 = vst [vmem:[#allocation48_spill] sm:$0xff] %v4498_v17  ;;  %v6608_v9 = vld [vmem:[#allocation51_spill] sm:$0xff] }
  0xe7   :  { %v1094_v6 = vadd.f32 %v966_v21, %v702_v42  ;;  %v1096_v61 = vadd.f32 %v968_v60, %v704_v50  ;;  %1758 = vmatprep.subr.mxu1 %v1420_v29  ;;  %1598 = vmatpush1.msra.mxu0 %v1417_v19  ;;  %v4476_v5 = vmul.f32 %v3822_v25, %v4442_v0  ;;  %v6603_v21 = vld [vmem:[#allocation39_spill] sm:$0xff]  ;;  %v6609_v42 = vld [vmem:[#allocation12_spill] sm:$0xff]  ;;  %v6610_v50 = vld [vmem:[#allocation57_spill] sm:$0xff] }
  0xe8   :  { %6598 = vst [vmem:[#allocation15_spill] sm:$0xff] %v4469_v27  ;;  %v4480_v34 = vmul.f32 %v3831_v49, %v4442_v0  ;;  %v4484_v11 = vmul.f32 %v3834_v45, %v4442_v0  ;;  %6602 = vst [vmem:[#allocation9_spill] sm:$0xff] %v4487_v47  ;;  %1759 = vmatpush1.msra.mxu1 %v1419_v15  ;;  %v266_v35 = vmul.f32 %v3813_v2, %v4337_v20  ;;  %v6611_v29 = vld [vmem:[#allocation73_spill] sm:$0xff]  ;;  %v6660_v41 = vld [vmem:[#allocation75_spill] sm:$0xff] }
  0xe9   :  { %6599 = vst [vmem:[#allocation29_spill] sm:$0xff] %v4476_v5  ;;  %v4492_v60 = vadd.f32 %v6603_v21, %v1094_v6  ;;  %v4495_v46 = vadd.f32 %v6603_v21, %v1096_v61  ;;  %v701_v32 = vadd.f32 %v6606_v59, %v309_v40  ;;  %v703_v53 = vadd.f32 %v6608_v9, %v311_v54  ;;  %v6612_v6 = vld [vmem:[#allocation67_spill] sm:$0xff] }
  0xea   :  { %6600 = vst [vmem:[#allocation63_spill] sm:$0xff] %v4480_v34  ;;  %6601 = vst [vmem:[#allocation62_spill] sm:$0xff] %v4484_v11  ;;  %v967_v8 = vmul.f32 %v6609_v42, %v6587_v33  ;;  %v302_v43 = vmul.f32 %v6533_v48, %v6610_v50  ;;  %v958_v19 = vmul.f32 %v6588_v37, %v6611_v29  ;;  %2400 = vperm.xlu1 %3306, %v2370_v22   ;;  %v2368_v33 = vld [vmem:[%s6247_s6 + $0x18] sm:$0xff]  ;;  %v4537_v28 = vpop.permute.xlu1 %80  ;;  %v6625_v34 = vld [vmem:[#allocation31_spill] sm:$0xff] }
  0xeb   :  { %6604 = vst [vmem:[#allocation10_spill] sm:$0xff] %v4492_v60  ;;  %6605 = vst [vmem:[#allocation16_spill] sm:$0xff] %v4495_v46  ;;  %v268_v15 = vmul.f32 %v3822_v25, %v4337_v20  ;;  %v265_v54 = vmul.f32 %v3831_v49, %v4337_v20  ;;  %v267_v59 = vmul.f32 %v3834_v45, %v4337_v20 }
  0xec   :  { %v1093_v22 = vadd.f32 %v965_v36, %v701_v32  ;;  %v1095_v9 = vadd.f32 %v967_v8, %v703_v53  ;;  %v930_v18 = vmul.f32 %v3819_v14, %v4384_v3  ;;  %v932_v40 = vmul.f32 %v3828_v39, %v4384_v3  ;;  %v6615_v32 = vld [vmem:[#allocation30_spill] sm:$0xff]  ;;  %v4535_v8 = vpop.permute.xlu0 %55  ;;  %6617 = vst [vmem:[#allocation50_spill] sm:$0xff] %v4537_v28 }
  0xed   :  { %v929_v61 = vmul.f32 %v6525_v24, %v4384_v3  ;;  %v658_v0 = vadd.f32 %v6612_v6, %v266_v35  ;;  %v922_v51 = vmul.f32 %v3819_v14, %v4498_v17  ;;  %v694_v53 = vadd.f32 %v6615_v32, %v302_v43  ;;  %6616 = vst [vmem:[#allocation39_spill] sm:$0xff] %v4535_v8  ;;  %v6619_v43 = vld [vmem:[#allocation69_spill] sm:$0xff]  ;;  %v6620_v32 = vld [vmem:[#allocation70_spill] sm:$0xff] }
  0xee   :  { %v4529_v12 = vadd.f32 %v6603_v21, %v1093_v22  ;;  %v4532_v36 = vadd.f32 %v6603_v21, %v1095_v9  ;;  %2390 = vperm.xlu1 %3306, %v2368_v33   ;;  %v660_v46 = vadd.f32 %v6618_v23, %v268_v15  ;;  %v924_v35 = vmul.f32 %v3828_v39, %v4498_v17  ;;  %v2366_v21 = vld [vmem:[%s6247_s6 + $0x8] sm:$0xff] }
  0xef   :  { %v921_v6 = vmul.f32 %v6525_v24, %v4498_v17  ;;  %v304_v22 = vmul.f32 %v6534_v13, %v6610_v50  ;;  %v657_v9 = vadd.f32 %v6619_v43, %v265_v54  ;;  %v4553_v23 = vmul.f32 %v3813_v2, %v4535_v8  ;;  %v4574_v5 = vpop.permute.xlu1 %754 }
  0xf0   :  { %6613 = vst [vmem:[#allocation49_spill] sm:$0xff] %v4529_v12  ;;  %6614 = vst [vmem:[#allocation11_spill] sm:$0xff] %v4532_v36  ;;  %v659_v36 = vadd.f32 %v6620_v32, %v267_v59  ;;  %v4557_v15 = vmul.f32 %v3822_v25, %v4535_v8  ;;  %v931_v33 = vmul.f32 %v6526_v30, %v4384_v3 }
  0xf1   :  { %6621 = vst [vmem:[#allocation51_spill] sm:$0xff] %v4553_v23  ;;  %v923_v12 = vmul.f32 %v6526_v30, %v4498_v17  ;;  %v4565_v60 = vmul.f32 %v3831_v49, %v4535_v8  ;;  %v4569_v54 = vmul.f32 %v3834_v45, %v4535_v8  ;;  %v1058_v59 = vadd.f32 %v930_v18, %v4395_v4 }
  0xf2   :  { %6622 = vst [vmem:[#allocation12_spill] sm:$0xff] %v4557_v15  ;;  %v1060_v43 = vadd.f32 %v932_v40, %v4448_v63  ;;  %v1057_v32 = vadd.f32 %v929_v61, %v665_v38  ;;  %v1050_v15 = vadd.f32 %v922_v51, %v658_v0  ;;  %2380 = vperm.xlu1 %3306, %v2366_v21   ;;  %6626 = vst [vmem:[#allocation67_spill] sm:$0xff] %v4574_v5  ;;  %v6629_v61 = vld [vmem:[#allocation32_spill] sm:$0xff] }
  0xf3   :  { %6623 = vst [vmem:[#allocation57_spill] sm:$0xff] %v4565_v60  ;;  %6624 = vst [vmem:[#allocation73_spill] sm:$0xff] %v4569_v54  ;;  %v1052_v23 = vadd.f32 %v924_v35, %v660_v46  ;;  %v1049_v20 = vadd.f32 %v921_v6, %v657_v9  ;;  %v1086_v11 = vadd.f32 %v958_v19, %v694_v53  ;;  %v2930_v60 = vld [vmem:[%s6249_s8] sm:$0x7]  ;;  %v6633_v9 = vld [vmem:[#allocation64_spill] sm:$0xff] }
  0xf4   :  { %v696_v17 = vadd.f32 %v6625_v34, %v304_v22  ;;  %v960_v8 = vmul.f32 %v6589_v7, %v6611_v29  ;;  %v301_v4 = vmul.f32 %v6535_v26, %v6610_v50  ;;  %v957_v51 = vmul.f32 %v6597_v52, %v6611_v29  ;;  %v6627_v46 = vld [vmem:[#allocation53_spill] sm:$0xff] }
  0xf5   :  { %v303_v0 = vmul.f32 %v6580_v16, %v6610_v50  ;;  %v1059_v63 = vadd.f32 %v931_v33, %v4465_v62  ;;  %v1051_v38 = vadd.f32 %v923_v12, %v659_v36  ;;  %v522_v34 = vmul.f32 %v3816_v10, %v4455_v31  ;;  %v6630_v35 = vld [vmem:[#allocation33_spill] sm:$0xff]  ;;  %v6635_v33 = vld [vmem:[#allocation6_spill] sm:$0xff] }
  0xf6   :  { %v524_v18 = vmul.f32 %v3825_v44, %v4455_v31  ;;  %v4593_v19 = vadd.f32 %v6627_v46, %v1086_v11  ;;  %v1088_v40 = vadd.f32 %v960_v8, %v696_v17  ;;  %v693_v53 = vadd.f32 %v6629_v61, %v301_v4  ;;  %2933 = vperm.xlu1 %3306, %v2930_v60   ;;  %v4609_v60 = vpop.permute.xlu1 %1179 }
  0xf7   :  { %v695_v6 = vadd.f32 %v6630_v35, %v303_v0  ;;  %v1274_v50 = vadd.f32 %v4402_v55, %v1050_v15  ;;  %v1276_v62 = vadd.f32 %v4402_v55, %v1052_v23  ;;  %v521_v12 = vmul.f32 %v3837_v56, %v4455_v31  ;;  %6632 = vst [vmem:[#allocation69_spill] sm:$0xff] %v4609_v60  ;;  %v6634_v15 = vld [vmem:[#allocation65_spill] sm:$0xff]  ;;  %v6636_v0 = vld [vmem:[#allocation54_spill] sm:$0xff] }
  0xf8   :  { %6628 = vst [vmem:[#allocation30_spill] sm:$0xff] %v4593_v19  ;;  %v523_v36 = vmul.f32 %v3843_v58, %v4455_v31  ;;  %v1273_v22 = vadd.f32 %v4402_v55, %v1049_v20  ;;  %v4605_v11 = vadd.f32 %v6627_v46, %v1088_v40  ;;  %v1085_v17 = vadd.f32 %v957_v51, %v693_v53 }
  0xf9   :  { %v959_v8 = vmul.f32 %v6609_v42, %v6611_v29  ;;  %v1275_v21 = vadd.f32 %v4402_v55, %v1051_v38  ;;  %v294_v23 = vmul.f32 %v6533_v48, %v6633_v9  ;;  %v558_v4 = vmul.f32 %v6635_v33, %v6634_v15 }
  0xfa   :  { %6631 = vst [vmem:[#allocation68_spill] sm:$0xff] %v4605_v11  ;;  %v950_v20 = vmul.f32 %v6588_v37, %v6636_v0  ;;  %v1282_v40 = vadd.f32 %v4609_v60, %v1058_v59  ;;  %v1284_v51 = vadd.f32 %v4609_v60, %v1060_v43  ;;  %v1281_v61 = vadd.f32 %v4609_v60, %v1057_v32  ;;  %v6639_v32 = vld [vmem:[#allocation8_spill] sm:$0xff] }
  0xfb   :  { %v1283_v29 = vadd.f32 %v4609_v60, %v1059_v63  ;;  %v4623_v53 = vadd.f32 %v6627_v46, %v1085_v17  ;;  %v1087_v38 = vadd.f32 %v959_v8, %v695_v6  ;;  %v686_v35 = vadd.f32 %v558_v4, %v294_v23  ;;  %v4632_v60 = vpop.permute.xlu1 %354 }
  0xfc   :  { %v296_v11 = vmul.f32 %v6534_v13, %v6633_v9  ;;  %v1410_v19 = vmax.f32 %v1282_v40, 0.0  ;;  %v1412_v54 = vmax.f32 %v1284_v51, 0.0  ;;  %v1409_v31 = vmax.f32 %v1281_v61, 0.0  ;;  %6640 = vst [vmem:[#allocation53_spill] sm:$0xff] %v4632_v60  ;;  %v6659_v51 = vld [vmem:[#allocation74_spill] sm:$0xff] }
  0xfd   :  { %6637 = vst [vmem:[#allocation70_spill] sm:$0xff] %v4623_v53  ;;  %v1411_v55 = vmax.f32 %v1283_v29, 0.0  ;;  %v1402_v27 = vmax.f32 %v1274_v50, 0.0  ;;  %v4628_v59 = vadd.f32 %v6627_v46, %v1087_v38  ;;  %v1078_v43 = vadd.f32 %v950_v20, %v686_v35  ;;  %v6641_v50 = vld [vmem:[#allocation17_spill] sm:$0xff] }
  0xfe   :  { %v560_v63 = vmul.f32 %v6639_v32, %v6634_v15  ;;  %1599 = vmatprep.subr.mxu0 %v1410_v19  ;;  %1760 = vmatprep.subr.mxu1 %v1412_v54  ;;  %v1404_v6 = vmax.f32 %v1276_v62, 0.0  ;;  %v952_v17 = vmul.f32 %v6589_v7, %v6636_v0  ;;  %v293_v8 = vmul.f32 %v6535_v26, %v6633_v9  ;;  %v6642_v20 = vld [vmem:[#allocation45_spill] sm:$0xff]  ;;  %v6644_v54 = vld [vmem:[#allocation60_spill] sm:$0xff] }
  0xff   :  { %6638 = vst [vmem:[#allocation31_spill] sm:$0xff] %v4628_v59  ;;  %v557_v23 = vmul.f32 %v6641_v50, %v6634_v15  ;;  %1600 = vmatpush1.msra.mxu0 %v1409_v31  ;;  %1761 = vmatpush1.msra.mxu1 %v1411_v55  ;;  %v1401_v46 = vmax.f32 %v1273_v22, 0.0  ;;  %v1403_v4 = vmax.f32 %v1275_v21, 0.0  ;;  %v650_v40 = vadd.f32 %v522_v34, %v6642_v20  ;;  %v6647_v31 = vld [vmem:[#allocation52_spill] sm:$0xff] }
 0x100   :  { %1601 = vmatprep.subr.mxu0 %v1402_v27  ;;  %1762 = vmatprep.subr.mxu1 %v1404_v6  ;;  %v652_v19 = vadd.f32 %v524_v18, %v6644_v54  ;;  %v4645_v38 = vadd.f32 %v4419_v57, %v1078_v43  ;;  %v688_v35 = vadd.f32 %v560_v63, %v296_v11  ;;  %v6648_v22 = vld [vmem:[#allocation84_spill] sm:$0xff]  ;;  %v4656_v11 = vpop.permute.xlu1 %750  ;;  %v6651_v63 = vld [vmem:[#allocation18_spill] sm:$0xff] }
 0x101   :  { %1602 = vmatpush1.msra.mxu0 %v1401_v46  ;;  %1763 = vmatpush1.msra.mxu1 %v1403_v4  ;;  %v649_v55 = vadd.f32 %v521_v12, %v6647_v31  ;;  %v651_v21 = vadd.f32 %v523_v36, %v6648_v22  ;;  %v250_v34 = vmul.f32 %v3813_v2, %v4537_v28  ;;  %v6653_v22 = vld [vmem:[#allocation81_spill] sm:$0xff]  ;;  %v6658_v59 = vld [vmem:[#allocation72_spill] sm:$0xff] }
 0x102   :  { %6646 = vst [vmem:[#allocation32_spill] sm:$0xff] %v4645_v38  ;;  %v252_v18 = vmul.f32 %v3822_v25, %v4537_v28  ;;  %v249_v6 = vmul.f32 %v3831_v49, %v4537_v28  ;;  %v1080_v43 = vadd.f32 %v952_v17, %v688_v35  ;;  %v685_v54 = vadd.f32 %v557_v23, %v293_v8 }
 0x103   :  { %6650 = vst [vmem:[#allocation33_spill] sm:$0xff] %v4656_v11  ;;  %v949_v12 = vmul.f32 %v6597_v52, %v6636_v0  ;;  %v295_v36 = vmul.f32 %v6580_v16, %v6633_v9  ;;  %v559_v46 = vmul.f32 %v6651_v63, %v6634_v15  ;;  %v951_v4 = vmul.f32 %v6609_v42, %v6636_v0 }
 0x104   :  { %v914_v31 = vmul.f32 %v3819_v14, %v4574_v5  ;;  %v916_v17 = vmul.f32 %v3828_v39, %v4574_v5  ;;  %v913_v8 = vmul.f32 %v6525_v24, %v4574_v5  ;;  %v251_v23 = vmul.f32 %v3834_v45, %v4537_v28  ;;  %v4693_v62 = vpop.permute.xlu1 %70 }
 0x105   :  { %v4675_v9 = vadd.f32 %v4419_v57, %v1080_v43  ;;  %v1077_v35 = vadd.f32 %v949_v12, %v685_v54  ;;  %v687_v15 = vadd.f32 %v559_v46, %v295_v36  ;;  %v286_v0 = vmul.f32 %v6533_v48, %v6653_v22  ;;  %v6655_v36 = vld [vmem:[#allocation34_spill] sm:$0xff]  ;;  %6656 = vst [vmem:[#allocation6_spill] sm:$0xff] %v4693_v62 }
 0x106   :  { %v915_v27 = vmul.f32 %v6526_v30, %v4574_v5  ;;  %v906_v29 = vmul.f32 %v3819_v14, %v4656_v11  ;;  %v908_v61 = vmul.f32 %v3828_v39, %v4656_v11  ;;  %v506_v20 = vmul.f32 %v3816_v10, %v4632_v60 }
 0x107   :  { %6652 = vst [vmem:[#allocation64_spill] sm:$0xff] %v4675_v9  ;;  %v905_v43 = vmul.f32 %v6525_v24, %v4656_v11  ;;  %v4690_v54 = vadd.f32 %v4419_v57, %v1077_v35  ;;  %v1079_v12 = vadd.f32 %v951_v4, %v687_v15  ;;  %v678_v46 = vadd.f32 %v6655_v36, %v286_v0  ;;  %v6657_v9 = vld [vmem:[#allocation71_spill] sm:$0xff]  ;;  %v6669_v36 = vld [vmem:[#allocation41_spill] sm:$0xff] }
 0x108   :  { %v642_v38 = vadd.f32 %v6657_v9, %v250_v34  ;;  %v644_v53 = vadd.f32 %v6658_v59, %v252_v18  ;;  %v641_v28 = vadd.f32 %v6659_v51, %v249_v6  ;;  %v907_v5 = vmul.f32 %v6526_v30, %v4656_v11  ;;  %v6661_v6 = vld [vmem:[#allocation85_spill] sm:$0xff] }
 0x109   :  { %6654 = vst [vmem:[#allocation65_spill] sm:$0xff] %v4690_v54  ;;  %v1042_v63 = vadd.f32 %v914_v31, %v650_v40  ;;  %v1044_v50 = vadd.f32 %v916_v17, %v652_v19  ;;  %v1041_v10 = vadd.f32 %v913_v8, %v649_v55  ;;  %v643_v35 = vadd.f32 %v6660_v41, %v251_v23  ;;  %v6663_v41 = vld [vmem:[#allocation21_spill] sm:$0xff]  ;;  %v4717_v55 = vpop.permute.xlu1 %746  ;;  %v6667_v17 = vld [vmem:[#allocation88_spill] sm:$0xff] }
 0x10a   :  { %v1034_v54 = vadd.f32 %v906_v29, %v642_v38  ;;  %v508_v4 = vmul.f32 %v3825_v44, %v4632_v60  ;;  %v505_v15 = vmul.f32 %v3837_v56, %v4632_v60  ;;  %v507_v59 = vmul.f32 %v3843_v58, %v4632_v60  ;;  %6664 = vst [vmem:[#allocation8_spill] sm:$0xff] %v4717_v55 }
 0x10b   :  { %v1043_v34 = vadd.f32 %v915_v27, %v651_v21  ;;  %v1036_v51 = vadd.f32 %v908_v61, %v644_v53  ;;  %v1033_v18 = vadd.f32 %v905_v43, %v641_v28  ;;  %v4708_v9 = vadd.f32 %v506_v20, %v6661_v6  ;;  %v6665_v61 = vld [vmem:[#allocation86_spill] sm:$0xff]  ;;  %v6666_v27 = vld [vmem:[#allocation87_spill] sm:$0xff] }
 0x10c   :  { %v1035_v40 = vadd.f32 %v907_v5, %v643_v35  ;;  %v4711_v19 = vadd.f32 %v4419_v57, %v1079_v12  ;;  %v942_v29 = vmul.f32 %v6588_v37, %v6663_v41  ;;  %v288_v38 = vmul.f32 %v6534_v13, %v6653_v22  ;;  %v6668_v43 = vld [vmem:[#allocation35_spill] sm:$0xff]  ;;  %v6670_v6 = vld [vmem:[#allocation42_spill] sm:$0xff] }
 0x10d   :  { %v944_v21 = vmul.f32 %v6589_v7, %v6663_v41  ;;  %v285_v28 = vmul.f32 %v6535_v26, %v6653_v22  ;;  %v941_v5 = vmul.f32 %v6597_v52, %v6663_v41  ;;  %v287_v57 = vmul.f32 %v6580_v16, %v6653_v22 }
 0x10e   :  { %6662 = vst [vmem:[#allocation54_spill] sm:$0xff] %v4711_v19  ;;  %v1258_v53 = vadd.f32 %v4487_v47, %v1034_v54  ;;  %v636_v20 = vadd.f32 %v508_v4, %v6665_v61  ;;  %v4730_v31 = vadd.f32 %v505_v15, %v6666_v27  ;;  %v4733_v8 = vadd.f32 %v507_v59, %v6667_v17  ;;  %v6673_v27 = vld [vmem:[#allocation5_spill] sm:$0xff] }
 0x10f   :  { %v1260_v23 = vadd.f32 %v4487_v47, %v1036_v51  ;;  %v4736_v0 = vadd.f32 %v942_v29, %v678_v46  ;;  %v680_v12 = vadd.f32 %v6668_v43, %v288_v38  ;;  %v677_v35 = vadd.f32 %v6669_v36, %v285_v28  ;;  %v4753_v38 = vpop.permute.xlu1 %1169  ;;  %v6672_v28 = vld [vmem:[#allocation76_spill] sm:$0xff] }
 0x110   :  { %v1257_v22 = vadd.f32 %v4487_v47, %v1033_v18  ;;  %v1259_v54 = vadd.f32 %v4487_v47, %v1035_v40  ;;  %v234_v4 = vmul.f32 %v3813_v2, %v4693_v62  ;;  %v236_v15 = vmul.f32 %v3822_v25, %v4693_v62  ;;  %6671 = vst [vmem:[#allocation45_spill] sm:$0xff] %v4753_v38 }
 0x111   :  { %v233_v59 = vmul.f32 %v3831_v49, %v4693_v62  ;;  %v4748_v51 = vadd.f32 %v944_v21, %v680_v12  ;;  %v4750_v46 = vadd.f32 %v941_v5, %v677_v35  ;;  %v679_v29 = vadd.f32 %v6670_v6, %v287_v57 }
 0x112   :  { %v235_v18 = vmul.f32 %v3834_v45, %v4693_v62  ;;  %v943_v40 = vmul.f32 %v6609_v42, %v6663_v41  ;;  %v278_v61 = vmul.f32 %v6533_v48, %v6672_v28  ;;  %v542_v17 = vmul.f32 %v6635_v33, %v6673_v27 }
 0x113   :  { %v1266_v21 = vadd.f32 %v4753_v38, %v1042_v63  ;;  %v1268_v5 = vadd.f32 %v4753_v38, %v1044_v50  ;;  %v1265_v57 = vadd.f32 %v4753_v38, %v1041_v10  ;;  %v1267_v43 = vadd.f32 %v4753_v38, %v1043_v34  ;;  %v6674_v10 = vld [vmem:[#allocation77_spill] sm:$0xff] }
 0x114   :  { %v1386_v12 = vmax.f32 %v1258_v53, 0.0  ;;  %v1388_v36 = vmax.f32 %v1260_v23, 0.0  ;;  %v4767_v35 = vadd.f32 %v943_v40, %v679_v29  ;;  %v934_v41 = vmul.f32 %v6588_v37, %v4384_v3  ;;  %v4776_v53 = vpop.permute.xlu1 %346 }
 0x115   :  { %v1394_v6 = vmax.f32 %v1266_v21, 0.0  ;;  %v1396_v62 = vmax.f32 %v1268_v5, 0.0  ;;  %v1393_v19 = vmax.f32 %v1265_v57, 0.0  ;;  %v1395_v60 = vmax.f32 %v1267_v43, 0.0  ;;  %6675 = vst [vmem:[#allocation60_spill] sm:$0xff] %v4776_v53  ;;  %v6676_v57 = vld [vmem:[#allocation78_spill] sm:$0xff] }
 0x116   :  { %v898_v63 = vmul.f32 %v3819_v14, %v4717_v55  ;;  %v900_v50 = vmul.f32 %v3828_v39, %v4717_v55  ;;  %v626_v47 = vadd.f32 %v6674_v10, %v234_v4  ;;  %v670_v34 = vadd.f32 %v542_v17, %v278_v61  ;;  %v6677_v61 = vld [vmem:[#allocation79_spill] sm:$0xff]  ;;  %v6678_v43 = vld [vmem:[#allocation80_spill] sm:$0xff] }
 0x117   :  { %1603 = vmatprep.subr.mxu0 %v1394_v6  ;;  %1764 = vmatprep.subr.mxu1 %v1396_v62  ;;  %v1385_v23 = vmax.f32 %v1257_v22, 0.0  ;;  %v280_v29 = vmul.f32 %v6534_v13, %v6672_v28  ;;  %v544_v40 = vmul.f32 %v6639_v32, %v6673_v27  ;;  %v936_v21 = vmul.f32 %v6589_v7, %v4384_v3 }
 0x118   :  { %1604 = vmatpush1.msra.mxu0 %v1393_v19  ;;  %1765 = vmatpush1.msra.mxu1 %v1395_v60  ;;  %v1387_v5 = vmax.f32 %v1259_v54, 0.0  ;;  %v628_v4 = vadd.f32 %v6676_v57, %v236_v15  ;;  %v625_v17 = vadd.f32 %v6677_v61, %v233_v59  ;;  %v627_v6 = vadd.f32 %v6678_v43, %v235_v18  ;;  %v6680_v18 = vld [vmem:[#allocation37_spill] sm:$0xff] }
 0x119   :  { %1605 = vmatprep.subr.mxu0 %v1386_v12  ;;  %1766 = vmatprep.subr.mxu1 %v1388_v36  ;;  %v897_v62 = vmul.f32 %v6525_v24, %v4717_v55  ;;  %v1062_v10 = vadd.f32 %v934_v41, %v670_v34  ;;  %v672_v11 = vadd.f32 %v544_v40, %v280_v29  ;;  %v6681_v36 = vld [vmem:[#allocation69_spill] sm:$0xff]  ;;  %v6685_v29 = vld [vmem:[#allocation18_spill] sm:$0xff] }
 0x11a   :  { %1606 = vmatpush1.msra.mxu0 %v1385_v23  ;;  %1767 = vmatpush1.msra.mxu1 %v1387_v5  ;;  %v4791_v60 = vadd.f32 %v898_v63, %v4708_v9  ;;  %v4793_v19 = vadd.f32 %v900_v50, %v636_v20  ;;  %v899_v54 = vmul.f32 %v6526_v30, %v4717_v55  ;;  %v4805_v23 = vpop.permute.xlu1 %742  ;;  %v6684_v9 = vld [vmem:[#allocation17_spill] sm:$0xff] }
 0x11b   :  { %v490_v12 = vmul.f32 %v6680_v18, %v4776_v53  ;;  %v4801_v57 = vadd.f32 %v6681_v36, %v1062_v10  ;;  %v1064_v41 = vadd.f32 %v936_v21, %v672_v11  ;;  %v277_v34 = vmul.f32 %v6535_v26, %v6672_v28  ;;  %6683 = vst [vmem:[#allocation84_spill] sm:$0xff] %v4805_v23 }
 0x11c   :  { %v541_v20 = vmul.f32 %v6684_v9, %v6673_v27  ;;  %v933_v63 = vmul.f32 %v6597_v52, %v4384_v3  ;;  %v279_v50 = vmul.f32 %v6580_v16, %v6672_v28  ;;  %v543_v40 = vmul.f32 %v6685_v29, %v6673_v27 }
 0x11d   :  { %6682 = vst [vmem:[#allocation52_spill] sm:$0xff] %v4801_v57  ;;  %v890_v11 = vmul.f32 %v3819_v14, %v4805_v23  ;;  %v892_v21 = vmul.f32 %v3828_v39, %v4805_v23  ;;  %v889_v5 = vmul.f32 %v6525_v24, %v4805_v23  ;;  %v891_v61 = vmul.f32 %v6526_v30, %v4805_v23 }
 0x11e   :  { %v492_v43 = vmul.f32 %v3825_v44, %v4776_v53  ;;  %v4826_v28 = vadd.f32 %v6681_v36, %v1064_v41  ;;  %v669_v10 = vadd.f32 %v541_v20, %v277_v34  ;;  %v671_v27 = vadd.f32 %v543_v40, %v279_v50  ;;  %v4833_v18 = vpop.permute.xlu1 %60  ;;  %v6687_v34 = vld [vmem:[#allocation20_spill] sm:$0xff] }
 0x11f   :  { %v1025_v59 = vadd.f32 %v897_v62, %v4730_v31  ;;  %v1018_v22 = vadd.f32 %v890_v11, %v626_v47  ;;  %v489_v57 = vmul.f32 %v3837_v56, %v4776_v53  ;;  %v491_v15 = vmul.f32 %v3843_v58, %v4776_v53  ;;  %v4846_v62 = vpop.permute.xlu0 %1154  ;;  %v6697_v11 = vld [vmem:[#allocation59_spill] sm:$0xff] }
 0x120   :  { %6686 = vst [vmem:[#allocation81_spill] sm:$0xff] %v4826_v28  ;;  %v1020_v1 = vadd.f32 %v892_v21, %v628_v4  ;;  %v1017_v55 = vadd.f32 %v889_v5, %v625_v17  ;;  %v1019_v23 = vadd.f32 %v891_v61, %v627_v6  ;;  %v1061_v38 = vadd.f32 %v933_v63, %v669_v10  ;;  %v6691_v4 = vld [vmem:[#allocation15_spill] sm:$0xff]  ;;  %v6692_v6 = vld [vmem:[#allocation29_spill] sm:$0xff] }
 0x121   :  { %v1027_v41 = vadd.f32 %v899_v54, %v4733_v8  ;;  %v4838_v20 = vadd.f32 %v6687_v34, %v4736_v0  ;;  %v4842_v47 = vadd.f32 %v6687_v34, %v4748_v51  ;;  %v935_v31 = vmul.f32 %v6609_v42, %v4384_v3  ;;  %6690 = vst [vmem:[#allocation72_spill] sm:$0xff] %v4846_v62  ;;  %v6695_v54 = vld [vmem:[#allocation63_spill] sm:$0xff]  ;;  %v6696_v3 = vld [vmem:[#allocation62_spill] sm:$0xff]  ;;  %v6699_v61 = vld [vmem:[#allocation25_spill] sm:$0xff] }
 0x122   :  { %v618_v17 = vadd.f32 %v490_v12, %v6691_v4  ;;  %v620_v63 = vadd.f32 %v492_v43, %v6692_v6  ;;  %v4852_v8 = vadd.f32 %v6687_v34, %v4750_v46  ;;  %v4856_v0 = vadd.f32 %v6687_v34, %v4767_v35  ;;  %v4883_v43 = vpop.permute.xlu1 %738 }
 0x123   :  { %6688 = vst [vmem:[#allocation34_spill] sm:$0xff] %v4838_v20  ;;  %6689 = vst [vmem:[#allocation71_spill] sm:$0xff] %v4842_v47  ;;  %v4859_v51 = vadd.f32 %v4846_v62, %v1018_v22  ;;  %v617_v50 = vadd.f32 %v489_v57, %v6695_v54  ;;  %v619_v40 = vadd.f32 %v491_v15, %v6696_v3 }
 0x124   :  { %6693 = vst [vmem:[#allocation74_spill] sm:$0xff] %v4852_v8  ;;  %6694 = vst [vmem:[#allocation75_spill] sm:$0xff] %v4856_v0  ;;  %v270_v12 = vmul.f32 %v6533_v48, %v6697_v11  ;;  %v4866_v21 = vadd.f32 %v4846_v62, %v1020_v1  ;;  %v4869_v46 = vadd.f32 %v4846_v62, %v1017_v55  ;;  %v6701_v55 = vld [vmem:[#allocation48_spill] sm:$0xff] }
 0x125   :  { %v4872_v5 = vadd.f32 %v4846_v62, %v1019_v23  ;;  %v218_v35 = vmul.f32 %v3813_v2, %v4833_v18  ;;  %v220_v22 = vmul.f32 %v3822_v25, %v4833_v18  ;;  %v4879_v15 = vadd.f32 %v6681_v36, %v1061_v38  ;;  %6700 = vst [vmem:[#allocation21_spill] sm:$0xff] %v4883_v43 }
 0x126   :  { %v1063_v57 = vadd.f32 %v935_v31, %v671_v27  ;;  %v534_v1 = vmul.f32 %v6635_v33, %v6699_v61  ;;  %v926_v10 = vmul.f32 %v6588_v37, %v6701_v55  ;;  %v272_v23 = vmul.f32 %v6534_v13, %v6697_v11 }
 0x127   :  { %6698 = vst [vmem:[#allocation85_spill] sm:$0xff] %v4879_v15  ;;  %v536_v2 = vmul.f32 %v6639_v32, %v6699_v61  ;;  %v928_v25 = vmul.f32 %v6589_v7, %v6701_v55  ;;  %v882_v38 = vmul.f32 %v3819_v14, %v4883_v43  ;;  %v884_v27 = vmul.f32 %v3828_v39, %v4883_v43  ;;  %v4911_v20 = vpop.permute.xlu1 %1159 }
 0x128   :  { %v881_v34 = vmul.f32 %v6525_v24, %v4883_v43  ;;  %v883_v31 = vmul.f32 %v6526_v30, %v4883_v43  ;;  %v217_v4 = vmul.f32 %v3831_v49, %v4833_v18  ;;  %v4904_v6 = vadd.f32 %v6681_v36, %v1063_v57  ;;  %v6702_v57 = vld [vmem:[#allocation82_spill] sm:$0xff] }
 0x129   :  { %v662_v54 = vadd.f32 %v534_v1, %v270_v12  ;;  %v664_v3 = vadd.f32 %v536_v2, %v272_v23  ;;  %v1370_v53 = vmax.f32 %v4859_v51, 0.0  ;;  %v1010_v62 = vadd.f32 %v882_v38, %v618_v17 }
 0x12a   :  { %v1012_v15 = vadd.f32 %v884_v27, %v620_v63  ;;  %v219_v28 = vmul.f32 %v3834_v45, %v4833_v18  ;;  %v1372_v0 = vmax.f32 %v4866_v21, 0.0  ;;  %v1369_v8 = vmax.f32 %v4869_v46, 0.0  ;;  %v4917_v63 = vpop.permute.xlu0 %1149 }
 0x12b   :  { %v1054_v43 = vadd.f32 %v926_v10, %v662_v54  ;;  %v1056_v47 = vadd.f32 %v928_v25, %v664_v3  ;;  %v1009_v49 = vadd.f32 %v881_v34, %v617_v50  ;;  %v1011_v36 = vadd.f32 %v883_v31, %v619_v40  ;;  %v6703_v10 = vld [vmem:[#allocation83_spill] sm:$0xff]  ;;  %v6705_v54 = vld [vmem:[#allocation38_spill] sm:$0xff] }
 0x12c   :  { %v269_v12 = vmul.f32 %v6535_v26, %v6697_v11  ;;  %v533_v17 = vmul.f32 %v6684_v9, %v6699_v61  ;;  %v1250_v45 = vadd.f32 %v4911_v20, %v4791_v60  ;;  %v1252_v51 = vadd.f32 %v4911_v20, %v4793_v19 }
 0x12d   :  { %v1249_v21 = vadd.f32 %v4911_v20, %v1025_v59  ;;  %v1251_v46 = vadd.f32 %v4911_v20, %v1027_v41  ;;  %v1234_v50 = vadd.f32 %v4917_v63, %v1010_v62  ;;  %v1236_v40 = vadd.f32 %v4917_v63, %v1012_v15  ;;  %v4933_v41 = vpop.permute.xlu1 %338 }
 0x12e   :  { %v610_v1 = vadd.f32 %v6702_v57, %v218_v35  ;;  %v612_v23 = vadd.f32 %v6703_v10, %v220_v22  ;;  %v1378_v2 = vmax.f32 %v1250_v45, 0.0  ;;  %v1380_v25 = vmax.f32 %v1252_v51, 0.0  ;;  %6704 = vst [vmem:[#allocation86_spill] sm:$0xff] %v4933_v41  ;;  %v6711_v57 = vld [vmem:[#allocation58_spill] sm:$0xff] }
 0x12f   :  { %v1377_v38 = vmax.f32 %v1249_v21, 0.0  ;;  %v1379_v27 = vmax.f32 %v1251_v46, 0.0  ;;  %v1233_v60 = vadd.f32 %v4917_v63, %v1009_v49  ;;  %v1235_v19 = vadd.f32 %v4917_v63, %v1011_v36  ;;  %v6706_v49 = vld [vmem:[#allocation43_spill] sm:$0xff]  ;;  %v6709_v21 = vld [vmem:[#allocation26_spill] sm:$0xff] }
 0x130   :  { %v661_v34 = vadd.f32 %v533_v17, %v269_v12  ;;  %v925_v59 = vmul.f32 %v6597_v52, %v6701_v55  ;;  %1607 = vmatprep.subr.mxu0 %v1378_v2  ;;  %1768 = vmatprep.subr.mxu1 %v1380_v25  ;;  %v1371_v62 = vmax.f32 %v4872_v5, 0.0  ;;  %v271_v35 = vmul.f32 %v6580_v16, %v6697_v11  ;;  %v6707_v12 = vld [vmem:[#allocation37_spill] sm:$0xff]  ;;  %v6712_v10 = vld [vmem:[#allocation66_spill] sm:$0xff]  ;;  %v6713_v25 = vld [vmem:[#allocation67_spill] sm:$0xff] }
 0x131   :  { %v535_v22 = vmul.f32 %v6685_v29, %v6699_v61  ;;  %v927_v15 = vmul.f32 %v6609_v42, %v6701_v55  ;;  %1608 = vmatpush1.msra.mxu0 %v1377_v38  ;;  %1769 = vmatpush1.msra.mxu1 %v1379_v27  ;;  %v1362_v31 = vmax.f32 %v1234_v50, 0.0  ;;  %v609_v3 = vadd.f32 %v6705_v54, %v217_v4  ;;  %v6714_v27 = vld [vmem:[#allocation51_spill] sm:$0xff] }
 0x132   :  { %v611_v36 = vadd.f32 %v6706_v49, %v219_v28  ;;  %v474_v17 = vmul.f32 %v6707_v12, %v4933_v41  ;;  %1609 = vmatprep.subr.mxu0 %v1370_v53  ;;  %1770 = vmatprep.subr.mxu1 %v1372_v0  ;;  %v1364_v5 = vmax.f32 %v1236_v40, 0.0  ;;  %v476_v11 = vmul.f32 %v3825_v44, %v4933_v41  ;;  %v6708_v53 = vld [vmem:[#allocation10_spill] sm:$0xff]  ;;  %v4959_v50 = vpop.permute.xlu1 %734  ;;  %v6710_v40 = vld [vmem:[#allocation16_spill] sm:$0xff] }
 0x133   :  { %v1053_v61 = vadd.f32 %v925_v59, %v661_v34  ;;  %v663_v45 = vadd.f32 %v535_v22, %v271_v35  ;;  %1610 = vmatpush1.msra.mxu0 %v1369_v8  ;;  %1771 = vmatpush1.msra.mxu1 %v1371_v62  ;;  %v1361_v55 = vmax.f32 %v1233_v60, 0.0  ;;  %v1363_v51 = vmax.f32 %v1235_v19, 0.0  ;;  %v6715_v19 = vld [vmem:[#allocation12_spill] sm:$0xff]  ;;  %v6716_v59 = vld [vmem:[#allocation57_spill] sm:$0xff] }
 0x134   :  { %v473_v4 = vmul.f32 %v3837_v56, %v4933_v41  ;;  %v475_v28 = vmul.f32 %v3843_v58, %v4933_v41  ;;  %1611 = vmatprep.subr.mxu0 %v1362_v31  ;;  %1772 = vmatprep.subr.mxu1 %v1364_v5  ;;  %v4954_v46 = vadd.f32 %v6709_v21, %v1054_v43  ;;  %v6717_v35 = vld [vmem:[#allocation73_spill] sm:$0xff]  ;;  %v6755_v0 = vld [vmem:[#allocation8_spill] sm:$0xff] }
 0x135   :  { %v4957_v44 = vadd.f32 %v6709_v21, %v1056_v47  ;;  %v1055_v8 = vadd.f32 %v927_v15, %v663_v45  ;;  %1612 = vmatpush1.msra.mxu0 %v1361_v55  ;;  %1773 = vmatpush1.msra.mxu1 %v1363_v51  ;;  %v262_v58 = vmul.f32 %v6533_v48, %v6711_v57 }
 0x136   :  { %v526_v2 = vmul.f32 %v6635_v33, %v6712_v10  ;;  %v918_v43 = vmul.f32 %v6588_v37, %v6713_v25  ;;  %v874_v47 = vmul.f32 %v3819_v14, %v4959_v50  ;;  %v876_v38 = vmul.f32 %v3828_v39, %v4959_v50 }
 0x137   :  { %v602_v60 = vadd.f32 %v474_v17, %v6714_v27  ;;  %v604_v34 = vadd.f32 %v476_v11, %v6715_v19  ;;  %v601_v62 = vadd.f32 %v473_v4, %v6716_v59  ;;  %v603_v22 = vadd.f32 %v475_v28, %v6717_v35  ;;  %v4985_v17 = vpop.permute.xlu1 %730  ;;  %v5006_v19 = vpop.permute.xlu0 %1139 }
 0x138   :  { %v654_v15 = vadd.f32 %v526_v2, %v262_v58  ;;  %v264_v31 = vmul.f32 %v6534_v13, %v6711_v57  ;;  %v1002_v54 = vadd.f32 %v874_v47, %v610_v1  ;;  %v873_v49 = vmul.f32 %v6525_v24, %v4959_v50  ;;  %6718 = vst [vmem:[#allocation87_spill] sm:$0xff] %v4985_v17 }
 0x139   :  { %v875_v12 = vmul.f32 %v6526_v30, %v4959_v50  ;;  %v4983_v5 = vadd.f32 %v6709_v21, %v1053_v61  ;;  %v1004_v11 = vadd.f32 %v876_v38, %v612_v23  ;;  %v528_v55 = vmul.f32 %v6639_v32, %v6712_v10  ;;  %v6719_v23 = vld [vmem:[#allocation45_spill] sm:$0xff]  ;;  %6720 = vst [vmem:[#allocation88_spill] sm:$0xff] %v5006_v19 }
 0x13a   :  { %v1046_v45 = vadd.f32 %v918_v43, %v654_v15  ;;  %v920_v51 = vmul.f32 %v6589_v7, %v6713_v25  ;;  %v866_v1 = vmul.f32 %v3819_v14, %v4985_v17  ;;  %v868_v4 = vmul.f32 %v3828_v39, %v4985_v17 }
 0x13b   :  { %v865_v61 = vmul.f32 %v6525_v24, %v4985_v17  ;;  %v867_v28 = vmul.f32 %v6526_v30, %v4985_v17  ;;  %v656_v2 = vadd.f32 %v528_v55, %v264_v31  ;;  %v261_v43 = vmul.f32 %v6535_v26, %v6711_v57 }
 0x13c   :  { %v5000_v58 = vadd.f32 %v6719_v23, %v1046_v45  ;;  %v525_v47 = vmul.f32 %v6684_v9, %v6712_v10  ;;  %v994_v14 = vadd.f32 %v866_v1, %v602_v60  ;;  %v996_v38 = vadd.f32 %v868_v4, %v604_v34  ;;  %v5008_v15 = vpop.permute.xlu1 %1144 }
 0x13d   :  { %v993_v27 = vadd.f32 %v865_v61, %v601_v62  ;;  %v995_v39 = vadd.f32 %v867_v28, %v603_v22  ;;  %v1001_v24 = vadd.f32 %v873_v49, %v609_v3  ;;  %v1003_v59 = vadd.f32 %v875_v12, %v611_v36  ;;  %6721 = vst [vmem:[#allocation35_spill] sm:$0xff] %v5008_v15 }
 0x13e   :  { %v1048_v35 = vadd.f32 %v920_v51, %v656_v2  ;;  %v653_v30 = vadd.f32 %v525_v47, %v261_v43  ;;  %v1218_v31 = vadd.f32 %v5006_v19, %v994_v14  ;;  %v1220_v45 = vadd.f32 %v5006_v19, %v996_v38  ;;  %v6723_v38 = vld [vmem:[#allocation36_spill] sm:$0xff] }
 0x13f   :  { %v1217_v55 = vadd.f32 %v5006_v19, %v993_v27  ;;  %v917_v60 = vmul.f32 %v6597_v52, %v6713_v25  ;;  %v1226_v34 = vadd.f32 %v5008_v15, %v1002_v54  ;;  %v1228_v62 = vadd.f32 %v5008_v15, %v1004_v11 }
 0x140   :  { %v1225_v3 = vadd.f32 %v5008_v15, %v1001_v24  ;;  %v1227_v36 = vadd.f32 %v5008_v15, %v1003_v59  ;;  %v1346_v22 = vmax.f32 %v1218_v31, 0.0  ;;  %v1348_v49 = vmax.f32 %v1220_v45, 0.0  ;;  %v6725_v59 = vld [vmem:[#allocation33_spill] sm:$0xff] }
 0x141   :  { %v1219_v12 = vadd.f32 %v5006_v19, %v995_v39  ;;  %v5021_v51 = vadd.f32 %v6709_v21, %v1055_v8  ;;  %v1354_v1 = vmax.f32 %v1226_v34, 0.0  ;;  %v1356_v4 = vmax.f32 %v1228_v62, 0.0  ;;  %v6722_v8 = vld [vmem:[#allocation50_spill] sm:$0xff]  ;;  %v6754_v34 = vld [vmem:[#allocation64_spill] sm:$0xff] }
 0x142   :  { %v1353_v61 = vmax.f32 %v1225_v3, 0.0  ;;  %v1355_v28 = vmax.f32 %v1227_v36, 0.0  ;;  %v5024_v2 = vadd.f32 %v6719_v23, %v1048_v35  ;;  %v1045_v54 = vadd.f32 %v917_v60, %v653_v30  ;;  %v6726_v35 = vld [vmem:[#allocation49_spill] sm:$0xff]  ;;  %v6727_v60 = vld [vmem:[#allocation11_spill] sm:$0xff] }
 0x143   :  { %v263_v11 = vmul.f32 %v6580_v16, %v6711_v57  ;;  %v527_v43 = vmul.f32 %v6685_v29, %v6712_v10  ;;  %1613 = vmatprep.subr.mxu0 %v1354_v1  ;;  %1774 = vmatprep.subr.mxu1 %v1356_v4  ;;  %v1345_v47 = vmax.f32 %v1217_v55, 0.0  ;;  %v919_v21 = vmul.f32 %v6609_v42, %v6713_v25  ;;  %v5039_v57 = vld [vmem:[%s6244_s3] sm:$0xff] }
 0x144   :  { %v254_v14 = vmul.f32 %v6533_v48, %v6722_v8  ;;  %v518_v27 = vmul.f32 %v6635_v33, %v6723_v38  ;;  %1614 = vmatpush1.msra.mxu0 %v1353_v61  ;;  %1775 = vmatpush1.msra.mxu1 %v1355_v28  ;;  %v1347_v39 = vmax.f32 %v1219_v12, 0.0  ;;  %6724 = vst [vmem:[#allocation41_spill] sm:$0xff] %v5039_v57  ;;  %v6729_v61 = vld [vmem:[#allocation44_spill] sm:$0xff]  ;;  %v1432_v30 = vmax.f32 %v6754_v34, 0.0 }
 0x145   :  { %v5042_v10 = vadd.f32 %v6719_v23, %v1045_v54  ;;  %v655_v24 = vadd.f32 %v527_v43, %v263_v11  ;;  %v910_v25 = vmul.f32 %v6588_v37, %v6725_v59  ;;  %1615 = vmatprep.subr.mxu0 %v1346_v22  ;;  %1776 = vmatprep.subr.mxu1 %v1348_v49  ;;  %v6728_v22 = vld [vmem:[#allocation30_spill] sm:$0xff]  ;;  %v6730_v28 = vmax.f32 %v6729_v61, 0.0  ;;  %v6731_v54 = vld [vmem:[#allocation19_spill] sm:$0xff]  ;;  %v6733_v43 = vld [vmem:[#allocation68_spill] sm:$0xff] }
 0x146   :  { %v646_v31 = vadd.f32 %v518_v27, %v254_v14  ;;  %v256_v45 = vmul.f32 %v6534_v13, %v6722_v8  ;;  %v520_v55 = vmul.f32 %v6639_v32, %v6723_v38  ;;  %1616 = vmatpush1.msra.mxu0 %v1345_v47  ;;  %1777 = vmatpush1.msra.mxu1 %v1347_v39  ;;  %v6732_v11 = vmax.f32 %v6731_v54, 0.0  ;;  %v6734_v39 = vld [vmem:[#allocation22_spill] sm:$0xff]  ;;  %v6739_v61 = vld [vmem:[#allocation9_spill] sm:$0xff]  ;;  %v6742_v47 = vld [vmem:[#allocation56_spill] sm:$0xff] }
 0x147   :  { %v1047_v62 = vadd.f32 %v919_v21, %v655_v24  ;;  %v912_v3 = vmul.f32 %v6589_v7, %v6725_v59  ;;  %v253_v36 = vmul.f32 %v6535_v26, %v6722_v8  ;;  %1650 = vmatmul.mubr.f32.vlgmr.msra.gmra.mxu0 %v5039_v57  ;;  %1811 = vmatmul.mubr.f32.vlgmr.msra.gmra.mxu1 %v5039_v57  ;;  %v6735_v24 = vmax.f32 %v6734_v39, 0.0  ;;  %v6745_v39 = vld [vmem:[#allocation31_spill] sm:$0xff] }
 0x148   :  { %v1038_v12 = vadd.f32 %v910_v25, %v646_v31  ;;  %v648_v1 = vadd.f32 %v520_v55, %v256_v45  ;;  %v517_v4 = vmul.f32 %v6684_v9, %v6723_v38  ;;  %1907 = vmatprep.subr.mxu0 %v6730_v28  ;;  %2068 = vmatprep.subr.mxu1 %v6732_v11  ;;  %v6736_v25 = vld [vmem:[#allocation46_spill] sm:$0xff]  ;;  %v6743_v49 = vmax.f32 %v6742_v47, 0.0 }
 0x149   :  { %v5067_v21 = vadd.f32 %v6719_v23, %v1047_v62  ;;  %v909_v14 = vmul.f32 %v6597_v52, %v6725_v59  ;;  %v255_v27 = vmul.f32 %v6580_v16, %v6722_v8  ;;  %1908 = vmatpush1.msra.mxu0 %v6735_v24  ;;  %v6737_v31 = vmax.f32 %v6736_v25, 0.0  ;;  %v6738_v45 = vld [vmem:[#allocation70_spill] sm:$0xff]  ;;  %v6740_v62 = vld [vmem:[#allocation55_spill] sm:$0xff] }
 0x14a   :  { %v5079_v28 = vadd.f32 %v6739_v61, %v1038_v12  ;;  %v1040_v54 = vadd.f32 %v912_v3, %v648_v1  ;;  %v645_v23 = vadd.f32 %v517_v4, %v253_v36  ;;  %v6741_v11 = vmax.f32 %v6740_v62, 0.0  ;;  %v5088_v8 = vld [vmem:[%s6244_s3 + $0x8] sm:$0xff]  ;;  %v6746_v36 = vld [vmem:[#allocation61_spill] sm:$0xff] }
 0x14b   :  { %2069 = vmatpush1.msra.mxu1 %v6737_v31  ;;  %6744 = vst [vmem:[#allocation42_spill] sm:$0xff] %v5088_v8  ;;  %v519_v25 = vmul.f32 %v6685_v29, %v6723_v38  ;;  %v911_v3 = vmul.f32 %v6609_v42, %v6725_v59  ;;  %v246_v12 = vmul.f32 %v6533_v48, %v6746_v36  ;;  %v6747_v1 = vmov 0.0   ;;  %v6749_v62 = vld [vmem:[#allocation53_spill] sm:$0xff]  ;;  %v6750_v38 = vld [vmem:[#allocation7_spill] sm:$0xff]  ;;  %v6761_v4 = vld [vmem:[#allocation54_spill] sm:$0xff] }
 0x14c   :  { %1909 = vmatprep.subr.mxu0 %v6741_v11  ;;  %2070 = vmatprep.subr.mxu1 %v6743_v49  ;;  %v6748_v49 = vld [vmem:[#allocation32_spill] sm:$0xff]  ;;  %v5101_v47 = vadd.f32 %v6739_v61, %v1040_v54  ;;  %v1037_v31 = vadd.f32 %v909_v14, %v645_v23  ;;  %v510_v11 = vmul.f32 %v6635_v33, %v6749_v62  ;;  %v6751_v24 = vmax.f32 %v6750_v38, 0.0  ;;  %v6752_v59 = vld [vmem:[#allocation23_spill] sm:$0xff]  ;;  %v6756_v14 = vld [vmem:[#allocation65_spill] sm:$0xff] }
 0x14d   :  { %1655 = vmatprep.mubr.f32.mxu0 %v6747_v1  ;;  %1816 = vmatprep.mubr.f32.mxu1 %v6747_v1  ;;  %v6753_v55 = vmax.f32 %v6752_v59, 0.0  ;;  %v647_v56 = vadd.f32 %v519_v25, %v255_v27  ;;  %v902_v57 = vmul.f32 %v6588_v37, %v6755_v0  ;;  %v248_v54 = vmul.f32 %v6534_v13, %v6746_v36  ;;  %v6757_v27 = vld [vmem:[#allocation27_spill] sm:$0xff]  ;;  %v6759_v25 = vld [vmem:[#allocation13_spill] sm:$0xff]  ;;  %v6762_v23 = vld [vmem:[#allocation14_spill] sm:$0xff] }
 0x14e   :  { %1910 = vmatpush1.msra.mxu0 %v6751_v24  ;;  %1817 = vmatmul.mubr.f32.gmra.mxu1 %v5088_v8  ;;  %v5118_v24 = vadd.f32 %v6739_v61, %v1037_v31  ;;  %v638_v38 = vadd.f32 %v510_v11, %v246_v12  ;;  %v512_v34 = vmul.f32 %v6639_v32, %v6749_v62  ;;  %v6760_v59 = vmax.f32 %v6759_v25, 0.0  ;;  %v6764_v11 = vld [vmem:[#allocation24_spill] sm:$0xff] }
 0x14f   :  { %2071 = vmatpush1.msra.mxu1 %v6753_v55  ;;  %1656 = vmatmul.mubr.f32.gmra.mxu0 %v5088_v8  ;;  %v6758_v55 = vmax.f32 %v6757_v27, 0.0  ;;  %v1431_v19 = vmax.f32 %v6761_v4, 0.0  ;;  %v1039_v17 = vadd.f32 %v911_v3, %v647_v56  ;;  %v904_v8 = vmul.f32 %v6589_v7, %v6755_v0  ;;  %v6766_v27 = vld [vmem:[#allocation34_spill] sm:$0xff] }
 0x150   :  { %2072 = vmatprep.subr.mxu1 %v6760_v59  ;;  %v245_v31 = vmul.f32 %v6535_v26, %v6746_v36  ;;  %v6763_v12 = vmax.f32 %v6762_v23, 0.0  ;;  %v6765_v41 = vmax.f32 %v6764_v11, 0.0  ;;  %v1030_v15 = vadd.f32 %v902_v57, %v638_v38  ;;  %v5145_v23 = vld [vmem:[%s6244_s3 + $0x10] sm:$0xff]  ;;  %1661 = vmatprep.mubr.f32.mxu0 %v6747_v1 }
 0x151   :  { %1911 = vmatprep.subr.mxu0 %v6758_v55  ;;  %v640_v25 = vadd.f32 %v512_v34, %v248_v54  ;;  %v509_v4 = vmul.f32 %v6684_v9, %v6749_v62  ;;  %v6767_v56 = vmax.f32 %v6708_v53, 0.0  ;;  %v6768_v3 = vmax.f32 %v6710_v40, 0.0  ;;  %6769 = vst [vmem:[#allocation76_spill] sm:$0xff] %v5145_v23  ;;  %v6770_v59 = vld [vmem:[#allocation71_spill] sm:$0xff]  ;;  %1822 = vmatprep.mubr.f32.mxu1 %v6747_v1  ;;  %v6771_v40 = vld [vmem:[#allocation74_spill] sm:$0xff]  ;;  %v6781_v55 = vld [vmem:[#allocation84_spill] sm:$0xff] }
 0x152   :  { %1912 = vmatpush1.msra.mxu0 %v6763_v12  ;;  %2073 = vmatpush1.msra.mxu1 %v6765_v41  ;;  %v1424_v41 = vmax.f32 %v6770_v59, 0.0  ;;  %v5149_v12 = vadd.f32 %v6739_v61, %v1039_v17  ;;  %v901_v57 = vmul.f32 %v6597_v52, %v6755_v0  ;;  %v247_v53 = vmul.f32 %v6580_v16, %v6746_v36 }
 0x153   :  { %1913 = vmatprep.subr.mxu0 %v6767_v56  ;;  %2074 = vmatprep.subr.mxu1 %v6768_v3  ;;  %v1421_v54 = vmax.f32 %v6771_v40, 0.0  ;;  %v5159_v38 = vadd.f32 %v4911_v20, %v1030_v15  ;;  %v1032_v34 = vadd.f32 %v904_v8, %v640_v25  ;;  %v637_v11 = vadd.f32 %v509_v4, %v245_v31  ;;  %v6774_v56 = vld [vmem:[#allocation75_spill] sm:$0xff]  ;;  %v6775_v40 = vld [vmem:[#allocation6_spill] sm:$0xff]  ;;  %v6777_v25 = vld [vmem:[#allocation40_spill] sm:$0xff] }
 0x154   :  { %v6772_v17 = vmax.f32 %v6726_v35, 0.0  ;;  %v6773_v61 = vmax.f32 %v6727_v60, 0.0  ;;  %v1423_v3 = vmax.f32 %v6774_v56, 0.0  ;;  %v511_v36 = vmul.f32 %v6685_v29, %v6749_v62  ;;  %1662 = vmatmul.mubr.f32.gmra.mxu0 %v5145_v23  ;;  %1823 = vmatmul.mubr.f32.gmra.mxu1 %v5145_v23  ;;  %v6776_v35 = vld [vmem:[#allocation52_spill] sm:$0xff] }
 0x155   :  { %v903_v59 = vmul.f32 %v6609_v42, %v6755_v0  ;;  %v238_v15 = vmul.f32 %v6533_v48, %v6775_v40  ;;  %v1414_v8 = vmax.f32 %v6776_v35, 0.0  ;;  %v5176_v60 = vadd.f32 %v4911_v20, %v1032_v34  ;;  %1667 = vmatprep.mubr.f32.mxu0 %v6747_v1  ;;  %1828 = vmatprep.mubr.f32.mxu1 %v6747_v1 }
 0x156   :  { %1914 = vmatpush1.msra.mxu0 %v6772_v17  ;;  %2075 = vmatpush1.msra.mxu1 %v6773_v61  ;;  %v1029_v31 = vadd.f32 %v901_v57, %v637_v11  ;;  %v502_v4 = vmul.f32 %v6635_v33, %v6777_v25  ;;  %v6778_v62 = vmax.f32 %v6728_v22, 0.0  ;;  %v6779_v0 = vmax.f32 %v6733_v43, 0.0  ;;  %v6780_v17 = vld [vmem:[#allocation81_spill] sm:$0xff] }
 0x157   :  { %v1416_v61 = vmax.f32 %v6780_v17, 0.0  ;;  %v639_v56 = vadd.f32 %v511_v36, %v247_v53  ;;  %v894_v23 = vmul.f32 %v6588_v37, %v6781_v55  ;;  %v240_v34 = vmul.f32 %v6534_v13, %v6775_v40  ;;  %v6784_v22 = vld [vmem:[#allocation85_spill] sm:$0xff] }
 0x158   :  { %1915 = vmatprep.subr.mxu0 %v6778_v62  ;;  %2076 = vmatprep.subr.mxu1 %v6779_v0  ;;  %v6782_v57 = vmax.f32 %v6738_v45, 0.0  ;;  %v6783_v11 = vmax.f32 %v6745_v39, 0.0  ;;  %v1413_v35 = vmax.f32 %v6784_v22, 0.0  ;;  %v5195_v43 = vadd.f32 %v4911_v20, %v1029_v31  ;;  %v5204_v45 = vld [vmem:[%s6244_s3 + $0x18] sm:$0xff] }
 0x159   :  { %v630_v62 = vadd.f32 %v502_v4, %v238_v15  ;;  %v504_v53 = vmul.f32 %v6639_v32, %v6777_v25  ;;  %v6785_v36 = vmax.f32 %v6748_v49, 0.0  ;;  %v1415_v39 = vmax.f32 %v4904_v6, 0.0  ;;  %1668 = vmatmul.mubr.f32.gmra.mxu0 %v5204_v45  ;;  %1829 = vmatmul.mubr.f32.gmra.mxu1 %v5204_v45 }
 0x15a   :  { %1916 = vmatpush1.msra.mxu0 %v6782_v57  ;;  %2077 = vmatpush1.msra.mxu1 %v6783_v11  ;;  %v1031_v0 = vadd.f32 %v903_v59, %v639_v56  ;;  %v896_v31 = vmul.f32 %v6589_v7, %v6781_v55  ;;  %v237_v15 = vmul.f32 %v6535_v26, %v6775_v40  ;;  %v6786_v6 = vmax.f32 %v6756_v14, 0.0  ;;  %v6787_v14 = vld [vmem:[#allocation72_spill] sm:$0xff] }
 0x15b   :  { %1917 = vmatprep.subr.mxu0 %v6785_v36  ;;  %2078 = vmatprep.subr.mxu1 %v1432_v30  ;;  %v1406_v30 = vmax.f32 %v4954_v46, 0.0  ;;  %v1022_v49 = vadd.f32 %v894_v23, %v630_v62  ;;  %v632_v4 = vadd.f32 %v504_v53, %v240_v34  ;;  %v501_v17 = vmul.f32 %v6684_v9, %v6777_v25  ;;  %v6789_v62 = vld [vmem:[#allocation28_spill] sm:$0xff] }
 0x15c   :  { %1918 = vmatpush1.msra.mxu0 %v6786_v6  ;;  %2079 = vmatpush1.msra.mxu1 %v1431_v19  ;;  %v1408_v59 = vmax.f32 %v4957_v44, 0.0  ;;  %v5220_v56 = vadd.f32 %v4911_v20, %v1031_v0  ;;  %v893_v57 = vmul.f32 %v6597_v52, %v6781_v55  ;;  %v239_v46 = vmul.f32 %v6580_v16, %v6775_v40 }
 0x15d   :  { %v1405_v23 = vmax.f32 %v4983_v5, 0.0  ;;  %v5230_v34 = vadd.f32 %v6787_v14, %v1022_v49  ;;  %v1024_v19 = vadd.f32 %v896_v31, %v632_v4  ;;  %v629_v44 = vadd.f32 %v501_v17, %v237_v15  ;;  %2080 = vmatprep.subr.mxu1 %v1424_v41  ;;  %v6790_v41 = vld [vmem:[#allocation60_spill] sm:$0xff]  ;;  %1673 = vmatprep.mubr.f32.mxu0 %v6747_v1 }
 0x15e   :  { %v6788_v20 = vmax.f32 %v6766_v27, 0.0  ;;  %v1407_v11 = vmax.f32 %v5021_v51, 0.0  ;;  %v503_v40 = vmul.f32 %v6685_v29, %v6777_v25  ;;  %v895_v22 = vmul.f32 %v6609_v42, %v6781_v55  ;;  %2081 = vmatpush1.msra.mxu1 %v1423_v3  ;;  %v5250_v55 = vld [vmem:[%s6244_s3 + $0x20] sm:$0xff]  ;;  %1834 = vmatprep.mubr.f32.mxu1 %v6747_v1 }
 0x15f   :  { %v230_v5 = vmul.f32 %v6533_v48, %v6789_v62  ;;  %v1398_v53 = vmax.f32 %v5000_v58, 0.0  ;;  %v5243_v36 = vadd.f32 %v6787_v14, %v1024_v19  ;;  %v1021_v27 = vadd.f32 %v893_v57, %v629_v44  ;;  %2082 = vmatprep.subr.mxu1 %v1416_v61  ;;  %v6791_v3 = vld [vmem:[#allocation21_spill] sm:$0xff]  ;;  %1674 = vmatmul.mubr.f32.gmra.mxu0 %v5250_v55 }
 0x160   :  { %1919 = vmatprep.subr.mxu0 %v6788_v20  ;;  %v494_v51 = vmul.f32 %v6635_v33, %v6790_v41  ;;  %v1400_v25 = vmax.f32 %v5024_v2, 0.0  ;;  %v886_v58 = vmul.f32 %v6588_v37, %v6791_v3  ;;  %v232_v0 = vmul.f32 %v6534_v13, %v6789_v62  ;;  %2083 = vmatpush1.msra.mxu1 %v1415_v39 }
 0x161   :  { %1920 = vmatpush1.msra.mxu0 %v1421_v54  ;;  %v631_v54 = vadd.f32 %v503_v40, %v239_v46  ;;  %v5261_v61 = vadd.f32 %v6787_v14, %v1021_v27  ;;  %v496_v2 = vmul.f32 %v6639_v32, %v6790_v41  ;;  %v1399_v15 = vmax.f32 %v5067_v21, 0.0  ;;  %1835 = vmatmul.mubr.f32.gmra.mxu1 %v5250_v55 }
 0x162   :  { %1921 = vmatprep.subr.mxu0 %v1414_v8  ;;  %v1397_v8 = vmax.f32 %v5042_v10, 0.0  ;;  %v622_v31 = vadd.f32 %v494_v51, %v230_v5  ;;  %v888_v4 = vmul.f32 %v6589_v7, %v6791_v3  ;;  %v229_v17 = vmul.f32 %v6535_v26, %v6789_v62  ;;  %2084 = vmatprep.subr.mxu1 %v1408_v59 }
 0x163   :  { %1922 = vmatpush1.msra.mxu0 %v1413_v35  ;;  %v1023_v49 = vadd.f32 %v895_v22, %v631_v54  ;;  %v1390_v10 = vmax.f32 %v5079_v28, 0.0  ;;  %v624_v57 = vadd.f32 %v496_v2, %v232_v0  ;;  %v493_v35 = vmul.f32 %v6684_v9, %v6790_v41  ;;  %2085 = vmatpush1.msra.mxu1 %v1407_v11 }
 0x164   :  { %v1014_v6 = vadd.f32 %v886_v58, %v622_v31  ;;  %1923 = vmatprep.subr.mxu0 %v1406_v30  ;;  %v1392_v21 = vmax.f32 %v5101_v47, 0.0  ;;  %v885_v46 = vmul.f32 %v6597_v52, %v6791_v3  ;;  %v231_v19 = vmul.f32 %v6580_v16, %v6789_v62  ;;  %2086 = vmatprep.subr.mxu1 %v1400_v25  ;;  %v5290_v47 = vld [vmem:[%s6244_s3 + $0x28] sm:$0xff] }
 0x165   :  { %v5277_v39 = vadd.f32 %v6787_v14, %v1023_v49  ;;  %1924 = vmatpush1.msra.mxu0 %v1405_v23  ;;  %v1389_v28 = vmax.f32 %v5118_v24, 0.0  ;;  %v1016_v30 = vadd.f32 %v888_v4, %v624_v57  ;;  %v621_v59 = vadd.f32 %v493_v35, %v229_v17  ;;  %1679 = vmatprep.mubr.f32.mxu0 %v6747_v1 }
 0x166   :  { %v5285_v44 = vadd.f32 %v4917_v63, %v1014_v6  ;;  %1925 = vmatprep.subr.mxu0 %v1398_v53  ;;  %v1391_v14 = vmax.f32 %v5149_v12, 0.0  ;;  %v495_v23 = vmul.f32 %v6685_v29, %v6790_v41  ;;  %v887_v24 = vmul.f32 %v6609_v42, %v6791_v3  ;;  %1840 = vmatprep.mubr.f32.mxu1 %v6747_v1  ;;  %v6792_v12 = vld [vmem:[#allocation47_spill] sm:$0xff] }
 0x167   :  { %v222_v20 = vmul.f32 %v6533_v48, %v4833_v18  ;;  %v1382_v11 = vmax.f32 %v5159_v38, 0.0  ;;  %v5303_v40 = vadd.f32 %v4917_v63, %v1016_v30  ;;  %v1013_v22 = vadd.f32 %v885_v46, %v621_v59  ;;  %1926 = vmatpush1.msra.mxu0 %v1397_v8  ;;  %2087 = vmatpush1.msra.mxu1 %v1399_v15  ;;  %v6795_v30 = vld [vmem:[#allocation86_spill] sm:$0xff] }
 0x168   :  { %v486_v62 = vmul.f32 %v6635_v33, %v6792_v12  ;;  %v1384_v5 = vmax.f32 %v5176_v60, 0.0  ;;  %v623_v53 = vadd.f32 %v495_v23, %v231_v19  ;;  %v878_v27 = vmul.f32 %v6588_v37, %v4959_v50  ;;  %1680 = vmatmul.mubr.f32.gmra.mxu0 %v5290_v47  ;;  %1841 = vmatmul.mubr.f32.gmra.mxu1 %v5290_v47 }
 0x169   :  { %v224_v41 = vmul.f32 %v6534_v13, %v4833_v18  ;;  %v1381_v38 = vmax.f32 %v5195_v43, 0.0  ;;  %v5316_v51 = vadd.f32 %v4917_v63, %v1013_v22  ;;  %v488_v60 = vmul.f32 %v6639_v32, %v6792_v12  ;;  %1927 = vmatprep.subr.mxu0 %v1390_v10  ;;  %2088 = vmatprep.subr.mxu1 %v1392_v21  ;;  %v6793_v10 = vld [vmem:[#allocation35_spill] sm:$0xff] }
 0x16a   :  { %v614_v25 = vadd.f32 %v486_v62, %v222_v20  ;;  %v1383_v54 = vmax.f32 %v5220_v56, 0.0  ;;  %v1015_v3 = vadd.f32 %v887_v24, %v623_v53  ;;  %v880_v58 = vmul.f32 %v6589_v7, %v4959_v50  ;;  %1928 = vmatpush1.msra.mxu0 %v1389_v28  ;;  %2089 = vmatpush1.msra.mxu1 %v1391_v14  ;;  %v5331_v56 = vld [vmem:[%s6244_s3 + $0x30] sm:$0xff] }
 0x16b   :  { %v221_v0 = vmul.f32 %v6535_v26, %v4833_v18  ;;  %v1374_v43 = vmax.f32 %v5230_v34, 0.0  ;;  %v616_v31 = vadd.f32 %v488_v60, %v224_v41  ;;  %v485_v2 = vmul.f32 %v6684_v9, %v6792_v12  ;;  %1929 = vmatprep.subr.mxu0 %v1382_v11  ;;  %2090 = vmatprep.subr.mxu1 %v1384_v5  ;;  %v6794_v21 = vld [vmem:[#allocation39_spill] sm:$0xff]  ;;  %v6797_v41 = vld [vmem:[#allocation88_spill] sm:$0xff] }
 0x16c   :  { %v1006_v8 = vadd.f32 %v878_v27, %v614_v25  ;;  %v1376_v15 = vmax.f32 %v5243_v36, 0.0  ;;  %v1239_v49 = vadd.f32 %v4917_v63, %v1015_v3  ;;  %v877_v4 = vmul.f32 %v6597_v52, %v4959_v50  ;;  %1685 = vmatprep.mubr.f32.mxu0 %v6747_v1  ;;  %1846 = vmatprep.mubr.f32.mxu1 %v6747_v1  ;;  %v6796_v14 = vld [vmem:[#allocation87_spill] sm:$0xff]  ;;  %v5393_v3 = vld [vmem:[%s6244_s3 + $0x40] sm:$0xff] }
 0x16d   :  { %v223_v34 = vmul.f32 %v6580_v16, %v4833_v18  ;;  %v1373_v17 = vmax.f32 %v5261_v61, 0.0  ;;  %v1008_v57 = vadd.f32 %v880_v58, %v616_v31  ;;  %v613_v35 = vadd.f32 %v485_v2, %v221_v0  ;;  %1930 = vmatpush1.msra.mxu0 %v1381_v38  ;;  %2091 = vmatpush1.msra.mxu1 %v1383_v54  ;;  %v5406_v2 = vld [vmem:[%s6244_s3 + $0x48] sm:$0xff] }
 0x16e   :  { %v1230_v6 = vadd.f32 %v6793_v10, %v1006_v8  ;;  %v1375_v63 = vmax.f32 %v5277_v39, 0.0  ;;  %v487_v36 = vmul.f32 %v6685_v29, %v6792_v12  ;;  %v879_v18 = vmul.f32 %v6609_v42, %v4959_v50  ;;  %1686 = vmatmul.mubr.f32.gmra.mxu0 %v5331_v56  ;;  %1847 = vmatmul.mubr.f32.gmra.mxu1 %v5331_v56 }
 0x16f   :  { %v214_v46 = vmul.f32 %v6533_v48, %v6794_v21  ;;  %v1366_v61 = vmax.f32 %v5285_v44, 0.0  ;;  %v1232_v19 = vadd.f32 %v6793_v10, %v1008_v57  ;;  %v1005_v28 = vadd.f32 %v877_v4, %v613_v35  ;;  %1931 = vmatprep.subr.mxu0 %v1374_v43  ;;  %2092 = vmatprep.subr.mxu1 %v1376_v15  ;;  %v5416_v4 = vld [vmem:[%s6244_s3 + $0x50] sm:$0xff]  ;;  %v5461_v57 = vld [vmem:[%s6244_s3 + $0x78] sm:$0xff]  ;;  %v6798_v35 = vld [vmem:[#allocation41_spill] sm:$0xff] }
 0x170   :  { %v478_v39 = vmul.f32 %v6635_v33, %v6795_v30  ;;  %v1368_v59 = vmax.f32 %v5303_v40, 0.0  ;;  %v615_v50 = vadd.f32 %v487_v36, %v223_v34  ;;  %v870_v48 = vmul.f32 %v6588_v37, %v6796_v14  ;;  %1932 = vmatpush1.msra.mxu0 %v1373_v17  ;;  %2093 = vmatpush1.msra.mxu1 %v1375_v63  ;;  %v5368_v37 = vld [vmem:[%s6244_s3 + $0x38] sm:$0xff]  ;;  %v5434_v17 = vld [vmem:[%s6244_s3 + $0x60] sm:$0xff]  ;;  %v6799_v63 = vld [vmem:[#allocation42_spill] sm:$0xff] }
 0x171   :  { %v216_v23 = vmul.f32 %v6534_v13, %v6794_v21  ;;  %v1365_v44 = vmax.f32 %v5316_v51, 0.0  ;;  %v1229_v24 = vadd.f32 %v6793_v10, %v1005_v28  ;;  %v480_v33 = vmul.f32 %v6639_v32, %v6795_v30  ;;  %1933 = vmatprep.subr.mxu0 %v1366_v61  ;;  %1691 = vmatprep.mubr.f32.mxu0 %v6747_v1  ;;  %v5425_v34 = vld [vmem:[%s6244_s3 + $0x58] sm:$0xff] }
 0x172   :  { %v606_v20 = vadd.f32 %v478_v39, %v214_v46  ;;  %2094 = vmatprep.subr.mxu1 %v1368_v59  ;;  %v1367_v11 = vmax.f32 %v1239_v49, 0.0  ;;  %v1007_v40 = vadd.f32 %v879_v18, %v615_v50  ;;  %v872_v13 = vmul.f32 %v6589_v7, %v6796_v14  ;;  %1852 = vmatprep.mubr.f32.mxu1 %v6747_v1  ;;  %v6800_v36 = vld [vmem:[#allocation76_spill] sm:$0xff] }
 0x173   :  { %v213_v22 = vmul.f32 %v6535_v26, %v6794_v21  ;;  %v608_v12 = vadd.f32 %v480_v33, %v216_v23  ;;  %v477_v62 = vmul.f32 %v6684_v9, %v6795_v30  ;;  %1934 = vmatpush1.msra.mxu0 %v1365_v44  ;;  %v1358_v5 = vmax.f32 %v1230_v6, 0.0  ;;  %1853 = vmatmul.mubr.f32.gmra.mxu1 %v5368_v37  ;;  %v5452_v6 = vld [vmem:[%s6244_s3 + $0x70] sm:$0xff] }
 0x174   :  { %v998_v32 = vadd.f32 %v870_v48, %v606_v20  ;;  %2095 = vmatpush1.msra.mxu1 %v1367_v11  ;;  %v1360_v53 = vmax.f32 %v1232_v19, 0.0  ;;  %v1231_v27 = vadd.f32 %v6793_v10, %v1007_v40  ;;  %v869_v7 = vmul.f32 %v6597_v52, %v6796_v14  ;;  %1692 = vmatmul.mubr.f32.gmra.mxu0 %v5368_v37  ;;  %v5443_v10 = vld [vmem:[%s6244_s3 + $0x68] sm:$0xff] }
 0x175   :  { %v1357_v26 = vmax.f32 %v1229_v24, 0.0  ;;  %v1000_v51 = vadd.f32 %v872_v13, %v608_v12  ;;  %v605_v25 = vadd.f32 %v477_v62, %v213_v22  ;;  %1935 = vmatprep.subr.mxu0 %v1358_v5  ;;  %v215_v60 = vmul.f32 %v6580_v16, %v6794_v21  ;;  %1697 = vmatprep.mubr.f32.mxu0 %v6747_v1 }
 0x176   :  { %v1222_v38 = vadd.f32 %v6797_v41, %v998_v32  ;;  %2096 = vmatprep.subr.mxu1 %v1360_v53  ;;  %v1359_v9 = vmax.f32 %v1231_v27, 0.0  ;;  %v479_v54 = vmul.f32 %v6685_v29, %v6795_v30  ;;  %v871_v52 = vmul.f32 %v6609_v42, %v6796_v14  ;;  %1858 = vmatprep.mubr.f32.mxu1 %v6747_v1 }
 0x177   :  { %1936 = vmatpush1.msra.mxu0 %v1357_v26  ;;  %v1224_v0 = vadd.f32 %v6797_v41, %v1000_v51  ;;  %v997_v43 = vadd.f32 %v869_v7, %v605_v25  ;;  %1859 = vmatmul.mubr.f32.gmra.mxu1 %v5393_v3 }
 0x178   :  { %v1350_v58 = vmax.f32 %v1222_v38, 0.0  ;;  %2097 = vmatpush1.msra.mxu1 %v1359_v9  ;;  %v607_v16 = vadd.f32 %v479_v54, %v215_v60  ;;  %1698 = vmatmul.mubr.f32.gmra.mxu0 %v5393_v3 }
 0x179   :  { %v1352_v29 = vmax.f32 %v1224_v0, 0.0  ;;  %v1221_v42 = vadd.f32 %v6797_v41, %v997_v43  ;;  %1703 = vmatprep.mubr.f32.mxu0 %v6747_v1  ;;  %1864 = vmatprep.mubr.f32.mxu1 %v6747_v1 }
 0x17a   :  { %1937 = vmatprep.subr.mxu0 %v1350_v58  ;;  %v999_v8 = vadd.f32 %v871_v52, %v607_v16  ;;  %v5623_v16 = vpop.permute.xlu1 %1582 }
 0x17b   :  { %2098 = vmatprep.subr.mxu1 %v1352_v29  ;;  %v1349_v31 = vmax.f32 %v1221_v42, 0.0  ;;  %1865 = vmatmul.mubr.f32.gmra.mxu1 %v5406_v2  ;;  %6820 = vst [vmem:[#allocation43_spill] sm:$0xff] %v5623_v16 }
 0x17c   :  { %v1223_v15 = vadd.f32 %v6797_v41, %v999_v8  ;;  %1704 = vmatmul.mubr.f32.gmra.mxu0 %v5406_v2  ;;  %1870 = vmatprep.mubr.f32.mxu1 %v6747_v1  ;;  %v5625_v8 = vpop.permute.xlu0 %1577 }
 0x17d   :  { %1938 = vmatpush1.msra.mxu0 %v1349_v31  ;;  %1709 = vmatprep.mubr.f32.mxu0 %v6747_v1  ;;  %6821 = vst [vmem:[#allocation37_spill] sm:$0xff] %v5625_v8 }
 0x17e   :  { %v1351_v49 = vmax.f32 %v1223_v15, 0.0 }
 0x17f   :  { %1871 = vmatmul.mubr.f32.gmra.mxu1 %v5416_v4 }
 0x180   :  { %2099 = vmatpush1.msra.mxu1 %v1351_v49  ;;  %1710 = vmatmul.mubr.f32.gmra.mxu0 %v5416_v4 }
 0x181   :  { %1715 = vmatprep.mubr.f32.mxu0 %v6747_v1  ;;  %1876 = vmatprep.mubr.f32.mxu1 %v6747_v1 }
 0x183   :  { %1877 = vmatmul.mubr.f32.gmra.mxu1 %v5425_v34 }
 0x184   :  { %1716 = vmatmul.mubr.f32.gmra.mxu0 %v5425_v34  ;;  %1882 = vmatprep.mubr.f32.mxu1 %v6747_v1 }
 0x185   :  { %1721 = vmatprep.mubr.f32.mxu0 %v6747_v1 }
 0x187   :  { %1883 = vmatmul.mubr.f32.gmra.mxu1 %v5434_v17 }
 0x188   :  { %1722 = vmatmul.mubr.f32.gmra.mxu0 %v5434_v17  ;;  %1888 = vmatprep.mubr.f32.mxu1 %v6747_v1 }
 0x189   :  { %1727 = vmatprep.mubr.f32.mxu0 %v6747_v1 }
 0x18b   :  { %1889 = vmatmul.mubr.f32.gmra.mxu1 %v5443_v10 }
 0x18c   :  { %1728 = vmatmul.mubr.f32.gmra.mxu0 %v5443_v10  ;;  %1894 = vmatprep.mubr.f32.mxu1 %v6747_v1 }
 0x18d   :  { %1733 = vmatprep.mubr.f32.mxu0 %v6747_v1 }
 0x18f   :  { %1895 = vmatmul.mubr.f32.gmra.mxu1 %v5452_v6 }
 0x190   :  { %1734 = vmatmul.mubr.f32.gmra.mxu0 %v5452_v6  ;;  %1900 = vmatprep.mubr.f32.mxu1 %v6747_v1 }
 0x191   :  { %1739 = vmatprep.mubr.f32.mxu0 %v6747_v1 }
 0x193   :  { %1901 = vmatmul.mubr.f32.gmra.mxu1 %v5461_v57 }
 0x194   :  { %1740 = vmatmul.mubr.f32.gmra.mxu0 %v5461_v57  ;;  %2132 = vmatprep.mubr.f32.mxu1 %v6747_v1 }
 0x195   :  { %1971 = vmatprep.mubr.f32.mxu0 %v6747_v1 }
 0x197   :  { %2133 = vmatmul.mubr.f32.vlgmr.msra.gmra.mxu1 %v6798_v35 }
 0x198   :  { %1972 = vmatmul.mubr.f32.vlgmr.msra.gmra.mxu0 %v6798_v35  ;;  %2138 = vmatprep.mubr.f32.mxu1 %v6747_v1 }
 0x199   :  { %1977 = vmatprep.mubr.f32.mxu0 %v6747_v1 }
 0x19b   :  { %2139 = vmatmul.mubr.f32.gmra.mxu1 %v6799_v63 }
 0x19c   :  { %1978 = vmatmul.mubr.f32.gmra.mxu0 %v6799_v63  ;;  %2144 = vmatprep.mubr.f32.mxu1 %v6747_v1 }
 0x19d   :  { %1983 = vmatprep.mubr.f32.mxu0 %v6747_v1 }
 0x19f   :  { %2145 = vmatmul.mubr.f32.gmra.mxu1 %v6800_v36 }
 0x1a0   :  { %1984 = vmatmul.mubr.f32.gmra.mxu0 %v6800_v36  ;;  %2150 = vmatprep.mubr.f32.mxu1 %v6747_v1 }
 0x1a1   :  { %1989 = vmatprep.mubr.f32.mxu0 %v6747_v1 }
 0x1a3   :  { %2151 = vmatmul.mubr.f32.gmra.mxu1 %v5204_v45 }
 0x1a4   :  { %1990 = vmatmul.mubr.f32.gmra.mxu0 %v5204_v45  ;;  %2156 = vmatprep.mubr.f32.mxu1 %v6747_v1 }
 0x1a5   :  { %1995 = vmatprep.mubr.f32.mxu0 %v6747_v1 }
 0x1a7   :  { %2157 = vmatmul.mubr.f32.gmra.mxu1 %v5250_v55 }
 0x1a8   :  { %1996 = vmatmul.mubr.f32.gmra.mxu0 %v5250_v55  ;;  %2162 = vmatprep.mubr.f32.mxu1 %v6747_v1 }
 0x1a9   :  { %2001 = vmatprep.mubr.f32.mxu0 %v6747_v1 }
 0x1ab   :  { %2163 = vmatmul.mubr.f32.gmra.mxu1 %v5290_v47 }
 0x1ac   :  { %2002 = vmatmul.mubr.f32.gmra.mxu0 %v5290_v47  ;;  %2168 = vmatprep.mubr.f32.mxu1 %v6747_v1 }
 0x1ad   :  { %2007 = vmatprep.mubr.f32.mxu0 %v6747_v1 }
 0x1af   :  { %2169 = vmatmul.mubr.f32.gmra.mxu1 %v5331_v56 }
 0x1b0   :  { %2008 = vmatmul.mubr.f32.gmra.mxu0 %v5331_v56  ;;  %2174 = vmatprep.mubr.f32.mxu1 %v6747_v1 }
 0x1b1   :  { %2013 = vmatprep.mubr.f32.mxu0 %v6747_v1 }
 0x1b3   :  { %2175 = vmatmul.mubr.f32.gmra.mxu1 %v5368_v37 }
 0x1b4   :  { %2014 = vmatmul.mubr.f32.gmra.mxu0 %v5368_v37  ;;  %2180 = vmatprep.mubr.f32.mxu1 %v6747_v1 }
 0x1b5   :  { %2019 = vmatprep.mubr.f32.mxu0 %v6747_v1 }
 0x1b7   :  { %2181 = vmatmul.mubr.f32.gmra.mxu1 %v5393_v3 }
 0x1b8   :  { %2020 = vmatmul.mubr.f32.gmra.mxu0 %v5393_v3  ;;  %2186 = vmatprep.mubr.f32.mxu1 %v6747_v1 }
 0x1b9   :  { %2025 = vmatprep.mubr.f32.mxu0 %v6747_v1 }
 0x1bb   :  { %2187 = vmatmul.mubr.f32.gmra.mxu1 %v5406_v2 }
 0x1bc   :  { %2026 = vmatmul.mubr.f32.gmra.mxu0 %v5406_v2  ;;  %2192 = vmatprep.mubr.f32.mxu1 %v6747_v1 }
 0x1bd   :  { %2031 = vmatprep.mubr.f32.mxu0 %v6747_v1 }
 0x1bf   :  { %2193 = vmatmul.mubr.f32.gmra.mxu1 %v5416_v4 }
 0x1c0   :  { %2032 = vmatmul.mubr.f32.gmra.mxu0 %v5416_v4  ;;  %2198 = vmatprep.mubr.f32.mxu1 %v6747_v1  ;;  %v5627_v4 = vpop.permute.xlu1 %1572 }
 0x1c1   :  { %2037 = vmatprep.mubr.f32.mxu0 %v6747_v1 }
 0x1c3   :  { %2199 = vmatmul.mubr.f32.gmra.mxu1 %v5425_v34 }
 0x1c4   :  { %2038 = vmatmul.mubr.f32.gmra.mxu0 %v5425_v34  ;;  %2204 = vmatprep.mubr.f32.mxu1 %v6747_v1  ;;  %v5631_v36 = vpop.permute.xlu1 %1562 }
 0x1c5   :  { %2043 = vmatprep.mubr.f32.mxu0 %v6747_v1 }
 0x1c7   :  { %2205 = vmatmul.mubr.f32.gmra.mxu1 %v5434_v17 }
 0x1c8   :  { %2044 = vmatmul.mubr.f32.gmra.mxu0 %v5434_v17  ;;  %2210 = vmatprep.mubr.f32.mxu1 %v6747_v1 }
 0x1c9   :  { %2049 = vmatprep.mubr.f32.mxu0 %v6747_v1 }
 0x1cb   :  { %2211 = vmatmul.mubr.f32.gmra.mxu1 %v5443_v10 }
 0x1cc   :  { %2050 = vmatmul.mubr.f32.gmra.mxu0 %v5443_v10  ;;  %2216 = vmatprep.mubr.f32.mxu1 %v6747_v1  ;;  %v5629_v10 = vpop.permute.xlu0 %1567 }
 0x1cd   :  { %2055 = vmatprep.mubr.f32.mxu0 %v6747_v1 }
 0x1cf   :  { %2217 = vmatmul.mubr.f32.gmra.mxu1 %v5452_v6 }
 0x1d0   :  { %2056 = vmatmul.mubr.f32.gmra.mxu0 %v5452_v6  ;;  %2222 = vmatprep.mubr.f32.mxu1 %v6747_v1 }
 0x1d1   :  { %2061 = vmatprep.mubr.f32.mxu0 %v6747_v1 }
 0x1d3   :  { %2223 = vmatmul.mubr.f32.gmra.mxu1 %v5461_v57 }
 0x1d4   :  { %2062 = vmatmul.mubr.f32.gmra.mxu0 %v5461_v57  ;;  %2590 = vmatprep.mubr.f32.mxu1 %v6747_v1 }
 0x1d5   :  { %2477 = vmatprep.mubr.f32.mxu0 %v6747_v1 }
 0x207   :  { %v5531_v45 = vpop.f32.mrf.mxu0  ;;  %v5533_v55 = vpop.f32.mrf.mxu1 }
 0x208   :  { %6801 = vst [vmem:[#allocation5_spill] sm:$0xff] %v5531_v45  ;;  %6802 = vst [vmem:[#allocation77_spill] sm:$0xff] %v5533_v55  ;;  %v5633_v45 = vpop.permute.xlu0 %1557 }
 0x209   :  { %v5535_v47 = vpop.f32.mrf.mxu0  ;;  %v5537_v56 = vpop.f32.mrf.mxu1 }
 0x20a   :  { %6803 = vst [vmem:[#allocation78_spill] sm:$0xff] %v5535_v47  ;;  %6804 = vst [vmem:[#allocation79_spill] sm:$0xff] %v5537_v56 }
 0x20e   :  { %v5541_v21 = vpop.f32.mrf.mxu1 }
 0x20f   :  { %v5539_v18 = vpop.f32.mrf.mxu0  ;;  %6806 = vst [vmem:[#allocation69_spill] sm:$0xff] %v5541_v21 }
 0x210   :  { %6805 = vst [vmem:[#allocation80_spill] sm:$0xff] %v5539_v18  ;;  %v5545_v61 = vpop.f32.mrf.mxu1 }
 0x211   :  { %v5543_v46 = vpop.f32.mrf.mxu0  ;;  %6808 = vst [vmem:[#allocation18_spill] sm:$0xff] %v5545_v61 }
 0x212   :  { %6807 = vst [vmem:[#allocation17_spill] sm:$0xff] %v5543_v46 }
 0x214   :  { %v5547_v19 = vpop.f32.mrf.mxu0  ;;  %v5549_v28 = vpop.f32.mrf.mxu1 }
 0x215   :  { %6809 = vst [vmem:[#allocation20_spill] sm:$0xff] %v5547_v19  ;;  %6810 = vst [vmem:[#allocation15_spill] sm:$0xff] %v5549_v28  ;;  %v5637_v28 = vpop.permute.xlu1 %1552 }
 0x216   :  { %v5551_v30 = vpop.f32.mrf.mxu0  ;;  %v5553_v39 = vpop.f32.mrf.mxu1 }
 0x217   :  { %6811 = vst [vmem:[#allocation29_spill] sm:$0xff] %v5551_v30  ;;  %6812 = vst [vmem:[#allocation63_spill] sm:$0xff] %v5553_v39 }
 0x219   :  { %v5555_v59 = vpop.f32.mrf.mxu0  ;;  %v5557_v50 = vpop.f32.mrf.mxu1 }
 0x21a   :  { %6813 = vst [vmem:[#allocation62_spill] sm:$0xff] %v5555_v59  ;;  %6814 = vst [vmem:[#allocation59_spill] sm:$0xff] %v5557_v50 }
 0x21b   :  { %v5559_v14 = vpop.f32.mrf.mxu0  ;;  %v5561_v48 = vpop.f32.mrf.mxu1 }
 0x21c   :  { %6815 = vst [vmem:[#allocation25_spill] sm:$0xff] %v5559_v14  ;;  %6816 = vst [vmem:[#allocation48_spill] sm:$0xff] %v5561_v48 }
 0x21f   :  { %v5563_v23 = vpop.f32.mrf.mxu0 }
 0x220   :  { %6817 = vst [vmem:[#allocation82_spill] sm:$0xff] %v5563_v23 }
 0x221   :  { %v5565_v44 = vpop.f32.mrf.mxu1  ;;  %v5567_v24 = vpop.f32.mrf.mxu0 }
 0x222   :  { %6818 = vst [vmem:[#allocation83_spill] sm:$0xff] %v5565_v44 }
 0x223   :  { %v5569_v20 = vpop.f32.mrf.mxu1 }
 0x224   :  { %6819 = vst [vmem:[#allocation38_spill] sm:$0xff] %v5569_v20 }
 0x228   :  { %v5571_v33 = vpop.f32.mrf.mxu0  ;;  %v5573_v11 = vpop.f32.mrf.mxu1 }
 0x22a   :  { %v5575_v37 = vpop.f32.mrf.mxu0  ;;  %v5577_v40 = vpop.f32.mrf.mxu1 }
 0x22e   :  { %v5579_v13 = vpop.f32.mrf.mxu0  ;;  %v5581_v22 = vpop.f32.mrf.mxu1 }
 0x230   :  { %v5583_v32 = vpop.f32.mrf.mxu0  ;;  %v5585_v12 = vpop.f32.mrf.mxu1 }
 0x233   :  { %v5589_v5 = vpop.f32.mrf.mxu1 }
 0x234   :  { %v5587_v62 = vpop.f32.mrf.mxu0 }
 0x235   :  { %v5593_v27 = vpop.f32.mrf.mxu1 }
 0x236   :  { %v5591_v53 = vpop.f32.mrf.mxu0 }
 0x237   :  { %v5597_v26 = vpop.f32.mrf.mxu1 }
 0x238   :  { %v5595_v7 = vpop.f32.mrf.mxu0 }
 0x239   :  { %v5601_v38 = vpop.f32.mrf.mxu1 }
 0x23a   :  { %v5599_v41 = vpop.f32.mrf.mxu0 }
 0x23b   :  { %v5605_v25 = vpop.f32.mrf.mxu1 }
 0x23c   :  { %v5603_v51 = vpop.f32.mrf.mxu0 }
 0x23d   :  { %v5609_v60 = vpop.f32.mrf.mxu1 }
 0x23e   :  { %v5607_v9 = vpop.f32.mrf.mxu0 }
 0x23f   :  { %v5613_v52 = vpop.f32.mrf.mxu1 }
 0x240   :  { %v5611_v54 = vpop.f32.mrf.mxu0 }
 0x241   :  { %v5617_v58 = vpop.f32.mrf.mxu1 }
 0x242   :  { %v5615_v3 = vpop.f32.mrf.mxu0 }
 0x243   :  { %v5621_v43 = vpop.f32.mrf.mxu1 }
 0x244   :  { %v5619_v0 = vpop.f32.mrf.mxu0 }
 0x245   :  { %v1880_v42 = vpop.f32.mrf.mxu1 }
 0x246   :  { %v1719_v29 = vpop.f32.mrf.mxu0 }
 0x247   :  { %v1884_v2 = vpop.f32.mrf.mxu1 }
 0x248   :  { %v1723_v31 = vpop.f32.mrf.mxu0 }
 0x249   :  { %v1886_v49 = vpop.f32.mrf.mxu1 }
 0x24a   :  { %v1725_v15 = vpop.f32.mrf.mxu0 }
 0x24b   :  { %v1890_v17 = vpop.f32.mrf.mxu1 }
 0x24c   :  { %v1729_v34 = vpop.f32.mrf.mxu0 }
 0x24d   :  { %v1892_v57 = vpop.f32.mrf.mxu1 }
 0x24e   :  { %v1731_v6 = vpop.f32.mrf.mxu0 }
 0x24f   :  { %v1896_v63 = vpop.f32.mrf.mxu1  ;;  %v1732_v44 = vadd.f32 %v1731_v6, %v5627_v4 }
 0x250   :  { %v1735_v35 = vpop.f32.mrf.mxu0  ;;  %v1897_v48 = vadd.f32 %v1896_v63, %v5625_v8 }
 0x251   :  { %v1898_v55 = vpop.f32.mrf.mxu1  ;;  %v1736_v59 = vadd.f32 %v1735_v35, %v5625_v8 }
 0x252   :  { %v1737_v1 = vpop.f32.mrf.mxu0  ;;  %v1899_v39 = vadd.f32 %v1898_v55, %v5625_v8 }
 0x253   :  { %v1902_v47 = vpop.f32.mrf.mxu1  ;;  %v1738_v19 = vadd.f32 %v1737_v1, %v5625_v8  ;;  %v1893_v1 = vadd.f32 %v1892_v57, %v5627_v4  ;;  %v5667_v57 = vpop.permute.xlu1 %1542 }
 0x254   :  { %v1741_v56 = vpop.f32.mrf.mxu0  ;;  %v1903_v18 = vadd.f32 %v1902_v47, %v5623_v16  ;;  %v5649_v47 = vpop.permute.xlu0 %1547  ;;  %v2344_v6 = vmax.f32 %v1899_v39, 0.0  ;;  %v2334_v39 = vmax.f32 %v1732_v44, 0.0  ;;  %v1714_v44 = vadd.f32 %v5615_v3, %v5633_v45 }
 0x255   :  { %v1742_v21 = vadd.f32 %v1741_v56, %v5623_v16  ;;  %v1904_v46 = vpop.f32.mrf.mxu1  ;;  %v2342_v8 = vmax.f32 %v1738_v19, 0.0  ;;  %v1881_v19 = vadd.f32 %v1880_v42, %v5631_v36  ;;  %v1875_v42 = vadd.f32 %v5617_v58, %v5633_v45 }
 0x256   :  { %v1743_v61 = vpop.f32.mrf.mxu0  ;;  %v1905_v50 = vadd.f32 %v1904_v46, %v5623_v16  ;;  %v1891_v46 = vadd.f32 %v1890_v17, %v5627_v4  ;;  %v2351_v35 = vmax.f32 %v1903_v18, 0.0  ;;  %v2343_v17 = vmax.f32 %v1897_v48, 0.0 }
 0x257   :  { %v1744_v30 = vadd.f32 %v1743_v61, %v5623_v16  ;;  %v5647_v56 = vpop.f32.mrf.mxu1  ;;  %v1730_v61 = vadd.f32 %v1729_v34, %v5627_v4  ;;  %v2349_v16 = vmax.f32 %v1742_v21, 0.0  ;;  %v2341_v34 = vmax.f32 %v1736_v59, 0.0 }
 0x258   :  { %v5645_v14 = vpop.f32.mrf.mxu0  ;;  %6823 = vst [vmem:[#allocation26_spill] sm:$0xff] %v5647_v56  ;;  %v2352_v55 = vmax.f32 %v1905_v50, 0.0  ;;  %v1726_v56 = vadd.f32 %v1725_v15, %v5629_v10  ;;  %v1885_v50 = vadd.f32 %v1884_v2, %v5629_v10  ;;  %v1720_v15 = vadd.f32 %v1719_v29, %v5631_v36  ;;  %v5679_v29 = vpop.permute.xlu0 %1537 }
 0x259   :  { %6822 = vst [vmem:[#allocation10_spill] sm:$0xff] %v5645_v14  ;;  %v2350_v23 = vmax.f32 %v1744_v30, 0.0  ;;  %v5657_v63 = vpop.f32.mrf.mxu1  ;;  %v1887_v14 = vadd.f32 %v1886_v49, %v5629_v10  ;;  %v1724_v30 = vadd.f32 %v1723_v31, %v5629_v10  ;;  %v1718_v59 = vadd.f32 %v5619_v0, %v5631_v36 }
 0x25a   :  { %v5655_v20 = vpop.f32.mrf.mxu0  ;;  %6825 = vst [vmem:[#allocation58_spill] sm:$0xff] %v5657_v63  ;;  %2526 = vmatprep.subr.mxu1 %v2352_v55  ;;  %v1879_v48 = vadd.f32 %v5621_v43, %v5631_v36  ;;  %v2333_v31 = vmax.f32 %v1730_v61, 0.0  ;;  %v2335_v2 = vmax.f32 %v1891_v46, 0.0  ;;  %v2326_v0 = vmax.f32 %v1726_v56, 0.0 }
 0x25b   :  { %6824 = vst [vmem:[#allocation16_spill] sm:$0xff] %v5655_v20  ;;  %2413 = vmatprep.subr.mxu0 %v2350_v23  ;;  %v5665_v18 = vpop.f32.mrf.mxu1  ;;  %2527 = vmatpush1.msra.mxu1 %v2351_v35  ;;  %v2336_v23 = vmax.f32 %v1893_v1, 0.0  ;;  %v1712_v43 = vadd.f32 %v5611_v54, %v5633_v45  ;;  %v1873_v1 = vadd.f32 %v5613_v52, %v5633_v45  ;;  %v2325_v55 = vmax.f32 %v1724_v30, 0.0 }
 0x25c   :  { %v5663_v21 = vpop.f32.mrf.mxu0  ;;  %6827 = vst [vmem:[#allocation67_spill] sm:$0xff] %v5665_v18  ;;  %2414 = vmatpush1.msra.mxu0 %v2349_v16  ;;  %2528 = vmatprep.subr.mxu1 %v2344_v6  ;;  %v2327_v61 = vmax.f32 %v1885_v50, 0.0  ;;  %v1708_v3 = vadd.f32 %v5607_v9, %v5637_v28  ;;  %v2318_v58 = vmax.f32 %v1720_v15, 0.0  ;;  %v2320_v56 = vmax.f32 %v1881_v19, 0.0  ;;  %v5705_v9 = vpop.permute.xlu1 %1532 }
 0x25d   :  { %6826 = vst [vmem:[#allocation66_spill] sm:$0xff] %v5663_v21  ;;  %2415 = vmatprep.subr.mxu0 %v2342_v8  ;;  %v5677_v49 = vpop.f32.mrf.mxu1  ;;  %2529 = vmatpush1.msra.mxu1 %v2343_v17  ;;  %v2328_v8 = vmax.f32 %v1887_v14, 0.0  ;;  %v1869_v14 = vadd.f32 %v5609_v60, %v5637_v28  ;;  %v1706_v54 = vadd.f32 %v5603_v51, %v5637_v28  ;;  %v2317_v6 = vmax.f32 %v1718_v59, 0.0 }
 0x25e   :  { %v5675_v16 = vpop.f32.mrf.mxu0  ;;  %6829 = vst [vmem:[#allocation12_spill] sm:$0xff] %v5677_v49  ;;  %2416 = vmatpush1.msra.mxu0 %v2341_v34  ;;  %2530 = vmatprep.subr.mxu1 %v2336_v23  ;;  %v1867_v52 = vadd.f32 %v5605_v25, %v5637_v28  ;;  %v2319_v30 = vmax.f32 %v1879_v48, 0.0  ;;  %v1702_v60 = vadd.f32 %v5599_v41, %v5649_v47  ;;  %v2310_v51 = vmax.f32 %v1714_v44, 0.0  ;;  %v5719_v41 = vpop.permute.xlu0 %1527 }
 0x25f   :  { %6828 = vst [vmem:[#allocation51_spill] sm:$0xff] %v5675_v16  ;;  %2417 = vmatprep.subr.mxu0 %v2334_v39  ;;  %v5691_v35 = vpop.f32.mrf.mxu1  ;;  %2531 = vmatpush1.msra.mxu1 %v2335_v2  ;;  %v1863_v17 = vadd.f32 %v5601_v38, %v5649_v47  ;;  %v2312_v15 = vmax.f32 %v1875_v42, 0.0  ;;  %v1700_v25 = vadd.f32 %v5595_v7, %v5649_v47  ;;  %v2309_v39 = vmax.f32 %v1712_v43, 0.0 }
 0x260   :  { %v5689_v46 = vpop.f32.mrf.mxu0  ;;  %6831 = vst [vmem:[#allocation73_spill] sm:$0xff] %v5691_v35  ;;  %2418 = vmatpush1.msra.mxu0 %v2333_v31  ;;  %2532 = vmatprep.subr.mxu1 %v2328_v8  ;;  %v1861_v19 = vadd.f32 %v5597_v26, %v5649_v47  ;;  %v2311_v23 = vmax.f32 %v1873_v1, 0.0  ;;  %6836 = vst [vmem:[#allocation49_spill] sm:$0xff] %v5719_v41  ;;  %v1696_v38 = vadd.f32 %v5591_v53, %v5667_v57 }
 0x261   :  { %6830 = vst [vmem:[#allocation57_spill] sm:$0xff] %v5689_v46  ;;  %2419 = vmatprep.subr.mxu0 %v2326_v0  ;;  %v5703_v34 = vpop.f32.mrf.mxu1  ;;  %2533 = vmatpush1.msra.mxu1 %v2327_v61  ;;  %v1857_v31 = vadd.f32 %v5593_v27, %v5667_v57  ;;  %v2302_v7 = vmax.f32 %v1708_v3, 0.0  ;;  %v2304_v2 = vmax.f32 %v1869_v14, 0.0  ;;  %v1694_v26 = vadd.f32 %v5587_v62, %v5667_v57 }
 0x262   :  { %v5701_v50 = vpop.f32.mrf.mxu0  ;;  %6833 = vst [vmem:[#allocation50_spill] sm:$0xff] %v5703_v34  ;;  %2420 = vmatpush1.msra.mxu0 %v2325_v55  ;;  %2534 = vmatprep.subr.mxu1 %v2320_v56  ;;  %v1855_v44 = vadd.f32 %v5589_v5, %v5667_v57  ;;  %v2301_v42 = vmax.f32 %v1706_v54, 0.0  ;;  %v2303_v0 = vmax.f32 %v1867_v52, 0.0  ;;  %v1690_v53 = vadd.f32 %v5583_v32, %v5679_v29  ;;  %v5745_v32 = vpop.permute.xlu1 %1522 }
 0x263   :  { %6832 = vst [vmem:[#allocation45_spill] sm:$0xff] %v5701_v50  ;;  %2421 = vmatprep.subr.mxu0 %v2318_v58  ;;  %v5717_v48 = vpop.f32.mrf.mxu1  ;;  %2535 = vmatpush1.msra.mxu1 %v2319_v30  ;;  %v1851_v27 = vadd.f32 %v5585_v12, %v5679_v29  ;;  %v2294_v1 = vmax.f32 %v1702_v60, 0.0  ;;  %v2296_v55 = vmax.f32 %v1863_v17, 0.0  ;;  %v1688_v62 = vadd.f32 %v5579_v13, %v5679_v29 }
 0x264   :  { %v5715_v59 = vpop.f32.mrf.mxu0  ;;  %6835 = vst [vmem:[#allocation33_spill] sm:$0xff] %v5717_v48  ;;  %2422 = vmatpush1.msra.mxu0 %v2317_v6  ;;  %2536 = vmatprep.subr.mxu1 %v2312_v15  ;;  %v1849_v5 = vadd.f32 %v5581_v22, %v5679_v29  ;;  %v2293_v61 = vmax.f32 %v1700_v25, 0.0  ;;  %v2295_v3 = vmax.f32 %v1861_v19, 0.0  ;;  %6841 = vst [vmem:[#allocation68_spill] sm:$0xff] %v5745_v32  ;;  %v2286_v13 = vmax.f32 %v1696_v38, 0.0  ;;  %v6877_v48 = vld [vmem:[#allocation37_spill] sm:$0xff] }
 0x265   :  { %6834 = vst [vmem:[#allocation36_spill] sm:$0xff] %v5715_v59  ;;  %2423 = vmatprep.subr.mxu0 %v2310_v51  ;;  %v5731_v43 = vpop.f32.mrf.mxu1  ;;  %2537 = vmatpush1.msra.mxu1 %v2311_v23  ;;  %v1684_v12 = vadd.f32 %v5575_v37, %v5705_v9  ;;  %v1845_v56 = vadd.f32 %v5577_v40, %v5705_v9  ;;  %v2288_v54 = vmax.f32 %v1857_v31, 0.0  ;;  %v2285_v6 = vmax.f32 %v1694_v26, 0.0  ;;  %v5759_v37 = vpop.permute.xlu0 %1517  ;;  %v6845_v51 = vld [vmem:[#allocation38_spill] sm:$0xff] }
 0x266   :  { %v5729_v8 = vpop.f32.mrf.mxu0  ;;  %6838 = vst [vmem:[#allocation30_spill] sm:$0xff] %v5731_v43  ;;  %2424 = vmatpush1.msra.mxu0 %v2309_v39  ;;  %2538 = vmatprep.subr.mxu1 %v2304_v2  ;;  %v1682_v22 = vadd.f32 %v5571_v33, %v5705_v9  ;;  %v1843_v52 = vadd.f32 %v5573_v11, %v5705_v9  ;;  %v2287_v30 = vmax.f32 %v1855_v44, 0.0  ;;  %6844 = vst [vmem:[#allocation70_spill] sm:$0xff] %v5759_v37  ;;  %v6846_v11 = vld [vmem:[#allocation82_spill] sm:$0xff]  ;;  %v6847_v39 = vld [vmem:[#allocation83_spill] sm:$0xff] }
 0x267   :  { %6837 = vst [vmem:[#allocation11_spill] sm:$0xff] %v5729_v8  ;;  %2425 = vmatprep.subr.mxu0 %v2302_v7  ;;  %v5743_v58 = vpop.f32.mrf.mxu1  ;;  %2539 = vmatpush1.msra.mxu1 %v2303_v0  ;;  %v1678_v40 = vadd.f32 %v5567_v24, %v5719_v41  ;;  %v1839_v15 = vadd.f32 %v6845_v51, %v5719_v41  ;;  %v2278_v33 = vmax.f32 %v1690_v53, 0.0  ;;  %v2280_v25 = vmax.f32 %v1851_v27, 0.0  ;;  %v6850_v24 = vld [vmem:[#allocation25_spill] sm:$0xff]  ;;  %v6851_v44 = vld [vmem:[#allocation48_spill] sm:$0xff]  ;;  %v6852_v27 = vld [vmem:[#allocation62_spill] sm:$0xff] }
 0x268   :  { %v5741_v14 = vpop.f32.mrf.mxu0  ;;  %6840 = vst [vmem:[#allocation19_spill] sm:$0xff] %v5743_v58  ;;  %2426 = vmatpush1.msra.mxu0 %v2301_v42  ;;  %2540 = vmatprep.subr.mxu1 %v2296_v55  ;;  %v1676_v19 = vadd.f32 %v6846_v11, %v5719_v41  ;;  %v1837_v23 = vadd.f32 %v6847_v39, %v5719_v41  ;;  %v2277_v38 = vmax.f32 %v1688_v62, 0.0  ;;  %v2279_v31 = vmax.f32 %v1849_v5, 0.0  ;;  %v6853_v55 = vld [vmem:[#allocation59_spill] sm:$0xff] }
 0x269   :  { %6839 = vst [vmem:[#allocation44_spill] sm:$0xff] %v5741_v14  ;;  %2427 = vmatprep.subr.mxu0 %v2294_v1  ;;  %v5757_v17 = vpop.f32.mrf.mxu1  ;;  %2541 = vmatpush1.msra.mxu1 %v2295_v3  ;;  %v1672_v26 = vadd.f32 %v6850_v24, %v5745_v32  ;;  %v1833_v42 = vadd.f32 %v6851_v44, %v5745_v32  ;;  %v2270_v0 = vmax.f32 %v1684_v12, 0.0  ;;  %v2272_v53 = vmax.f32 %v1845_v56, 0.0  ;;  %v6855_v12 = vld [vmem:[#allocation29_spill] sm:$0xff]  ;;  %v5799_v44 = vpop.permute.xlu0 %1507  ;;  %v6878_v43 = vld [vmem:[#allocation43_spill] sm:$0xff] }
 0x26a   :  { %v5755_v60 = vpop.f32.mrf.mxu0  ;;  %6843 = vst [vmem:[#allocation46_spill] sm:$0xff] %v5757_v17  ;;  %2428 = vmatpush1.msra.mxu0 %v2293_v61  ;;  %2542 = vmatprep.subr.mxu1 %v2288_v54  ;;  %v1670_v1 = vadd.f32 %v6852_v27, %v5745_v32  ;;  %v1831_v62 = vadd.f32 %v6853_v55, %v5745_v32  ;;  %v2269_v5 = vmax.f32 %v1682_v22, 0.0  ;;  %v2271_v61 = vmax.f32 %v1843_v52, 0.0  ;;  %v5785_v54 = vpop.permute.xlu1 %1512  ;;  %v6857_v22 = vld [vmem:[#allocation20_spill] sm:$0xff] }
 0x26b   :  { %6842 = vst [vmem:[#allocation22_spill] sm:$0xff] %v5755_v60  ;;  %2429 = vmatprep.subr.mxu0 %v2286_v13  ;;  %v5771_v2 = vpop.f32.mrf.mxu1  ;;  %2543 = vmatpush1.msra.mxu1 %v2287_v30  ;;  %6854 = vst [vmem:[#allocation56_spill] sm:$0xff] %v5785_v54  ;;  %v1666_v56 = vadd.f32 %v6855_v12, %v5759_v37  ;;  %v2262_v51 = vmax.f32 %v1678_v40, 0.0  ;;  %v1664_v52 = vadd.f32 %v6857_v22, %v5759_v37  ;;  %v6860_v40 = vld [vmem:[#allocation17_spill] sm:$0xff] }
 0x26c   :  { %v5769_v7 = vpop.f32.mrf.mxu0  ;;  %6849 = vst [vmem:[#allocation55_spill] sm:$0xff] %v5771_v2  ;;  %2430 = vmatpush1.msra.mxu0 %v2285_v6  ;;  %2544 = vmatprep.subr.mxu1 %v2280_v25  ;;  %v6856_v6 = vld [vmem:[#allocation63_spill] sm:$0xff]  ;;  %v2261_v39 = vmax.f32 %v1676_v19, 0.0  ;;  %6859 = vst [vmem:[#allocation31_spill] sm:$0xff] %v5799_v44  ;;  %v2254_v27 = vmax.f32 %v1672_v26, 0.0  ;;  %v2256_v55 = vmax.f32 %v1833_v42, 0.0 }
 0x26d   :  { %6848 = vst [vmem:[#allocation9_spill] sm:$0xff] %v5769_v7  ;;  %2431 = vmatprep.subr.mxu0 %v2278_v33  ;;  %v5783_v13 = vpop.f32.mrf.mxu1  ;;  %2545 = vmatpush1.msra.mxu1 %v2279_v31  ;;  %v1827_v30 = vadd.f32 %v6856_v6, %v5759_v37  ;;  %v2264_v33 = vmax.f32 %v1839_v15, 0.0  ;;  %v6858_v25 = vld [vmem:[#allocation15_spill] sm:$0xff]  ;;  %v1660_v15 = vadd.f32 %v6860_v40, %v5785_v54  ;;  %v6862_v19 = vld [vmem:[#allocation80_spill] sm:$0xff]  ;;  %v6863_v12 = vld [vmem:[#allocation69_spill] sm:$0xff]  ;;  %v2245_v63 = vmax.f32 %v1664_v52, 0.0 }
 0x26e   :  { %v5781_v3 = vpop.f32.mrf.mxu0  ;;  %2432 = vmatpush1.msra.mxu0 %v2277_v38  ;;  %2546 = vmatprep.subr.mxu1 %v2272_v53  ;;  %v1825_v11 = vadd.f32 %v6858_v25, %v5759_v37  ;;  %v2263_v38 = vmax.f32 %v1837_v23, 0.0  ;;  %v1658_v23 = vadd.f32 %v6862_v19, %v5785_v54  ;;  %v1819_v6 = vadd.f32 %v6863_v12, %v5785_v54  ;;  %v6864_v40 = vld [vmem:[#allocation78_spill] sm:$0xff]  ;;  %v6865_v42 = vld [vmem:[#allocation79_spill] sm:$0xff]  ;;  %v6866_v19 = vld [vmem:[#allocation5_spill] sm:$0xff] }
 0x26f   :  { %2433 = vmatprep.subr.mxu0 %v2270_v0  ;;  %v5797_v24 = vpop.f32.mrf.mxu1  ;;  %2547 = vmatpush1.msra.mxu1 %v2271_v61  ;;  %v6861_v0 = vld [vmem:[#allocation18_spill] sm:$0xff]  ;;  %v2255_v61 = vmax.f32 %v1831_v62, 0.0  ;;  %v1654_v26 = vadd.f32 %v6864_v40, %v5799_v44  ;;  %v6867_v62 = vld [vmem:[#allocation77_spill] sm:$0xff]  ;;  %v2238_v40 = vmax.f32 %v1660_v15, 0.0 }
 0x270   :  { %v5795_v31 = vpop.f32.mrf.mxu0  ;;  %2434 = vmatpush1.msra.mxu0 %v2269_v5  ;;  %v1821_v53 = vadd.f32 %v6861_v0, %v5785_v54  ;;  %2548 = vmatprep.subr.mxu1 %v2264_v33  ;;  %v2253_v5 = vmax.f32 %v1670_v1, 0.0  ;;  %v2246_v33 = vmax.f32 %v1666_v56, 0.0  ;;  %v2248_v0 = vmax.f32 %v1827_v30, 0.0 }
 0x271   :  { %2435 = vmatprep.subr.mxu0 %v2262_v51  ;;  %v5811_v25 = vpop.f32.mrf.mxu1  ;;  %2549 = vmatpush1.msra.mxu1 %v2263_v38  ;;  %v1815_v51 = vadd.f32 %v6865_v42, %v5799_v44  ;;  %v1652_v1 = vadd.f32 %v6866_v19, %v5799_v44  ;;  %v1813_v12 = vadd.f32 %v6867_v62, %v5799_v44  ;;  %v2247_v20 = vmax.f32 %v1825_v11, 0.0 }
 0x272   :  { %v5809_v22 = vpop.f32.mrf.mxu0  ;;  %2436 = vmatpush1.msra.mxu0 %v2261_v39  ;;  %2550 = vmatprep.subr.mxu1 %v2256_v55  ;;  %v2240_v42 = vmax.f32 %v1821_v53, 0.0  ;;  %v2237_v56 = vmax.f32 %v1658_v23, 0.0  ;;  %v2239_v30 = vmax.f32 %v1819_v6, 0.0  ;;  %v2230_v52 = vmax.f32 %v1654_v26, 0.0  ;;  %v5836_v53 = vld [vmem:[%s6246_s5] sm:$0xff]  ;;  %v5853_v26 = vld [vmem:[%s6246_s5 + $0x8] sm:$0xff] }
 0x273   :  { %2437 = vmatprep.subr.mxu0 %v2254_v27  ;;  %v5823_v38 = vpop.f32.mrf.mxu1  ;;  %2551 = vmatpush1.msra.mxu1 %v2255_v61  ;;  %v2232_v11 = vmax.f32 %v1815_v51, 0.0  ;;  %v2229_v19 = vmax.f32 %v1652_v1, 0.0  ;;  %v2231_v62 = vmax.f32 %v1813_v12, 0.0  ;;  %6868 = vst [vmem:[#allocation61_spill] sm:$0xff] %v5836_v53  ;;  %v6869_v61 = vmov 0.0   ;;  %6870 = vst [vmem:[#allocation32_spill] sm:$0xff] %v5853_v26 }
 0x274   :  { %v5821_v39 = vpop.f32.mrf.mxu0  ;;  %2438 = vmatpush1.msra.mxu0 %v2253_v5  ;;  %2552 = vmatprep.subr.mxu1 %v2248_v0  ;;  %v5870_v12 = vld [vmem:[%s6246_s5 + $0x10] sm:$0xff] }
 0x275   :  { %2439 = vmatprep.subr.mxu0 %v2246_v33  ;;  %v5827_v55 = vpop.f32.mrf.mxu1  ;;  %2553 = vmatpush1.msra.mxu1 %v2247_v20  ;;  %6871 = vst [vmem:[#allocation53_spill] sm:$0xff] %v5870_v12 }
 0x276   :  { %v5825_v27 = vpop.f32.mrf.mxu0  ;;  %2440 = vmatpush1.msra.mxu0 %v2245_v63  ;;  %2554 = vmatprep.subr.mxu1 %v2240_v42 }
 0x277   :  { %2441 = vmatprep.subr.mxu0 %v2238_v40  ;;  %v5831_v15 = vpop.f32.mrf.mxu1  ;;  %2555 = vmatpush1.msra.mxu1 %v2239_v30 }
 0x278   :  { %v5829_v5 = vpop.f32.mrf.mxu0  ;;  %2442 = vmatpush1.msra.mxu0 %v2237_v56  ;;  %2556 = vmatprep.subr.mxu1 %v2232_v11 }
 0x279   :  { %2443 = vmatprep.subr.mxu0 %v2230_v52  ;;  %v5840_v63 = vpop.f32.mrf.mxu1  ;;  %2557 = vmatpush1.msra.mxu1 %v2231_v62  ;;  %v5887_v52 = vld [vmem:[%s6246_s5 + $0x18] sm:$0xff] }
 0x27a   :  { %v5838_v20 = vpop.f32.mrf.mxu0  ;;  %2444 = vmatpush1.msra.mxu0 %v2229_v19  ;;  %2591 = vmatmul.mubr.f32.vlgmr.msra.gmra.mxu1 %v5836_v53  ;;  %6872 = vst [vmem:[#allocation7_spill] sm:$0xff] %v5887_v52 }
 0x27b   :  { %2478 = vmatmul.mubr.f32.vlgmr.msra.gmra.mxu0 %v5836_v53  ;;  %v5846_v6 = vpop.f32.mrf.mxu1  ;;  %2596 = vmatprep.mubr.f32.mxu1 %v6869_v61 }
 0x27c   :  { %v5844_v23 = vpop.f32.mrf.mxu0  ;;  %2483 = vmatprep.mubr.f32.mxu0 %v6869_v61 }
 0x27d   :  { %v5857_v33 = vpop.f32.mrf.mxu1 }
 0x27e   :  { %v5855_v51 = vpop.f32.mrf.mxu0  ;;  %2597 = vmatmul.mubr.f32.gmra.mxu1 %v5853_v26 }
 0x27f   :  { %2484 = vmatmul.mubr.f32.gmra.mxu0 %v5853_v26  ;;  %v5863_v1 = vpop.f32.mrf.mxu1  ;;  %2602 = vmatprep.mubr.f32.mxu1 %v6869_v61  ;;  %v5900_v26 = vld [vmem:[%s6246_s5 + $0x20] sm:$0xff] }
 0x280   :  { %v5861_v0 = vpop.f32.mrf.mxu0  ;;  %2489 = vmatprep.mubr.f32.mxu0 %v6869_v61  ;;  %6873 = vst [vmem:[#allocation23_spill] sm:$0xff] %v5900_v26 }
 0x281   :  { %v5874_v42 = vpop.f32.mrf.mxu1 }
 0x282   :  { %v5872_v40 = vpop.f32.mrf.mxu0  ;;  %2603 = vmatmul.mubr.f32.gmra.mxu1 %v5870_v12 }
 0x283   :  { %2490 = vmatmul.mubr.f32.gmra.mxu0 %v5870_v12  ;;  %v5880_v30 = vpop.f32.mrf.mxu1  ;;  %2608 = vmatprep.mubr.f32.mxu1 %v6869_v61 }
 0x284   :  { %v5878_v56 = vpop.f32.mrf.mxu0  ;;  %2495 = vmatprep.mubr.f32.mxu0 %v6869_v61 }
 0x285   :  { %v5891_v19 = vpop.f32.mrf.mxu1 }
 0x286   :  { %v5889_v11 = vpop.f32.mrf.mxu0  ;;  %2609 = vmatmul.mubr.f32.gmra.mxu1 %v5887_v52 }
 0x287   :  { %2496 = vmatmul.mubr.f32.gmra.mxu0 %v5887_v52  ;;  %v2206_v12 = vpop.f32.mrf.mxu1  ;;  %2614 = vmatprep.mubr.f32.mxu1 %v6869_v61  ;;  %v5909_v52 = vld [vmem:[%s6246_s5 + $0x28] sm:$0xff] }
 0x288   :  { %v2045_v62 = vpop.f32.mrf.mxu0  ;;  %2501 = vmatprep.mubr.f32.mxu0 %v6869_v61  ;;  %6874 = vst [vmem:[#allocation64_spill] sm:$0xff] %v5909_v52 }
 0x289   :  { %v2208_v44 = vpop.f32.mrf.mxu1 }
 0x28a   :  { %v2047_v53 = vpop.f32.mrf.mxu0  ;;  %2615 = vmatmul.mubr.f32.gmra.mxu1 %v5900_v26 }
 0x28b   :  { %2502 = vmatmul.mubr.f32.gmra.mxu0 %v5900_v26  ;;  %v2212_v21 = vpop.f32.mrf.mxu1  ;;  %2620 = vmatprep.mubr.f32.mxu1 %v6869_v61  ;;  %v5918_v26 = vld [vmem:[%s6246_s5 + $0x30] sm:$0xff] }
 0x28c   :  { %v2051_v18 = vpop.f32.mrf.mxu0  ;;  %2507 = vmatprep.mubr.f32.mxu0 %v6869_v61  ;;  %6875 = vst [vmem:[#allocation8_spill] sm:$0xff] %v5918_v26 }
 0x28d   :  { %v2214_v16 = vpop.f32.mrf.mxu1 }
 0x28e   :  { %v2053_v49 = vpop.f32.mrf.mxu0  ;;  %2621 = vmatmul.mubr.f32.gmra.mxu1 %v5909_v52 }
 0x28f   :  { %2508 = vmatmul.mubr.f32.gmra.mxu0 %v5909_v52  ;;  %v2218_v35 = vpop.f32.mrf.mxu1  ;;  %2626 = vmatprep.mubr.f32.mxu1 %v6869_v61  ;;  %v5927_v52 = vld [vmem:[%s6246_s5 + $0x38] sm:$0xff] }
 0x290   :  { %v2057_v54 = vpop.f32.mrf.mxu0  ;;  %2513 = vmatprep.mubr.f32.mxu0 %v6869_v61  ;;  %6876 = vst [vmem:[#allocation65_spill] sm:$0xff] %v5927_v52 }
 0x291   :  { %v2220_v34 = vpop.f32.mrf.mxu1  ;;  %v2058_v41 = vadd.f32 %v2057_v54, %v6877_v48  ;;  %v2048_v54 = vadd.f32 %v2047_v53, %v5629_v10 }
 0x292   :  { %v2059_v46 = vpop.f32.mrf.mxu0  ;;  %2627 = vmatmul.mubr.f32.gmra.mxu1 %v5918_v26 }
 0x293   :  { %2514 = vmatmul.mubr.f32.gmra.mxu0 %v5918_v26  ;;  %v2224_v37 = vpop.f32.mrf.mxu1  ;;  %2632 = vmatprep.mubr.f32.mxu1 %v6869_v61  ;;  %v2060_v59 = vadd.f32 %v2059_v46, %v6877_v48  ;;  %v2221_v26 = vadd.f32 %v2220_v34, %v6877_v48  ;;  %v2219_v46 = vadd.f32 %v2218_v35, %v6877_v48  ;;  %v2330_v53 = vmax.f32 %v2048_v54, 0.0 }
 0x294   :  { %v2063_v50 = vpop.f32.mrf.mxu0  ;;  %2519 = vmatprep.mubr.f32.mxu0 %v6869_v61  ;;  %v2225_v32 = vadd.f32 %v2224_v37, %v6878_v43  ;;  %v2215_v34 = vadd.f32 %v2214_v16, %v5627_v4  ;;  %v2209_v35 = vadd.f32 %v2208_v44, %v5629_v10  ;;  %v2207_v16 = vadd.f32 %v2206_v12, %v5629_v10 }
 0x295   :  { %v2064_v8 = vadd.f32 %v2063_v50, %v6878_v43  ;;  %v2226_v14 = vpop.f32.mrf.mxu1  ;;  %v2054_v50 = vadd.f32 %v2053_v49, %v5627_v4  ;;  %v2346_v48 = vmax.f32 %v2060_v59, 0.0  ;;  %v2348_v7 = vmax.f32 %v2221_v26, 0.0 }
 0x296   :  { %v2065_v58 = vpop.f32.mrf.mxu0  ;;  %v2227_v60 = vadd.f32 %v2226_v14, %v6878_v43  ;;  %2633 = vmatmul.mubr.f32.gmra.mxu1 %v5927_v52  ;;  %v2213_v14 = vadd.f32 %v2212_v21, %v5627_v4  ;;  %v2046_v49 = vadd.f32 %v2045_v62, %v5629_v10  ;;  %v2203_v21 = vadd.f32 %v5891_v19, %v5631_v36 }
 0x297   :  { %v2066_v17 = vadd.f32 %v2065_v58, %v6878_v43  ;;  %2520 = vmatmul.mubr.f32.gmra.mxu0 %v5927_v52  ;;  %2816 = vmatprep.mubr.f32.mxu1 %v6869_v61  ;;  %v2052_v43 = vadd.f32 %v2051_v18, %v5627_v4  ;;  %v2353_v2 = vmax.f32 %v2064_v8, 0.0  ;;  %v2355_v52 = vmax.f32 %v2225_v32, 0.0 }
 0x298   :  { %2703 = vmatprep.mubr.f32.mxu0 %v6869_v61  ;;  %v2356_v58 = vmax.f32 %v2227_v60, 0.0  ;;  %v2347_v60 = vmax.f32 %v2219_v46, 0.0  ;;  %v2042_v4 = vadd.f32 %v5889_v11, %v5631_v36  ;;  %v2338_v18 = vmax.f32 %v2054_v50, 0.0 }
 0x299   :  { %v2354_v37 = vmax.f32 %v2066_v17, 0.0  ;;  %v2345_v17 = vmax.f32 %v2058_v41, 0.0  ;;  %v2340_v8 = vmax.f32 %v2215_v34, 0.0  ;;  %v2040_v59 = vadd.f32 %v5878_v56, %v5631_v36 }
 0x29a   :  { %2752 = vmatprep.subr.mxu1 %v2356_v58  ;;  %v2201_v10 = vadd.f32 %v5880_v30, %v5631_v36  ;;  %v2337_v41 = vmax.f32 %v2052_v43, 0.0  ;;  %v2339_v32 = vmax.f32 %v2213_v14, 0.0  ;;  %v2197_v44 = vadd.f32 %v5874_v42, %v5633_v45 }
 0x29b   :  { %2639 = vmatprep.subr.mxu0 %v2354_v37  ;;  %2753 = vmatpush1.msra.mxu1 %v2355_v52  ;;  %v2332_v26 = vmax.f32 %v2209_v35, 0.0  ;;  %v2195_v36 = vadd.f32 %v5863_v1, %v5633_v45  ;;  %v2329_v12 = vmax.f32 %v2046_v49, 0.0  ;;  %v2331_v56 = vmax.f32 %v2207_v16, 0.0  ;;  %v6880_v49 = vld [vmem:[#allocation55_spill] sm:$0xff] }
 0x29c   :  { %2640 = vmatpush1.msra.mxu0 %v2353_v2  ;;  %2754 = vmatprep.subr.mxu1 %v2348_v7  ;;  %v2036_v2 = vadd.f32 %v5872_v40, %v5633_v45  ;;  %v2034_v7 = vadd.f32 %v5861_v0, %v5633_v45  ;;  %v2030_v40 = vadd.f32 %v5855_v51, %v5637_v28  ;;  %v2322_v30 = vmax.f32 %v2042_v4, 0.0  ;;  %v6883_v4 = vld [vmem:[#allocation46_spill] sm:$0xff] }
 0x29d   :  { %2641 = vmatprep.subr.mxu0 %v2346_v48  ;;  %2755 = vmatpush1.msra.mxu1 %v2347_v60  ;;  %v2191_v42 = vadd.f32 %v5857_v33, %v5637_v28  ;;  %v2324_v52 = vmax.f32 %v2203_v21, 0.0  ;;  %v2028_v0 = vadd.f32 %v5844_v23, %v5637_v28  ;;  %v2189_v45 = vadd.f32 %v5846_v6, %v5637_v28  ;;  %v6879_v48 = vld [vmem:[#allocation9_spill] sm:$0xff]  ;;  %v6882_v60 = vld [vmem:[#allocation22_spill] sm:$0xff] }
 0x29e   :  { %2642 = vmatpush1.msra.mxu0 %v2345_v17  ;;  %2756 = vmatprep.subr.mxu1 %v2340_v8  ;;  %v2321_v1 = vmax.f32 %v2040_v59, 0.0  ;;  %v2323_v11 = vmax.f32 %v2201_v10, 0.0  ;;  %v2024_v51 = vadd.f32 %v5838_v20, %v5649_v47  ;;  %v2185_v33 = vadd.f32 %v5840_v63, %v5649_v47  ;;  %v6881_v17 = vld [vmem:[#allocation49_spill] sm:$0xff]  ;;  %v6884_v8 = vld [vmem:[#allocation44_spill] sm:$0xff]  ;;  %v6885_v10 = vld [vmem:[#allocation19_spill] sm:$0xff] }
 0x29f   :  { %2643 = vmatprep.subr.mxu0 %v2338_v18  ;;  %2757 = vmatpush1.msra.mxu1 %v2339_v32  ;;  %v2314_v19 = vmax.f32 %v2036_v2, 0.0  ;;  %v2316_v62 = vmax.f32 %v2197_v44, 0.0  ;;  %v2022_v23 = vadd.f32 %v5829_v5, %v5649_v47  ;;  %v2183_v28 = vadd.f32 %v5831_v15, %v5649_v47  ;;  %v6886_v2 = vld [vmem:[#allocation68_spill] sm:$0xff]  ;;  %v6887_v44 = vld [vmem:[#allocation11_spill] sm:$0xff] }
 0x2a0   :  { %2644 = vmatpush1.msra.mxu0 %v2337_v41  ;;  %2758 = vmatprep.subr.mxu1 %v2332_v26  ;;  %v2313_v6 = vmax.f32 %v2034_v7, 0.0  ;;  %v2315_v46 = vmax.f32 %v2195_v36, 0.0  ;;  %v2018_v20 = vadd.f32 %v5825_v27, %v5667_v57  ;;  %v2179_v63 = vadd.f32 %v5827_v55, %v5667_v57  ;;  %v6888_v26 = vld [vmem:[#allocation30_spill] sm:$0xff] }
 0x2a1   :  { %2645 = vmatprep.subr.mxu0 %v2330_v53  ;;  %2759 = vmatpush1.msra.mxu1 %v2331_v56  ;;  %v2306_v50 = vmax.f32 %v2030_v40, 0.0  ;;  %v2308_v34 = vmax.f32 %v2191_v42, 0.0  ;;  %v2016_v5 = vadd.f32 %v5821_v39, %v5667_v57  ;;  %v2177_v47 = vadd.f32 %v5823_v38, %v5667_v57  ;;  %v6889_v56 = vld [vmem:[#allocation36_spill] sm:$0xff]  ;;  %v6890_v42 = vld [vmem:[#allocation33_spill] sm:$0xff] }
 0x2a2   :  { %2646 = vmatpush1.msra.mxu0 %v2329_v12  ;;  %2760 = vmatprep.subr.mxu1 %v2324_v52  ;;  %v2305_v15 = vmax.f32 %v2028_v0, 0.0  ;;  %v2307_v37 = vmax.f32 %v2189_v45, 0.0  ;;  %v2012_v27 = vadd.f32 %v5809_v22, %v5679_v29  ;;  %v2173_v55 = vadd.f32 %v5811_v25, %v5679_v29  ;;  %v6891_v45 = vld [vmem:[#allocation70_spill] sm:$0xff] }
 0x2a3   :  { %2647 = vmatprep.subr.mxu0 %v2322_v30  ;;  %2761 = vmatpush1.msra.mxu1 %v2323_v11  ;;  %v2298_v58 = vmax.f32 %v2024_v51, 0.0  ;;  %v2300_v43 = vmax.f32 %v2185_v33, 0.0  ;;  %v2010_v39 = vadd.f32 %v5795_v31, %v5679_v29  ;;  %v2171_v57 = vadd.f32 %v5797_v24, %v5679_v29  ;;  %v6893_v51 = vld [vmem:[#allocation50_spill] sm:$0xff] }
 0x2a4   :  { %2648 = vmatpush1.msra.mxu0 %v2321_v1  ;;  %2762 = vmatprep.subr.mxu1 %v2316_v62  ;;  %v2297_v38 = vmax.f32 %v2022_v23, 0.0  ;;  %v2299_v14 = vmax.f32 %v2183_v28, 0.0  ;;  %v2006_v22 = vadd.f32 %v5781_v3, %v5705_v9  ;;  %v2167_v25 = vadd.f32 %v5783_v13, %v5705_v9  ;;  %v6892_v1 = vld [vmem:[#allocation45_spill] sm:$0xff] }
 0x2a5   :  { %2649 = vmatprep.subr.mxu0 %v2314_v19  ;;  %2763 = vmatpush1.msra.mxu1 %v2315_v46  ;;  %v2290_v54 = vmax.f32 %v2018_v20, 0.0  ;;  %v2292_v35 = vmax.f32 %v2179_v63, 0.0  ;;  %v2004_v31 = vadd.f32 %v6879_v48, %v5705_v9  ;;  %v2165_v29 = vadd.f32 %v6880_v49, %v5705_v9  ;;  %v6894_v23 = vld [vmem:[#allocation57_spill] sm:$0xff]  ;;  %v6904_v49 = vld [vmem:[#allocation10_spill] sm:$0xff] }
 0x2a6   :  { %2650 = vmatpush1.msra.mxu0 %v2313_v6  ;;  %2764 = vmatprep.subr.mxu1 %v2308_v34  ;;  %v2289_v24 = vmax.f32 %v2016_v5, 0.0  ;;  %v2291_v16 = vmax.f32 %v2177_v47, 0.0  ;;  %v2000_v3 = vadd.f32 %v6882_v60, %v6881_v17  ;;  %v2161_v13 = vadd.f32 %v6883_v4, %v6881_v17  ;;  %v6895_v6 = vld [vmem:[#allocation73_spill] sm:$0xff]  ;;  %v6897_v34 = vld [vmem:[#allocation51_spill] sm:$0xff]  ;;  %v6898_v47 = vld [vmem:[#allocation12_spill] sm:$0xff] }
 0x2a7   :  { %2651 = vmatprep.subr.mxu0 %v2306_v50  ;;  %2765 = vmatpush1.msra.mxu1 %v2307_v37  ;;  %v2282_v21 = vmax.f32 %v2012_v27, 0.0  ;;  %v2284_v18 = vmax.f32 %v2173_v55, 0.0  ;;  %v1998_v59 = vadd.f32 %v6884_v8, %v6881_v17  ;;  %v2159_v9 = vadd.f32 %v6885_v10, %v6881_v17  ;;  %v6896_v50 = vld [vmem:[#allocation56_spill] sm:$0xff]  ;;  %v6899_v55 = vld [vmem:[#allocation66_spill] sm:$0xff] }
 0x2a8   :  { %2652 = vmatpush1.msra.mxu0 %v2305_v15  ;;  %2766 = vmatprep.subr.mxu1 %v2300_v43  ;;  %v2281_v41 = vmax.f32 %v2010_v39, 0.0  ;;  %v2283_v32 = vmax.f32 %v2171_v57, 0.0  ;;  %v1994_v53 = vadd.f32 %v6887_v44, %v6886_v2  ;;  %v2155_v7 = vadd.f32 %v6888_v26, %v6886_v2  ;;  %v6900_v43 = vld [vmem:[#allocation67_spill] sm:$0xff]  ;;  %v6912_v26 = vld [vmem:[#allocation8_spill] sm:$0xff] }
 0x2a9   :  { %2653 = vmatprep.subr.mxu0 %v2298_v58  ;;  %2767 = vmatpush1.msra.mxu1 %v2299_v14  ;;  %v2274_v36 = vmax.f32 %v2006_v22, 0.0  ;;  %v2276_v12 = vmax.f32 %v2167_v25, 0.0  ;;  %v1992_v40 = vadd.f32 %v6889_v56, %v6886_v2  ;;  %v2153_v30 = vadd.f32 %v6890_v42, %v6886_v2  ;;  %v6901_v14 = vld [vmem:[#allocation31_spill] sm:$0xff]  ;;  %v6902_v22 = vld [vmem:[#allocation16_spill] sm:$0xff] }
 0x2aa   :  { %2654 = vmatpush1.msra.mxu0 %v2297_v38  ;;  %2768 = vmatprep.subr.mxu1 %v2292_v35  ;;  %v2273_v52 = vmax.f32 %v2004_v31, 0.0  ;;  %v2275_v0 = vmax.f32 %v2165_v29, 0.0  ;;  %v1988_v11 = vadd.f32 %v6892_v1, %v6891_v45  ;;  %v2149_v33 = vadd.f32 %v6893_v51, %v6891_v45  ;;  %v6909_v2 = vld [vmem:[#allocation7_spill] sm:$0xff] }
 0x2ab   :  { %2655 = vmatprep.subr.mxu0 %v2290_v54  ;;  %2769 = vmatpush1.msra.mxu1 %v2291_v16  ;;  %v2266_v19 = vmax.f32 %v2000_v3, 0.0  ;;  %v2268_v62 = vmax.f32 %v2161_v13, 0.0  ;;  %v1986_v28 = vadd.f32 %v6894_v23, %v6891_v45  ;;  %v2147_v46 = vadd.f32 %v6895_v6, %v6891_v45  ;;  %v6903_v54 = vld [vmem:[#allocation58_spill] sm:$0xff]  ;;  %v6910_v44 = vld [vmem:[#allocation23_spill] sm:$0xff] }
 0x2ac   :  { %2656 = vmatpush1.msra.mxu0 %v2289_v24  ;;  %2770 = vmatprep.subr.mxu1 %v2284_v18  ;;  %v2265_v20 = vmax.f32 %v1998_v59, 0.0  ;;  %v2267_v63 = vmax.f32 %v2159_v9, 0.0  ;;  %v1982_v5 = vadd.f32 %v6897_v34, %v6896_v50  ;;  %v2143_v15 = vadd.f32 %v6898_v47, %v6896_v50  ;;  %v6905_v24 = vld [vmem:[#allocation26_spill] sm:$0xff]  ;;  %v6906_v9 = vld [vmem:[#allocation61_spill] sm:$0xff]  ;;  %v6101_v34 = vpop.permute.xlu1 %2410 }
 0x2ad   :  { %2657 = vmatprep.subr.mxu0 %v2282_v21  ;;  %2771 = vmatpush1.msra.mxu1 %v2283_v32  ;;  %v2258_v37 = vmax.f32 %v1994_v53, 0.0  ;;  %v2260_v27 = vmax.f32 %v2155_v7, 0.0  ;;  %v1980_v58 = vadd.f32 %v6899_v55, %v6896_v50  ;;  %v2141_v39 = vadd.f32 %v6900_v43, %v6896_v50  ;;  %v6908_v32 = vld [vmem:[#allocation53_spill] sm:$0xff]  ;;  %v6911_v53 = vld [vmem:[#allocation64_spill] sm:$0xff] }
 0x2ae   :  { %2658 = vmatpush1.msra.mxu0 %v2281_v41  ;;  %2772 = vmatprep.subr.mxu1 %v2276_v12  ;;  %v2257_v57 = vmax.f32 %v1992_v40, 0.0  ;;  %v2259_v38 = vmax.f32 %v2153_v30, 0.0  ;;  %v1976_v25 = vadd.f32 %v6902_v22, %v6901_v14  ;;  %v2137_v35 = vadd.f32 %v6903_v54, %v6901_v14  ;;  %v6907_v41 = vld [vmem:[#allocation32_spill] sm:$0xff]  ;;  %v6913_v7 = vld [vmem:[#allocation65_spill] sm:$0xff] }
 0x2af   :  { %2659 = vmatprep.subr.mxu0 %v2274_v36  ;;  %2773 = vmatpush1.msra.mxu1 %v2275_v0  ;;  %v2250_v48 = vmax.f32 %v1988_v11, 0.0  ;;  %v2252_v31 = vmax.f32 %v2149_v33, 0.0  ;;  %v1974_v29 = vadd.f32 %v6904_v49, %v6901_v14  ;;  %v2135_v16 = vadd.f32 %v6905_v24, %v6901_v14 }
 0x2b0   :  { %2660 = vmatpush1.msra.mxu0 %v2273_v52  ;;  %2774 = vmatprep.subr.mxu1 %v2268_v62  ;;  %v2249_v17 = vmax.f32 %v1986_v28, 0.0  ;;  %v2251_v60 = vmax.f32 %v2147_v46, 0.0  ;;  %v2242_v3 = vmax.f32 %v1982_v5, 0.0  ;;  %v2244_v4 = vmax.f32 %v2143_v15, 0.0  ;;  %v6103_v15 = vpop.permute.xlu0 %2405  ;;  %v6105_v43 = vpop.permute.xlu1 %2400 }
 0x2b1   :  { %2661 = vmatprep.subr.mxu0 %v2266_v19  ;;  %2775 = vmatpush1.msra.mxu1 %v2267_v63  ;;  %v2241_v13 = vmax.f32 %v1980_v58, 0.0  ;;  %v2243_v21 = vmax.f32 %v2141_v39, 0.0  ;;  %v2234_v18 = vmax.f32 %v1976_v25, 0.0  ;;  %v2236_v8 = vmax.f32 %v2137_v35, 0.0 }
 0x2b2   :  { %2662 = vmatpush1.msra.mxu0 %v2265_v20  ;;  %2776 = vmatprep.subr.mxu1 %v2260_v27  ;;  %v2233_v59 = vmax.f32 %v1974_v29, 0.0  ;;  %v2235_v10 = vmax.f32 %v2135_v16, 0.0 }
 0x2b3   :  { %2663 = vmatprep.subr.mxu0 %v2258_v37  ;;  %2777 = vmatpush1.msra.mxu1 %v2259_v38 }
 0x2b4   :  { %2664 = vmatpush1.msra.mxu0 %v2257_v57  ;;  %2778 = vmatprep.subr.mxu1 %v2252_v31  ;;  %v6107_v38 = vpop.permute.xlu0 %2395 }
 0x2b5   :  { %2665 = vmatprep.subr.mxu0 %v2250_v48  ;;  %2779 = vmatpush1.msra.mxu1 %v2251_v60 }
 0x2b6   :  { %2666 = vmatpush1.msra.mxu0 %v2249_v17  ;;  %2780 = vmatprep.subr.mxu1 %v2244_v4  ;;  %v6119_v4 = vpop.permute.xlu1 %2390 }
 0x2b7   :  { %2667 = vmatprep.subr.mxu0 %v2242_v3  ;;  %2781 = vmatpush1.msra.mxu1 %v2243_v21 }
 0x2b8   :  { %2668 = vmatpush1.msra.mxu0 %v2241_v13  ;;  %2782 = vmatprep.subr.mxu1 %v2236_v8 }
 0x2b9   :  { %2669 = vmatprep.subr.mxu0 %v2234_v18  ;;  %2783 = vmatpush1.msra.mxu1 %v2235_v10 }
 0x2ba   :  { %2670 = vmatpush1.msra.mxu0 %v2233_v59  ;;  %2817 = vmatmul.mubr.f32.vlgmr.msra.gmra.mxu1 %v6906_v9 }
 0x2bb   :  { %2704 = vmatmul.mubr.f32.vlgmr.msra.gmra.mxu0 %v6906_v9  ;;  %2822 = vmatprep.mubr.f32.mxu1 %v6869_v61 }
 0x2bc   :  { %2709 = vmatprep.mubr.f32.mxu0 %v6869_v61 }
 0x2be   :  { %2823 = vmatmul.mubr.f32.gmra.mxu1 %v6907_v41 }
 0x2bf   :  { %2710 = vmatmul.mubr.f32.gmra.mxu0 %v6907_v41  ;;  %2828 = vmatprep.mubr.f32.mxu1 %v6869_v61 }
 0x2c0   :  { %2715 = vmatprep.mubr.f32.mxu0 %v6869_v61 }
 0x2c2   :  { %2829 = vmatmul.mubr.f32.gmra.mxu1 %v6908_v32 }
 0x2c3   :  { %2716 = vmatmul.mubr.f32.gmra.mxu0 %v6908_v32  ;;  %2834 = vmatprep.mubr.f32.mxu1 %v6869_v61  ;;  %v6125_v32 = vpop.permute.xlu0 %2385 }
 0x2c4   :  { %2721 = vmatprep.mubr.f32.mxu0 %v6869_v61 }
 0x2c6   :  { %2835 = vmatmul.mubr.f32.gmra.mxu1 %v6909_v2 }
 0x2c7   :  { %2722 = vmatmul.mubr.f32.gmra.mxu0 %v6909_v2  ;;  %2840 = vmatprep.mubr.f32.mxu1 %v6869_v61 }
 0x2c8   :  { %2727 = vmatprep.mubr.f32.mxu0 %v6869_v61 }
 0x2ca   :  { %2841 = vmatmul.mubr.f32.gmra.mxu1 %v6910_v44 }
 0x2cb   :  { %2728 = vmatmul.mubr.f32.gmra.mxu0 %v6910_v44  ;;  %2846 = vmatprep.mubr.f32.mxu1 %v6869_v61 }
 0x2cc   :  { %2733 = vmatprep.mubr.f32.mxu0 %v6869_v61 }
 0x2ce   :  { %2847 = vmatmul.mubr.f32.gmra.mxu1 %v6911_v53 }
 0x2cf   :  { %2734 = vmatmul.mubr.f32.gmra.mxu0 %v6911_v53  ;;  %2852 = vmatprep.mubr.f32.mxu1 %v6869_v61 }
 0x2d0   :  { %2739 = vmatprep.mubr.f32.mxu0 %v6869_v61 }
 0x2d2   :  { %2853 = vmatmul.mubr.f32.gmra.mxu1 %v6912_v26 }
 0x2d3   :  { %2740 = vmatmul.mubr.f32.gmra.mxu0 %v6912_v26  ;;  %2858 = vmatprep.mubr.f32.mxu1 %v6869_v61 }
 0x2d4   :  { %2745 = vmatprep.mubr.f32.mxu0 %v6869_v61 }
 0x2d6   :  { %2859 = vmatmul.mubr.f32.gmra.mxu1 %v6913_v7 }
 0x2d7   :  { %2746 = vmatmul.mubr.f32.gmra.mxu0 %v6913_v7  ;;  %3075 = vmatprep.mubr.f32.mxu1 %v6869_v61 }
 0x2d8   :  { %3004 = vmatprep.mubr.f32.mxu0 %v6869_v61 }
 0x33a   :  { %v6079_v12 = vpop.f32.mrf.mxu1 }
 0x33b   :  { %v6077_v36 = vpop.f32.mrf.mxu0 }
 0x33c   :  { %v6083_v40 = vpop.f32.mrf.mxu1 }
 0x33d   :  { %v6081_v56 = vpop.f32.mrf.mxu0 }
 0x33e   :  { %v6087_v30 = vpop.f32.mrf.mxu1 }
 0x33f   :  { %v6085_v42 = vpop.f32.mrf.mxu0 }
 0x340   :  { %v6091_v0 = vpop.f32.mrf.mxu1 }
 0x341   :  { %v6089_v52 = vpop.f32.mrf.mxu0 }
 0x342   :  { %v6095_v1 = vpop.f32.mrf.mxu1 }
 0x343   :  { %v6093_v45 = vpop.f32.mrf.mxu0 }
 0x344   :  { %v6099_v51 = vpop.f32.mrf.mxu1 }
 0x345   :  { %v6097_v11 = vpop.f32.mrf.mxu0 }
 0x346   :  { %v2610_v19 = vpop.f32.mrf.mxu1 }
 0x347   :  { %v2497_v33 = vpop.f32.mrf.mxu0 }
 0x348   :  { %v2612_v23 = vpop.f32.mrf.mxu1 }
 0x349   :  { %v2499_v62 = vpop.f32.mrf.mxu0 }
 0x34a   :  { %v2616_v6 = vpop.f32.mrf.mxu1  ;;  %v2500_v7 = vadd.f32 %v2499_v62, %v6119_v4  ;;  %v2607_v62 = vadd.f32 %v6099_v51, %v6125_v32 }
 0x34b   :  { %v2503_v28 = vpop.f32.mrf.mxu0  ;;  %v2617_v44 = vadd.f32 %v2616_v6, %v6107_v38  ;;  %v2494_v6 = vadd.f32 %v6097_v11, %v6125_v32 }
 0x34c   :  { %v2618_v20 = vpop.f32.mrf.mxu1  ;;  %v2504_v2 = vadd.f32 %v2503_v28, %v6107_v38 }
 0x34d   :  { %v2505_v46 = vpop.f32.mrf.mxu0  ;;  %v2619_v10 = vadd.f32 %v2618_v20, %v6107_v38 }
 0x34e   :  { %v2622_v50 = vpop.f32.mrf.mxu1  ;;  %v2506_v59 = vadd.f32 %v2505_v46, %v6107_v38  ;;  %v2613_v46 = vadd.f32 %v2612_v23, %v6119_v4 }
 0x34f   :  { %v2509_v63 = vpop.f32.mrf.mxu0  ;;  %v2623_v21 = vadd.f32 %v2622_v50, %v6105_v43  ;;  %v2498_v50 = vadd.f32 %v2497_v33, %v6119_v4  ;;  %v2900_v23 = vmax.f32 %v2619_v10, 0.0  ;;  %v2492_v33 = vadd.f32 %v6093_v45, %v6125_v32 }
 0x350   :  { %v2624_v47 = vpop.f32.mrf.mxu1  ;;  %v2510_v13 = vadd.f32 %v2509_v63, %v6105_v43 }
 0x351   :  { %v2511_v5 = vpop.f32.mrf.mxu0  ;;  %v2625_v17 = vadd.f32 %v2624_v47, %v6105_v43  ;;  %v2907_v28 = vmax.f32 %v2623_v21, 0.0 }
 0x352   :  { %v2628_v27 = vpop.f32.mrf.mxu1  ;;  %v2512_v16 = vadd.f32 %v2511_v5, %v6105_v43  ;;  %v2611_v5 = vadd.f32 %v2610_v19, %v6119_v4  ;;  %v2905_v47 = vmax.f32 %v2510_v13, 0.0  ;;  %v2605_v19 = vadd.f32 %v6095_v1, %v6125_v32 }
 0x353   :  { %v2515_v37 = vpop.f32.mrf.mxu0  ;;  %v2629_v24 = vadd.f32 %v2628_v27, %v6103_v15  ;;  %v2908_v20 = vmax.f32 %v2625_v17, 0.0  ;;  %v6137_v27 = vpop.permute.xlu1 %2380 }
 0x354   :  { %v2630_v58 = vpop.f32.mrf.mxu1  ;;  %v2516_v29 = vadd.f32 %v2515_v37, %v6103_v15  ;;  %v2906_v63 = vmax.f32 %v2512_v16, 0.0  ;;  %v2898_v37 = vmax.f32 %v2506_v59, 0.0  ;;  %v2488_v11 = vadd.f32 %v6089_v52, %v6137_v27 }
 0x355   :  { %v2517_v55 = vpop.f32.mrf.mxu0  ;;  %v2631_v48 = vadd.f32 %v2630_v58, %v6103_v15  ;;  %v2915_v26 = vmax.f32 %v2629_v24, 0.0  ;;  %v2899_v58 = vmax.f32 %v2617_v44, 0.0  ;;  %v2601_v51 = vadd.f32 %v6091_v0, %v6137_v27 }
 0x356   :  { %v2634_v57 = vpop.f32.mrf.mxu1  ;;  %v2518_v35 = vadd.f32 %v2517_v55, %v6103_v15  ;;  %v2913_v53 = vmax.f32 %v2516_v29, 0.0  ;;  %v2897_v55 = vmax.f32 %v2504_v2, 0.0  ;;  %v2486_v45 = vadd.f32 %v6085_v42, %v6137_v27 }
 0x357   :  { %v2521_v39 = vpop.f32.mrf.mxu0  ;;  %v2635_v22 = vadd.f32 %v2634_v57, %v6101_v34  ;;  %v2916_v41 = vmax.f32 %v2631_v48, 0.0  ;;  %v2892_v57 = vmax.f32 %v2613_v46, 0.0  ;;  %v2599_v1 = vadd.f32 %v6087_v30, %v6137_v27 }
 0x358   :  { %v2522_v14 = vadd.f32 %v2521_v39, %v6101_v34  ;;  %v2636_v54 = vpop.f32.mrf.mxu1  ;;  %v2914_v9 = vmax.f32 %v2518_v35, 0.0  ;;  %v2890_v39 = vmax.f32 %v2500_v7, 0.0  ;;  %v2884_v35 = vmax.f32 %v2607_v62, 0.0 }
 0x359   :  { %v2523_v25 = vpop.f32.mrf.mxu0  ;;  %v2637_v49 = vadd.f32 %v2636_v54, %v6101_v34  ;;  %v2923_v8 = vmax.f32 %v2635_v22, 0.0  ;;  %v2889_v22 = vmax.f32 %v2498_v50, 0.0  ;;  %v2882_v54 = vmax.f32 %v2494_v6, 0.0 }
 0x35a   :  { %v2524_v31 = vadd.f32 %v2523_v25, %v6101_v34  ;;  %v2921_v18 = vmax.f32 %v2522_v14, 0.0  ;;  %v6147_v14 = vpop.permute.xlu0 %2375  ;;  %v2891_v25 = vmax.f32 %v2611_v5, 0.0  ;;  %v2881_v48 = vmax.f32 %v2492_v33, 0.0 }
 0x35b   :  { %v2924_v3 = vmax.f32 %v2637_v49, 0.0  ;;  %v2482_v52 = vadd.f32 %v6081_v56, %v6147_v14  ;;  %v2595_v0 = vadd.f32 %v6083_v40, %v6147_v14  ;;  %v2480_v42 = vadd.f32 %v6077_v36, %v6147_v14 }
 0x35c   :  { %v2922_v60 = vmax.f32 %v2524_v31, 0.0  ;;  %v2593_v30 = vadd.f32 %v6079_v12, %v6147_v14  ;;  %v2883_v31 = vmax.f32 %v2605_v19, 0.0  ;;  %v2874_v49 = vmax.f32 %v2488_v11, 0.0  ;;  %v6164_v12 = vld [vmem:[%s6248_s7] sm:$0x7]  ;;  %s3333_s7 = smov [#allocation2]  }
 0x35d   :  { %3027 = vmatprep.subr.mxu1 %v2924_v3  ;;  %v2876_v29 = vmax.f32 %v2601_v51, 0.0  ;;  %v2873_v56 = vmax.f32 %v2486_v45, 0.0  ;;  %v2875_v40 = vmax.f32 %v2599_v1, 0.0  ;;  %v2866_v24 = vmax.f32 %v2482_v52, 0.0  ;;  %s3250_s13 = sshll.u32 %s3333_s7, 4  ;;  %s3251_s13 = int_to_ptr.vmem [resolvable:$true] %s3250_s13 }
 0x35e   :  { %2956 = vmatprep.subr.mxu0 %v2922_v60  ;;  %3028 = vmatpush1.msra.mxu1 %v2923_v8  ;;  %v2868_v16 = vmax.f32 %v2595_v0, 0.0  ;;  %v2865_v36 = vmax.f32 %v2480_v42, 0.0  ;;  %v2867_v17 = vmax.f32 %v2593_v30, 0.0  ;;  %s3307_s14 = scalar_lea.vmem %s3251_s13, 512  ;;  %p3312_p1 = scmp.lt.s32.totalorder %s3251_s13, %s3251_s13 }
 0x35f   :  { %2957 = vmatpush1.msra.mxu0 %v2921_v18  ;;  %3029 = vmatprep.subr.mxu1 %v2916_v41  ;;  %p3308_p0 = scmp.ne.s32.totalorder %s3251_s13, %s3307_s14  ;;  %p3313_p2 = scmp.lt.s32.totalorder %s3307_s14, %s3307_s14 }
 0x360   :  { %2958 = vmatprep.subr.mxu0 %v2914_v9  ;;  %3030 = vmatpush1.msra.mxu1 %v2915_v26 }
 0x361   :  { %2959 = vmatpush1.msra.mxu0 %v2913_v53  ;;  %3031 = vmatprep.subr.mxu1 %v2908_v20  ;;  %p3314_p3 = por %p3313_p2, %p3312_p1 }
 0x362   :  { %2960 = vmatprep.subr.mxu0 %v2906_v63  ;;  %3032 = vmatpush1.msra.mxu1 %v2907_v28 }
 0x363   :  { %2961 = vmatpush1.msra.mxu0 %v2905_v47  ;;  %3033 = vmatprep.subr.mxu1 %v2900_v23  ;;  %p3315_p4 = pnand %p3314_p3, %p3308_p0 }
 0x364   :  { %2962 = vmatprep.subr.mxu0 %v2898_v37  ;;  %3034 = vmatpush1.msra.mxu1 %v2899_v58 }
 0x365   :  { %2963 = vmatpush1.msra.mxu0 %v2897_v55  ;;  %3035 = vmatprep.subr.mxu1 %v2892_v57 }
 0x366   :  { %2964 = vmatprep.subr.mxu0 %v2890_v39  ;;  %3036 = vmatpush1.msra.mxu1 %v2891_v25 }
 0x367   :  { %2965 = vmatpush1.msra.mxu0 %v2889_v22  ;;  %3037 = vmatprep.subr.mxu1 %v2884_v35 }
 0x368   :  { %2966 = vmatprep.subr.mxu0 %v2882_v54  ;;  %3038 = vmatpush1.msra.mxu1 %v2883_v31 }
 0x369   :  { %2967 = vmatpush1.msra.mxu0 %v2881_v48  ;;  %3039 = vmatprep.subr.mxu1 %v2876_v29 }
 0x36a   :  { %2968 = vmatprep.subr.mxu0 %v2874_v49  ;;  %3040 = vmatpush1.msra.mxu1 %v2875_v40 }
 0x36b   :  { %2969 = vmatpush1.msra.mxu0 %v2873_v56  ;;  %3041 = vmatprep.subr.mxu1 %v2868_v16 }
 0x36c   :  { %2970 = vmatprep.subr.mxu0 %v2866_v24  ;;  %3042 = vmatpush1.msra.mxu1 %v2867_v17 }
 0x36d   :  { %2971 = vmatpush1.msra.mxu0 %v2865_v36  ;;  %3259 = vmatmul.mubr.msk.f32.vlgmr.msra.gmra.mxu1 %vm2936_vm0, %v6164_v12 }
 0x36e   :  { %3258 = vmatmul.mubr.msk.f32.vlgmr.msra.gmra.mxu0 %vm2936_vm0, %v6164_v12  ;;  %3217 = vmatprep.mubr.f32.mxu1 %v6869_v61 }
 0x36f   :  { %3146 = vmatprep.mubr.f32.mxu0 %v6869_v61 }
 0x37a   :  { %v6174_v3 = vpop.f32.mrf.mxu1 }
 0x37b   :  { %v6172_v60 = vpop.f32.mrf.mxu0 }
 0x37c   :  { %v6178_v21 = vpop.f32.mrf.mxu1 }
 0x37d   :  { %v6176_v13 = vpop.f32.mrf.mxu0 }
 0x37e   :  { %v6182_v8 = vpop.f32.mrf.mxu1 }
 0x37f   :  { %v6180_v18 = vpop.f32.mrf.mxu0 }
 0x380   :  { %v6186_v10 = vpop.f32.mrf.mxu1 }
 0x381   :  { %v6184_v59 = vpop.f32.mrf.mxu0 }
 0x382   :  { %v6190_v41 = vpop.f32.mrf.mxu1 }
 0x383   :  { %v6188_v9 = vpop.f32.mrf.mxu0 }
 0x384   :  { %v2832_v2 = vpop.f32.mrf.mxu1 }
 0x385   :  { %v2719_v61 = vpop.f32.mrf.mxu0 }
 0x386   :  { %v2836_v53 = vpop.f32.mrf.mxu1 }
 0x387   :  { %v2723_v44 = vpop.f32.mrf.mxu0 }
 0x388   :  { %v2838_v7 = vpop.f32.mrf.mxu1 }
 0x389   :  { %v2725_v26 = vpop.f32.mrf.mxu0  ;;  %v2839_v17 = vadd.f32 %v2838_v7, %v6119_v4  ;;  %v2718_v7 = vadd.f32 %v6188_v9, %v6125_v32  ;;  %v2712_v9 = vadd.f32 %v6180_v18, %v6137_v27  ;;  %v2706_v18 = vadd.f32 %v6172_v60, %v6147_v14 }
 0x38a   :  { %v2842_v63 = vpop.f32.mrf.mxu1 }
 0x38b   :  { %v2729_v46 = vpop.f32.mrf.mxu0  ;;  %v2843_v24 = vadd.f32 %v2842_v63, %v6107_v38  ;;  %v2833_v63 = vadd.f32 %v2832_v2, %v6125_v32  ;;  %v2869_v60 = vmax.f32 %v2706_v18, 0.0 }
 0x38c   :  { %v2844_v50 = vpop.f32.mrf.mxu1 }
 0x38d   :  { %v2731_v20 = vpop.f32.mrf.mxu0 }
 0x38e   :  { %v2848_v47 = vpop.f32.mrf.mxu1  ;;  %v2732_v29 = vadd.f32 %v2731_v20, %v6107_v38 }
 0x38f   :  { %v2735_v5 = vpop.f32.mrf.mxu0  ;;  %v2849_v48 = vadd.f32 %v2848_v47, %v6105_v43  ;;  %v2837_v47 = vadd.f32 %v2836_v53, %v6119_v4  ;;  %v2714_v53 = vadd.f32 %v6184_v59, %v6137_v27  ;;  %v2708_v59 = vadd.f32 %v6176_v13, %v6147_v14 }
 0x390   :  { %v2850_v6 = vpop.f32.mrf.mxu1  ;;  %v2736_v30 = vadd.f32 %v2735_v5, %v6105_v43  ;;  %v2877_v13 = vmax.f32 %v2712_v9, 0.0 }
 0x391   :  { %v2737_v28 = vpop.f32.mrf.mxu0  ;;  %v2851_v54 = vadd.f32 %v2850_v6, %v6105_v43  ;;  %v2902_v6 = vmax.f32 %v2732_v29, 0.0 }
 0x392   :  { %v2854_v37 = vpop.f32.mrf.mxu1  ;;  %v2738_v0 = vadd.f32 %v2737_v28, %v6105_v43  ;;  %v2726_v43 = vadd.f32 %v2725_v26, %v6119_v4  ;;  %v2909_v28 = vmax.f32 %v2736_v30, 0.0 }
 0x393   :  { %v2741_v62 = vpop.f32.mrf.mxu0  ;;  %v2855_v52 = vadd.f32 %v2854_v37, %v6103_v15  ;;  %v2912_v20 = vmax.f32 %v2851_v54, 0.0  ;;  %v2896_v37 = vmax.f32 %v2839_v17, 0.0 }
 0x394   :  { %v2856_v33 = vpop.f32.mrf.mxu1  ;;  %v2742_v25 = vadd.f32 %v2741_v62, %v6103_v15  ;;  %v2910_v5 = vmax.f32 %v2738_v0, 0.0  ;;  %v2894_v2 = vmax.f32 %v2726_v43, 0.0 }
 0x395   :  { %v2743_v23 = vpop.f32.mrf.mxu0  ;;  %v2857_v45 = vadd.f32 %v2856_v33, %v6103_v15  ;;  %v2919_v36 = vmax.f32 %v2855_v52, 0.0 }
 0x396   :  { %v2860_v55 = vpop.f32.mrf.mxu1  ;;  %v2744_v57 = vadd.f32 %v2743_v23, %v6103_v15  ;;  %v2730_v15 = vadd.f32 %v2729_v46, %v6107_v38  ;;  %v2917_v16 = vmax.f32 %v2742_v25, 0.0  ;;  %v2911_v46 = vmax.f32 %v2849_v48, 0.0 }
 0x397   :  { %v2747_v19 = vpop.f32.mrf.mxu0  ;;  %v2861_v11 = vadd.f32 %v2860_v55, %v6101_v34  ;;  %v2920_v40 = vmax.f32 %v2857_v45, 0.0  ;;  %v2895_v23 = vmax.f32 %v2837_v47, 0.0  ;;  %v2934_v45 = vpop.permute.xlu1 %2933 }
 0x398   :  { %v2748_v58 = vadd.f32 %v2747_v19, %v6101_v34  ;;  %v2862_v39 = vpop.f32.mrf.mxu1  ;;  %v2918_v56 = vmax.f32 %v2744_v57, 0.0  ;;  %v2901_v62 = vmax.f32 %v2730_v15, 0.0  ;;  %v2888_v19 = vmax.f32 %v2833_v63, 0.0 }
 0x399   :  { %v2749_v51 = vpop.f32.mrf.mxu0  ;;  %v2863_v22 = vadd.f32 %v2862_v39, %v6101_v34  ;;  %v2927_v49 = vmax.f32 %v2861_v11, 0.0 }
 0x39a   :  { %v2750_v1 = vadd.f32 %v2749_v51, %v6101_v34  ;;  %v2925_v31 = vmax.f32 %v2748_v58, 0.0  ;;  %v2845_v34 = vadd.f32 %v2844_v50, %v6107_v38  ;;  %v2724_v50 = vadd.f32 %v2723_v44, %v6119_v4 }
 0x39b   :  { %v2928_v42 = vmax.f32 %v2863_v22, 0.0  ;;  %v2720_v38 = vadd.f32 %v2719_v61, %v6125_v32  ;;  %v2831_v44 = vadd.f32 %v6190_v41, %v6125_v32  ;;  %v2903_v4 = vmax.f32 %v2843_v24, 0.0 }
 0x39c   :  { %v2926_v35 = vmax.f32 %v2750_v1, 0.0  ;;  %v2904_v26 = vmax.f32 %v2845_v34, 0.0  ;;  %v2827_v61 = vadd.f32 %v6186_v10, %v6137_v27  ;;  %v2825_v32 = vadd.f32 %v6182_v8, %v6137_v27 }
 0x39d   :  { %3169 = vmatprep.subr.mxu1 %v2928_v42  ;;  %v2893_v41 = vmax.f32 %v2724_v50, 0.0  ;;  %v2821_v10 = vadd.f32 %v6178_v21, %v6147_v14  ;;  %v2886_v33 = vmax.f32 %v2720_v38, 0.0  ;;  %v2819_v27 = vadd.f32 %v6174_v3, %v6147_v14 }
 0x39e   :  { %3098 = vmatprep.subr.mxu0 %v2926_v35  ;;  %3170 = vmatpush1.msra.mxu1 %v2927_v49  ;;  %v2885_v8 = vmax.f32 %v2718_v7, 0.0  ;;  %v2887_v55 = vmax.f32 %v2831_v44, 0.0  ;;  %v2878_v58 = vmax.f32 %v2714_v53, 0.0  ;;  %v2880_v11 = vmax.f32 %v2827_v61, 0.0 }
 0x39f   :  { %3099 = vmatpush1.msra.mxu0 %v2925_v31  ;;  %3171 = vmatprep.subr.mxu1 %v2920_v40  ;;  %v2879_v21 = vmax.f32 %v2825_v32, 0.0  ;;  %v2870_v51 = vmax.f32 %v2708_v59, 0.0  ;;  %v2872_v39 = vmax.f32 %v2821_v10, 0.0  ;;  %v2871_v57 = vmax.f32 %v2819_v27, 0.0 }
 0x3a0   :  { %3100 = vmatprep.subr.mxu0 %v2918_v56  ;;  %3172 = vmatpush1.msra.mxu1 %v2919_v36 }
 0x3a1   :  { %3101 = vmatpush1.msra.mxu0 %v2917_v16  ;;  %3173 = vmatprep.subr.mxu1 %v2912_v20 }
 0x3a2   :  { %3102 = vmatprep.subr.mxu0 %v2910_v5  ;;  %3174 = vmatpush1.msra.mxu1 %v2911_v46 }
 0x3a3   :  { %3103 = vmatpush1.msra.mxu0 %v2909_v28  ;;  %3175 = vmatprep.subr.mxu1 %v2904_v26 }
 0x3a4   :  { %3104 = vmatprep.subr.mxu0 %v2902_v6  ;;  %3176 = vmatpush1.msra.mxu1 %v2903_v4 }
 0x3a5   :  { %3105 = vmatpush1.msra.mxu0 %v2901_v62  ;;  %3177 = vmatprep.subr.mxu1 %v2896_v37 }
 0x3a6   :  { %3106 = vmatprep.subr.mxu0 %v2894_v2  ;;  %3178 = vmatpush1.msra.mxu1 %v2895_v23 }
 0x3a7   :  { %3107 = vmatpush1.msra.mxu0 %v2893_v41  ;;  %3179 = vmatprep.subr.mxu1 %v2888_v19 }
 0x3a8   :  { %3108 = vmatprep.subr.mxu0 %v2886_v33  ;;  %3180 = vmatpush1.msra.mxu1 %v2887_v55 }
 0x3a9   :  { %3109 = vmatpush1.msra.mxu0 %v2885_v8  ;;  %3181 = vmatprep.subr.mxu1 %v2880_v11 }
 0x3aa   :  { %3110 = vmatprep.subr.mxu0 %v2878_v58  ;;  %3182 = vmatpush1.msra.mxu1 %v2879_v21 }
 0x3ab   :  { %3111 = vmatpush1.msra.mxu0 %v2877_v13  ;;  %3183 = vmatprep.subr.mxu1 %v2872_v39 }
 0x3ac   :  { %3112 = vmatprep.subr.mxu0 %v2870_v51  ;;  %3184 = vmatpush1.msra.mxu1 %v2871_v57 }
 0x3ad   :  { %3113 = vmatpush1.msra.mxu0 %v2869_v60  ;;  %3261 = vmatmul.mubr.msk.f32.vlgmr.msra.gmra.mxu1 %vm2936_vm0, %v6164_v12 }
 0x3ae   :  { %3260 = vmatmul.mubr.msk.f32.vlgmr.msra.gmra.mxu0 %vm2936_vm0, %v6164_v12 }
 0x42d   :  { %v3077_v3 = vpop.f32.mrf.mxu1 }
 0x42e   :  { %v3006_v14 = vpop.f32.mrf.mxu0  ;;  %v3078_v52 = vadd.f32 %v3077_v3, %v2934_v45 }
 0x42f   :  { %v3079_v22 = vpop.f32.mrf.mxu1  ;;  %v3007_v25 = vadd.f32 %v3006_v14, %v2934_v45 }
 0x430   :  { %v3008_v1 = vpop.f32.mrf.mxu0  ;;  %v3080_v54 = vadd.f32 %v3079_v22, %v2934_v45 }
 0x431   :  { %v3009_v0 = vadd.f32 %v3008_v1, %v2934_v45 }
 0x432   :  { %v3233_v42 = vcombine.low %v3078_v52, %v3080_v54 }
 0x433   :  { %v3232_v35 = vcombine.low %v3007_v25, %v3009_v0 }
 0x434   :  { %3241 = vst [vmem:[#allocation2 + $0x8] sm:$0x77] %v3233_v42 }
 0x435   :  { %3240 = vst [vmem:[#allocation2] sm:$0x77] %v3232_v35 }
 0x46d   :  { %v3219_v48 = vpop.f32.mrf.mxu1 }
 0x46e   :  { %v3148_v30 = vpop.f32.mrf.mxu0  ;;  %v3220_v29 = vadd.f32 %v3219_v48, %v2934_v45 }
 0x46f   :  { %v3221_v49 = vpop.f32.mrf.mxu1  ;;  %v3149_v12 = vadd.f32 %v3148_v30, %v2934_v45 }
 0x470   :  { %v3150_v31 = vpop.f32.mrf.mxu0  ;;  %v3222_v56 = vadd.f32 %v3221_v49, %v2934_v45 }
 0x471   :  { %v3151_v34 = vadd.f32 %v3150_v31, %v2934_v45 }
 0x472   :  { %v3235_v15 = vcombine.low %v3220_v29, %v3222_v56 }
 0x473   :  { %v3234_v40 = vcombine.low %v3149_v12, %v3151_v34 }
 0x474   :  { %3243 = vst [vmem:[#allocation2 + $0x18] sm:$0x77] %v3235_v15 }
 0x475   :  { %3242 = vst [vmem:[#allocation2 + $0x10] sm:$0x77] %v3234_v40 }
 0x476   :  { %3318 = shalt.err (!%p3315_p4)
}
 0x477   :  { %3253 = dma.vmem_to_hbm [thread:$0]  %s3251_s13, 512, %s6250_s9, [#allocation3]  }
 0x478   :  { %3327 = dma.done.wait [#allocation3], 512  }
 0x479   :  { %3328 = vsyncadd [#allocation3], 4294966784 }
 0x47a   :  { %3257 = vsyncpa [#allocation3], 1 }

</bundles_post_ra>
